<compile_context>
chip_gen: v7x
topology: tpu7x:2x2x1
jax: 0.10.0
libtpu: 0.0.40
codegen_flags: <defaults>
</compile_context>

<pallas_src>
import jax
import jax.numpy as jnp
from jax.experimental import pallas as pl
from jax.experimental.pallas import tpu as pltpu

DIM = 93          # input SPD size (module: dim = 93)
DIM_P = 96        # row-padded input size (sublane aligned)
DIM1 = 30         # BiMap output SPD size (module: dim1 = 30)
DIM1_P = 32       # padded BiMap size (32*32 = 1024 lanes when flattened)
CLASSES = 117     # module: classes = 117
CLASSES_P = 128   # lane-dense padded class count
B_TILE = 8        # batch elements processed per grid step
EIG_EPS = 1e-6    # clamp for log of eigenvalues

_CPARAMS = pltpu.CompilerParams(
    dimension_semantics=("parallel",),
    vmem_limit_bytes=32 * 1024 * 1024,
)


# ---------------- Pallas kernels ----------------

def bimap_kernel(xf_ref, w_ref, wt_ref, o_ref, z_scr):
    """Y = W^T X W (+ fused symmetrize + SPD pad block) for B_TILE matrices."""
    # Stage 1: single big (B_TILE*96, 93) @ (93, 32) matmul fills MXU sublanes.
    z_scr[...] = jnp.dot(
        xf_ref[...], w_ref[...], preferred_element_type=jnp.float32
    ).astype(jnp.bfloat16)

    # Identity in the padded 2x2 corner keeps the padded 32x32 matrix SPD for
    # eigh; its eigenvalues are exactly 1 -> log == 0 -> no effect on logits.
    row = jax.lax.broadcasted_iota(jnp.int32, (DIM1_P, DIM1_P), 0)
    col = jax.lax.broadcasted_iota(jnp.int32, (DIM1_P, DIM1_P), 1)
    pad_eye = jnp.where((row == col) & (row >= DIM1), 1.0, 0.0).astype(jnp.float32)

    wt = wt_ref[...]                                         # (32, 96) bf16
    for b in range(B_TILE):                                  # 8-aligned slices
        zb = z_scr[pl.ds(b * DIM_P, DIM_P), :]               # (96, 32) bf16
        yb = jnp.dot(wt, zb, preferred_element_type=jnp.float32)   # (32, 32)
        yb = 0.5 * (yb + yb.T) + pad_eye                     # fused symmetrize
        o_ref[b] = yb


def logeig_kernel(u_ref, s_ref, o_ref):
    """L = U diag(log s) U^T for a tile of B_TILE matrices (clamped log)."""
    u = u_ref[...]                                           # (B, 32, 32) f32
    logs = jnp.log(jnp.maximum(s_ref[...], EIG_EPS))         # (B, 1, 32) — EUP
    us = u * logs                                            # U @ diag(log s)
    L = jnp.einsum("bij,bkj->bik", us, u, preferred_element_type=jnp.float32)
    o_ref[...] = L.astype(o_ref.dtype)                       # bf16 out (half HBM)


def linear_kernel(l_ref, wt_ref, b_ref, o_ref):
    """y = L_flat @ W^T + b with resident padded W^T, lane-dense 128 output."""
    o_ref[...] = (
        jnp.dot(l_ref[...], wt_ref[...], preferred_element_type=jnp.float32)
        + b_ref[...]
    )


# ---------------- Pallas wrappers ----------------

def bimap(xf, w_pad, wt_pad, n_pad):
    """xf: (n_pad*96, 93) bf16, w_pad: (93,32) bf16, wt_pad: (32,96) bf16."""
    grid = (n_pad // B_TILE,)
    flops = 2 * n_pad * DIM_P * DIM * DIM1_P + 2 * n_pad * DIM1_P * DIM_P * DIM1_P
    bytes_accessed = (xf.size * 2 + w_pad.size * 2 + wt_pad.size * 2
                      + n_pad * DIM1_P * DIM1_P * 4)
    return pl.pallas_call(
        bimap_kernel,
        out_shape=jax.ShapeDtypeStruct((n_pad, DIM1_P, DIM1_P), jnp.float32),
        grid=grid,
        in_specs=[
            pl.BlockSpec((B_TILE * DIM_P, DIM), lambda i: (i, 0)),
            pl.BlockSpec((DIM, DIM1_P), lambda i: (0, 0)),
            pl.BlockSpec((DIM1_P, DIM_P), lambda i: (0, 0)),
        ],
        out_specs=pl.BlockSpec((B_TILE, DIM1_P, DIM1_P), lambda i: (i, 0, 0)),
        scratch_shapes=[pltpu.VMEM((B_TILE * DIM_P, DIM1_P), jnp.bfloat16)],
        compiler_params=_CPARAMS,
        cost_estimate=pl.CostEstimate(
            flops=flops, transcendentals=0, bytes_accessed=bytes_accessed),
    )(xf, w_pad, wt_pad)


def logeig(u, s, n_pad):
    """u: (n_pad, 32, 32) f32 eigenvectors, s: (n_pad, 32) f32 eigenvalues."""
    s3 = s[:, None, :]                                       # (n_pad, 1, 32)
    grid = (n_pad // B_TILE,)
    flops = 2 * n_pad * DIM1_P * DIM1_P * DIM1_P
    bytes_accessed = u.size * 4 + s3.size * 4 + n_pad * DIM1_P * DIM1_P * 2
    return pl.pallas_call(
        logeig_kernel,
        out_shape=jax.ShapeDtypeStruct((n_pad, DIM1_P, DIM1_P), jnp.bfloat16),
        grid=grid,
        in_specs=[
            pl.BlockSpec((B_TILE, DIM1_P, DIM1_P), lambda i: (i, 0, 0)),
            pl.BlockSpec((B_TILE, 1, DIM1_P), lambda i: (i, 0, 0)),
        ],
        out_specs=pl.BlockSpec((B_TILE, DIM1_P, DIM1_P), lambda i: (i, 0, 0)),
        compiler_params=_CPARAMS,
        cost_estimate=pl.CostEstimate(
            flops=flops, transcendentals=n_pad * DIM1_P,
            bytes_accessed=bytes_accessed),
    )(u, s3)


def linear(l_flat, wlin_t_pad, b_pad, n_pad):
    """l_flat: (n_pad, 1024) bf16, wlin_t_pad: (1024, 128) bf16, b_pad: (1,128)."""
    grid = (n_pad // B_TILE,)
    flops = 2 * n_pad * DIM1_P * DIM1_P * CLASSES_P
    bytes_accessed = (l_flat.size * 2 + wlin_t_pad.size * 2 + b_pad.size * 4
                      + n_pad * CLASSES_P * 4)
    return pl.pallas_call(
        linear_kernel,
        out_shape=jax.ShapeDtypeStruct((n_pad, CLASSES_P), jnp.float32),
        grid=grid,
        in_specs=[
            pl.BlockSpec((B_TILE, DIM1_P * DIM1_P), lambda i: (i, 0)),
            pl.BlockSpec((DIM1_P * DIM1_P, CLASSES_P), lambda i: (0, 0)),
            pl.BlockSpec((1, CLASSES_P), lambda i: (0, 0)),
        ],
        out_specs=pl.BlockSpec((B_TILE, CLASSES_P), lambda i: (i, 0)),
        compiler_params=_CPARAMS,
        cost_estimate=pl.CostEstimate(
            flops=flops, transcendentals=0, bytes_accessed=bytes_accessed),
    )(l_flat, wlin_t_pad, b_pad)


# ---------------- Forward pass (glue in plain JAX) ----------------

def hdmnet_forward(x, params):
    """x: (N, 1, DIM, DIM) SPD matrices -> logits (N, CLASSES). bn=False path."""
    w_pad, wt_pad, wlin_t_pad, b_pad = params
    n = x.shape[0]
    n_pad = ((n + B_TILE - 1) // B_TILE) * B_TILE

    xs = x[:, 0, :, :].astype(jnp.bfloat16)                  # (N, 93, 93)
    xs = jnp.pad(xs, ((0, n_pad - n), (0, DIM_P - DIM), (0, 0)))
    xf = xs.reshape(n_pad * DIM_P, DIM)                      # free contiguous reshape

    y = bimap(xf, w_pad, wt_pad, n_pad)                      # (n_pad, 32, 32), symmetric

    # TODO(synk): the LogEig eigendecomposition has no Pallas equivalent; it is
    # computed with jnp.linalg.eigh (XLA); only the matmuls run in Pallas.
    s, u = jnp.linalg.eigh(y)                                # f32

    L = logeig(u, s, n_pad)                                  # (n_pad, 32, 32) bf16
    l_flat = L.reshape(n_pad, DIM1_P * DIM1_P)               # free row-major reshape

    logits = linear(l_flat, wlin_t_pad, b_pad, n_pad)        # (n_pad, 128)
    return logits[:n, :CLASSES]


# ---------------- Deterministic parameter init (padded + pre-transposed) ----

def init_params(key):
    k1, k2, k3 = jax.random.split(key, 3)

    # BiMap weight: semi-orthogonal (Stiefel) (93, 30) matrix via QR, zero-padded
    # to (93, 32); transposed copy zero-padded to (32, 96) for stage 2.
    a = jax.random.normal(k1, (DIM, DIM1), dtype=jnp.float32)
    w, _ = jnp.linalg.qr(a)                                  # (93, 30)
    w_pad = jnp.zeros((DIM, DIM1_P), jnp.float32).at[:, :DIM1].set(w)
    w_pad_b = w_pad.astype(jnp.bfloat16)                     # (93, 32)
    wt_pad_b = jnp.zeros((DIM1_P, DIM_P), jnp.bfloat16).at[:, :DIM].set(w_pad_b.T)

    # nn.Linear(DIM1**2, CLASSES) default-style init, padded to (128, 32, 32)
    # and stored pre-transposed as (1024, 128) bf16.
    bound = 1.0 / float(DIM1 * DIM1) ** 0.5
    w_lin = jax.random.uniform(k2, (CLASSES, DIM1 * DIM1),
                               minval=-bound, maxval=bound, dtype=jnp.float32)
    b_lin = jax.random.uniform(k3, (CLASSES,),
                               minval=-bound, maxval=bound, dtype=jnp.float32)
    wl3 = jnp.zeros((CLASSES_P, DIM1_P, DIM1_P), jnp.float32)
    wl3 = wl3.at[:CLASSES, :DIM1, :DIM1].set(w_lin.reshape(CLASSES, DIM1, DIM1))
    wlin_t_pad = wl3.reshape(CLASSES_P, DIM1_P * DIM1_P).T.astype(jnp.bfloat16)
    b_pad = jnp.zeros((1, CLASSES_P), jnp.float32).at[0, :CLASSES].set(b_lin)

    return w_pad_b, wt_pad_b, wlin_t_pad, b_pad


if __name__ == "__main__":
    key = jax.random.PRNGKey(0)
    kp, kx = jax.random.split(key)
    params = init_params(kp)

    N = 2
    # Deterministic SPD inputs: A A^T / DIM + 0.5 I (well conditioned).
    a = jax.random.normal(kx, (N, DIM, DIM), dtype=jnp.float32)
    spd = a @ jnp.swapaxes(a, -1, -2) / DIM + 0.5 * jnp.eye(DIM, dtype=jnp.float32)
    x = spd[:, None, :, :]                                   # (N, 1, DIM, DIM)

    out = jax.jit(hdmnet_forward)(x, params)
    out = jax.block_until_ready(out)
    assert out.shape == (N, CLASSES)
    assert bool(jnp.all(jnp.isfinite(out)))
    print("KERNEL_OK")
</pallas_src>

<mosaic_0001>
module attributes {stable_mosaic.version = 11 : i64} {
  func.func @bimap_kernel(%arg0: i32, %arg1: memref<768x93xbf16, #tpu.memory_space<vmem>>, %arg2: memref<93x32xbf16, #tpu.memory_space<vmem>>, %arg3: memref<32x96xbf16, #tpu.memory_space<vmem>>, %arg4: memref<8x32x32xf32, #tpu.memory_space<vmem>>, %arg5: memref<768x32xbf16, #tpu.memory_space<vmem>>) attributes {dimension_semantics = [#tpu.dimension_semantics<parallel>], iteration_bounds = array<i64: 1>, scalar_prefetch = 0 : i64, scratch_operands = 1 : i64, tpu.core_type = #tpu.core_type<tc>, window_params = [{transform_indices = @transform_0, window_bounds = array<i64: 768, 93>}, {pipeline_mode = #tpu.pipeline_mode<synchronous>, transform_indices = @transform_1, window_bounds = array<i64: 93, 32>}, {pipeline_mode = #tpu.pipeline_mode<synchronous>, transform_indices = @transform_2, window_bounds = array<i64: 32, 96>}, {transform_indices = @transform_3, window_bounds = array<i64: 8, 32, 32>}]} {
    %c0 = arith.constant 0 : index
    %c0_0 = arith.constant 0 : index
    %0 = vector.load %arg1[%c0, %c0_0] : memref<768x93xbf16, #tpu.memory_space<vmem>>, vector<768x93xbf16>
    %c0_1 = arith.constant 0 : index
    %c0_2 = arith.constant 0 : index
    %1 = vector.load %arg2[%c0_1, %c0_2] : memref<93x32xbf16, #tpu.memory_space<vmem>>, vector<93x32xbf16>
    %cst = arith.constant dense<0.000000e+00> : vector<768x32xf32>
    %2 = tpu.matmul %0, %1, %cst {dimension_numbers = #tpu.dot_dimension_numbers<[1], [0], [0], [1], [0, 0, 1, 1], [], []>} : vector<768x93xbf16>, vector<93x32xbf16>, vector<768x32xf32> -> vector<768x32xf32>
    %3 = arith.truncf %2 : vector<768x32xf32> to vector<768x32xbf16>
    %c0_3 = arith.constant 0 : index
    %c0_4 = arith.constant 0 : index
    %4 = vector.load %arg5[%c0_3, %c0_4] : memref<768x32xbf16, #tpu.memory_space<vmem>>, vector<768x32xbf16>
    tpu.vector_store %arg5[%c0_3, %c0_4], %3 {strides = array<i32>} : memref<768x32xbf16, #tpu.memory_space<vmem>>, vector<768x32xbf16>,
    %5 = tpu.iota {dimensions = array<i32: 0>} : vector<32x32xi32>
    %6 = tpu.iota {dimensions = array<i32: 1>} : vector<32x32xi32>
    %7 = arith.cmpi eq, %5, %6 : vector<32x32xi32>
    %c30_i32 = arith.constant 30 : i32
    %8 = vector.broadcast %c30_i32 : i32 to vector<32x32xi32>
    %9 = arith.cmpi sge, %5, %8 : vector<32x32xi32>
    %10 = arith.andi %7, %9 : vector<32x32xi1>
    %cst_5 = arith.constant 1.000000e+00 : f32
    %cst_6 = arith.constant 0.000000e+00 : f32
    %11 = vector.broadcast %cst_5 : f32 to vector<32x32xf32>
    %12 = vector.broadcast %cst_6 : f32 to vector<32x32xf32>
    %13 = arith.select %10, %11, %12 : vector<32x32xi1>, vector<32x32xf32>
    %c0_7 = arith.constant 0 : index
    %c0_8 = arith.constant 0 : index
    %14 = vector.load %arg3[%c0_7, %c0_8] : memref<32x96xbf16, #tpu.memory_space<vmem>>, vector<32x96xbf16>
    %c0_9 = arith.constant 0 : index
    %c0_10 = arith.constant 0 : index
    %15 = vector.load %arg5[%c0_9, %c0_10] : memref<768x32xbf16, #tpu.memory_space<vmem>>, vector<96x32xbf16>
    %cst_11 = arith.constant dense<0.000000e+00> : vector<32x32xf32>
    %16 = tpu.matmul %14, %15, %cst_11 {dimension_numbers = #tpu.dot_dimension_numbers<[1], [0], [0], [1], [0, 0, 1, 1], [], []>} : vector<32x96xbf16>, vector<96x32xbf16>, vector<32x32xf32> -> vector<32x32xf32>
    %17 = tpu.transpose %16, [1, 0] : vector<32x32xf32> -> vector<32x32xf32>
    %18 = arith.addf %16, %17 : vector<32x32xf32>
    %cst_12 = arith.constant 5.000000e-01 : f32
    %19 = vector.broadcast %cst_12 : f32 to vector<32x32xf32>
    %20 = arith.mulf %19, %18 : vector<32x32xf32>
    %21 = arith.addf %20, %13 : vector<32x32xf32>
    %c0_13 = arith.constant 0 : index
    %c0_14 = arith.constant 0 : index
    %c0_15 = arith.constant 0 : index
    %22 = vector.load %arg4[%c0_13, %c0_14, %c0_15] : memref<8x32x32xf32, #tpu.memory_space<vmem>>, vector<1x32x32xf32>
    %23 = vector.shape_cast %22 : vector<1x32x32xf32> to vector<32x32xf32>
    %24 = vector.shape_cast %21 : vector<32x32xf32> to vector<1x32x32xf32>
    tpu.vector_store %arg4[%c0_13, %c0_14, %c0_15], %24 {strides = array<i32>} : memref<8x32x32xf32, #tpu.memory_space<vmem>>, vector<1x32x32xf32>,
    %c96 = arith.constant 96 : index
    %c0_16 = arith.constant 0 : index
    %25 = vector.load %arg5[%c96, %c0_16] : memref<768x32xbf16, #tpu.memory_space<vmem>>, vector<96x32xbf16>
    %cst_17 = arith.constant dense<0.000000e+00> : vector<32x32xf32>
    %26 = tpu.matmul %14, %25, %cst_17 {dimension_numbers = #tpu.dot_dimension_numbers<[1], [0], [0], [1], [0, 0, 1, 1], [], []>} : vector<32x96xbf16>, vector<96x32xbf16>, vector<32x32xf32> -> vector<32x32xf32>
    %27 = tpu.transpose %26, [1, 0] : vector<32x32xf32> -> vector<32x32xf32>
    %28 = arith.addf %26, %27 : vector<32x32xf32>
    %cst_18 = arith.constant 5.000000e-01 : f32
    %29 = vector.broadcast %cst_18 : f32 to vector<32x32xf32>
    %30 = arith.mulf %29, %28 : vector<32x32xf32>
    %31 = arith.addf %30, %13 : vector<32x32xf32>
    %c1 = arith.constant 1 : index
    %c0_19 = arith.constant 0 : index
    %c0_20 = arith.constant 0 : index
    %32 = vector.load %arg4[%c1, %c0_19, %c0_20] : memref<8x32x32xf32, #tpu.memory_space<vmem>>, vector<1x32x32xf32>
    %33 = vector.shape_cast %32 : vector<1x32x32xf32> to vector<32x32xf32>
    %34 = vector.shape_cast %31 : vector<32x32xf32> to vector<1x32x32xf32>
    tpu.vector_store %arg4[%c1, %c0_19, %c0_20], %34 {strides = array<i32>} : memref<8x32x32xf32, #tpu.memory_space<vmem>>, vector<1x32x32xf32>,
    %c192 = arith.constant 192 : index
    %c0_21 = arith.constant 0 : index
    %35 = vector.load %arg5[%c192, %c0_21] : memref<768x32xbf16, #tpu.memory_space<vmem>>, vector<96x32xbf16>
    %cst_22 = arith.constant dense<0.000000e+00> : vector<32x32xf32>
    %36 = tpu.matmul %14, %35, %cst_22 {dimension_numbers = #tpu.dot_dimension_numbers<[1], [0], [0], [1], [0, 0, 1, 1], [], []>} : vector<32x96xbf16>, vector<96x32xbf16>, vector<32x32xf32> -> vector<32x32xf32>
    %37 = tpu.transpose %36, [1, 0] : vector<32x32xf32> -> vector<32x32xf32>
    %38 = arith.addf %36, %37 : vector<32x32xf32>
    %cst_23 = arith.constant 5.000000e-01 : f32
    %39 = vector.broadcast %cst_23 : f32 to vector<32x32xf32>
    %40 = arith.mulf %39, %38 : vector<32x32xf32>
    %41 = arith.addf %40, %13 : vector<32x32xf32>
    %c2 = arith.constant 2 : index
    %c0_24 = arith.constant 0 : index
    %c0_25 = arith.constant 0 : index
    %42 = vector.load %arg4[%c2, %c0_24, %c0_25] : memref<8x32x32xf32, #tpu.memory_space<vmem>>, vector<1x32x32xf32>
    %43 = vector.shape_cast %42 : vector<1x32x32xf32> to vector<32x32xf32>
    %44 = vector.shape_cast %41 : vector<32x32xf32> to vector<1x32x32xf32>
    tpu.vector_store %arg4[%c2, %c0_24, %c0_25], %44 {strides = array<i32>} : memref<8x32x32xf32, #tpu.memory_space<vmem>>, vector<1x32x32xf32>,
    %c288 = arith.constant 288 : index
    %c0_26 = arith.constant 0 : index
    %45 = vector.load %arg5[%c288, %c0_26] : memref<768x32xbf16, #tpu.memory_space<vmem>>, vector<96x32xbf16>
    %cst_27 = arith.constant dense<0.000000e+00> : vector<32x32xf32>
    %46 = tpu.matmul %14, %45, %cst_27 {dimension_numbers = #tpu.dot_dimension_numbers<[1], [0], [0], [1], [0, 0, 1, 1], [], []>} : vector<32x96xbf16>, vector<96x32xbf16>, vector<32x32xf32> -> vector<32x32xf32>
    %47 = tpu.transpose %46, [1, 0] : vector<32x32xf32> -> vector<32x32xf32>
    %48 = arith.addf %46, %47 : vector<32x32xf32>
    %cst_28 = arith.constant 5.000000e-01 : f32
    %49 = vector.broadcast %cst_28 : f32 to vector<32x32xf32>
    %50 = arith.mulf %49, %48 : vector<32x32xf32>
    %51 = arith.addf %50, %13 : vector<32x32xf32>
    %c3 = arith.constant 3 : index
    %c0_29 = arith.constant 0 : index
    %c0_30 = arith.constant 0 : index
    %52 = vector.load %arg4[%c3, %c0_29, %c0_30] : memref<8x32x32xf32, #tpu.memory_space<vmem>>, vector<1x32x32xf32>
    %53 = vector.shape_cast %52 : vector<1x32x32xf32> to vector<32x32xf32>
    %54 = vector.shape_cast %51 : vector<32x32xf32> to vector<1x32x32xf32>
    tpu.vector_store %arg4[%c3, %c0_29, %c0_30], %54 {strides = array<i32>} : memref<8x32x32xf32, #tpu.memory_space<vmem>>, vector<1x32x32xf32>,
    %c384 = arith.constant 384 : index
    %c0_31 = arith.constant 0 : index
    %55 = vector.load %arg5[%c384, %c0_31] : memref<768x32xbf16, #tpu.memory_space<vmem>>, vector<96x32xbf16>
    %cst_32 = arith.constant dense<0.000000e+00> : vector<32x32xf32>
    %56 = tpu.matmul %14, %55, %cst_32 {dimension_numbers = #tpu.dot_dimension_numbers<[1], [0], [0], [1], [0, 0, 1, 1], [], []>} : vector<32x96xbf16>, vector<96x32xbf16>, vector<32x32xf32> -> vector<32x32xf32>
    %57 = tpu.transpose %56, [1, 0] : vector<32x32xf32> -> vector<32x32xf32>
    %58 = arith.addf %56, %57 : vector<32x32xf32>
    %cst_33 = arith.constant 5.000000e-01 : f32
    %59 = vector.broadcast %cst_33 : f32 to vector<32x32xf32>
    %60 = arith.mulf %59, %58 : vector<32x32xf32>
    %61 = arith.addf %60, %13 : vector<32x32xf32>
    %c4 = arith.constant 4 : index
    %c0_34 = arith.constant 0 : index
    %c0_35 = arith.constant 0 : index
    %62 = vector.load %arg4[%c4, %c0_34, %c0_35] : memref<8x32x32xf32, #tpu.memory_space<vmem>>, vector<1x32x32xf32>
    %63 = vector.shape_cast %62 : vector<1x32x32xf32> to vector<32x32xf32>
    %64 = vector.shape_cast %61 : vector<32x32xf32> to vector<1x32x32xf32>
    tpu.vector_store %arg4[%c4, %c0_34, %c0_35], %64 {strides = array<i32>} : memref<8x32x32xf32, #tpu.memory_space<vmem>>, vector<1x32x32xf32>,
    %c480 = arith.constant 480 : index
    %c0_36 = arith.constant 0 : index
    %65 = vector.load %arg5[%c480, %c0_36] : memref<768x32xbf16, #tpu.memory_space<vmem>>, vector<96x32xbf16>
    %cst_37 = arith.constant dense<0.000000e+00> : vector<32x32xf32>
    %66 = tpu.matmul %14, %65, %cst_37 {dimension_numbers = #tpu.dot_dimension_numbers<[1], [0], [0], [1], [0, 0, 1, 1], [], []>} : vector<32x96xbf16>, vector<96x32xbf16>, vector<32x32xf32> -> vector<32x32xf32>
    %67 = tpu.transpose %66, [1, 0] : vector<32x32xf32> -> vector<32x32xf32>
    %68 = arith.addf %66, %67 : vector<32x32xf32>
    %cst_38 = arith.constant 5.000000e-01 : f32
    %69 = vector.broadcast %cst_38 : f32 to vector<32x32xf32>
    %70 = arith.mulf %69, %68 : vector<32x32xf32>
    %71 = arith.addf %70, %13 : vector<32x32xf32>
    %c5 = arith.constant 5 : index
    %c0_39 = arith.constant 0 : index
    %c0_40 = arith.constant 0 : index
    %72 = vector.load %arg4[%c5, %c0_39, %c0_40] : memref<8x32x32xf32, #tpu.memory_space<vmem>>, vector<1x32x32xf32>
    %73 = vector.shape_cast %72 : vector<1x32x32xf32> to vector<32x32xf32>
    %74 = vector.shape_cast %71 : vector<32x32xf32> to vector<1x32x32xf32>
    tpu.vector_store %arg4[%c5, %c0_39, %c0_40], %74 {strides = array<i32>} : memref<8x32x32xf32, #tpu.memory_space<vmem>>, vector<1x32x32xf32>,
    %c576 = arith.constant 576 : index
    %c0_41 = arith.constant 0 : index
    %75 = vector.load %arg5[%c576, %c0_41] : memref<768x32xbf16, #tpu.memory_space<vmem>>, vector<96x32xbf16>
    %cst_42 = arith.constant dense<0.000000e+00> : vector<32x32xf32>
    %76 = tpu.matmul %14, %75, %cst_42 {dimension_numbers = #tpu.dot_dimension_numbers<[1], [0], [0], [1], [0, 0, 1, 1], [], []>} : vector<32x96xbf16>, vector<96x32xbf16>, vector<32x32xf32> -> vector<32x32xf32>
    %77 = tpu.transpose %76, [1, 0] : vector<32x32xf32> -> vector<32x32xf32>
    %78 = arith.addf %76, %77 : vector<32x32xf32>
    %cst_43 = arith.constant 5.000000e-01 : f32
    %79 = vector.broadcast %cst_43 : f32 to vector<32x32xf32>
    %80 = arith.mulf %79, %78 : vector<32x32xf32>
    %81 = arith.addf %80, %13 : vector<32x32xf32>
    %c6 = arith.constant 6 : index
    %c0_44 = arith.constant 0 : index
    %c0_45 = arith.constant 0 : index
    %82 = vector.load %arg4[%c6, %c0_44, %c0_45] : memref<8x32x32xf32, #tpu.memory_space<vmem>>, vector<1x32x32xf32>
    %83 = vector.shape_cast %82 : vector<1x32x32xf32> to vector<32x32xf32>
    %84 = vector.shape_cast %81 : vector<32x32xf32> to vector<1x32x32xf32>
    tpu.vector_store %arg4[%c6, %c0_44, %c0_45], %84 {strides = array<i32>} : memref<8x32x32xf32, #tpu.memory_space<vmem>>, vector<1x32x32xf32>,
    %c672 = arith.constant 672 : index
    %c0_46 = arith.constant 0 : index
    %85 = vector.load %arg5[%c672, %c0_46] : memref<768x32xbf16, #tpu.memory_space<vmem>>, vector<96x32xbf16>
    %cst_47 = arith.constant dense<0.000000e+00> : vector<32x32xf32>
    %86 = tpu.matmul %14, %85, %cst_47 {dimension_numbers = #tpu.dot_dimension_numbers<[1], [0], [0], [1], [0, 0, 1, 1], [], []>} : vector<32x96xbf16>, vector<96x32xbf16>, vector<32x32xf32> -> vector<32x32xf32>
    %87 = tpu.transpose %86, [1, 0] : vector<32x32xf32> -> vector<32x32xf32>
    %88 = arith.addf %86, %87 : vector<32x32xf32>
    %cst_48 = arith.constant 5.000000e-01 : f32
    %89 = vector.broadcast %cst_48 : f32 to vector<32x32xf32>
    %90 = arith.mulf %89, %88 : vector<32x32xf32>
    %91 = arith.addf %90, %13 : vector<32x32xf32>
    %c7 = arith.constant 7 : index
    %c0_49 = arith.constant 0 : index
    %c0_50 = arith.constant 0 : index
    %92 = vector.load %arg4[%c7, %c0_49, %c0_50] : memref<8x32x32xf32, #tpu.memory_space<vmem>>, vector<1x32x32xf32>
    %93 = vector.shape_cast %92 : vector<1x32x32xf32> to vector<32x32xf32>
    %94 = vector.shape_cast %91 : vector<32x32xf32> to vector<1x32x32xf32>
    tpu.vector_store %arg4[%c7, %c0_49, %c0_50], %94 {strides = array<i32>} : memref<8x32x32xf32, #tpu.memory_space<vmem>>, vector<1x32x32xf32>,
    return
  }
  func.func @transform_0(%arg0: i32) -> (i32, i32) {
    %c0_i32 = arith.constant 0 : i32
    %c0_i32_0 = arith.constant 0 : i32
    return %arg0, %c0_i32 : i32, i32
  }
  func.func @transform_1(%arg0: i32) -> (i32, i32) {
    %c0_i32 = arith.constant 0 : i32
    %c0_i32_0 = arith.constant 0 : i32
    %c0_i32_1 = arith.constant 0 : i32
    return %c0_i32, %c0_i32_0 : i32, i32
  }
  func.func @transform_2(%arg0: i32) -> (i32, i32) {
    %c0_i32 = arith.constant 0 : i32
    %c0_i32_0 = arith.constant 0 : i32
    %c0_i32_1 = arith.constant 0 : i32
    return %c0_i32, %c0_i32_0 : i32, i32
  }
  func.func @transform_3(%arg0: i32) -> (i32, i32, i32) {
    %c0_i32 = arith.constant 0 : i32
    %c0_i32_0 = arith.constant 0 : i32
    %c0_i32_1 = arith.constant 0 : i32
    return %arg0, %c0_i32, %c0_i32_0 : i32, i32, i32
  }
}

module attributes {stable_mosaic.version = 11 : i64} {
  func.func @logeig_kernel(%arg0: i32, %arg1: memref<8x32x32xf32, #tpu.memory_space<vmem>>, %arg2: memref<8x1x32xf32, #tpu.memory_space<vmem>>, %arg3: memref<8x32x32xbf16, #tpu.memory_space<vmem>>) attributes {dimension_semantics = [#tpu.dimension_semantics<parallel>], iteration_bounds = array<i64: 1>, scalar_prefetch = 0 : i64, scratch_operands = 0 : i64, tpu.core_type = #tpu.core_type<tc>, window_params = [{transform_indices = @transform_0, window_bounds = array<i64: 8, 32, 32>}, {transform_indices = @transform_1, window_bounds = array<i64: 8, 1, 32>}, {transform_indices = @transform_2, window_bounds = array<i64: 8, 32, 32>}]} {
    %c0 = arith.constant 0 : index
    %c0_0 = arith.constant 0 : index
    %c0_1 = arith.constant 0 : index
    %0 = vector.load %arg1[%c0, %c0_0, %c0_1] : memref<8x32x32xf32, #tpu.memory_space<vmem>>, vector<8x32x32xf32>
    %c0_2 = arith.constant 0 : index
    %c0_3 = arith.constant 0 : index
    %c0_4 = arith.constant 0 : index
    %1 = vector.load %arg2[%c0_2, %c0_3, %c0_4] : memref<8x1x32xf32, #tpu.memory_space<vmem>>, vector<8x1x32xf32>
    %cst = arith.constant 9.99999997E-7 : f32
    %2 = vector.broadcast %cst : f32 to vector<8x1x32xf32>
    %3 = arith.maximumf %1, %2 : vector<8x1x32xf32>
    %4 = math.log %3 : vector<8x1x32xf32>
    %5 = vector.broadcast %4 : vector<8x1x32xf32> to vector<8x32x32xf32>
    %6 = arith.mulf %0, %5 : vector<8x32x32xf32>
    "tpu.trace_start"() <{level = 10 : i32, message = "bij,bkj->bik"}> : () -> ()
    %cst_5 = arith.constant dense<0.000000e+00> : vector<8x32x32xf32>
    %7 = tpu.matmul %6, %0, %cst_5 {dimension_numbers = #tpu.dot_dimension_numbers<[2], [2], [1], [1], [0, 0, 0, 1, 1, 1], [0], [0]>} : vector<8x32x32xf32>, vector<8x32x32xf32>, vector<8x32x32xf32> -> vector<8x32x32xf32>
    "tpu.trace_stop"() : () -> ()
    %8 = arith.truncf %7 : vector<8x32x32xf32> to vector<8x32x32xbf16>
    %c0_6 = arith.constant 0 : index
    %c0_7 = arith.constant 0 : index
    %c0_8 = arith.constant 0 : index
    %9 = vector.load %arg3[%c0_6, %c0_7, %c0_8] : memref<8x32x32xbf16, #tpu.memory_space<vmem>>, vector<8x32x32xbf16>
    tpu.vector_store %arg3[%c0_6, %c0_7, %c0_8], %8 {strides = array<i32>} : memref<8x32x32xbf16, #tpu.memory_space<vmem>>, vector<8x32x32xbf16>,
    return
  }
  func.func @transform_0(%arg0: i32) -> (i32, i32, i32) {
    %c0_i32 = arith.constant 0 : i32
    %c0_i32_0 = arith.constant 0 : i32
    %c0_i32_1 = arith.constant 0 : i32
    return %arg0, %c0_i32, %c0_i32_0 : i32, i32, i32
  }
  func.func @transform_1(%arg0: i32) -> (i32, i32, i32) {
    %c0_i32 = arith.constant 0 : i32
    %c0_i32_0 = arith.constant 0 : i32
    %c0_i32_1 = arith.constant 0 : i32
    return %arg0, %c0_i32, %c0_i32_0 : i32, i32, i32
  }
  func.func @transform_2(%arg0: i32) -> (i32, i32, i32) {
    %c0_i32 = arith.constant 0 : i32
    %c0_i32_0 = arith.constant 0 : i32
    %c0_i32_1 = arith.constant 0 : i32
    return %arg0, %c0_i32, %c0_i32_0 : i32, i32, i32
  }
}

module attributes {stable_mosaic.version = 11 : i64} {
  func.func @linear_kernel(%arg0: i32, %arg1: memref<8x1024xbf16, #tpu.memory_space<vmem>>, %arg2: memref<1024x128xbf16, #tpu.memory_space<vmem>>, %arg3: memref<1x128xf32, #tpu.memory_space<vmem>>, %arg4: memref<8x128xf32, #tpu.memory_space<vmem>>) attributes {dimension_semantics = [#tpu.dimension_semantics<parallel>], iteration_bounds = array<i64: 1>, scalar_prefetch = 0 : i64, scratch_operands = 0 : i64, tpu.core_type = #tpu.core_type<tc>, window_params = [{transform_indices = @transform_0, window_bounds = array<i64: 8, 1024>}, {pipeline_mode = #tpu.pipeline_mode<synchronous>, transform_indices = @transform_1, window_bounds = array<i64: 1024, 128>}, {pipeline_mode = #tpu.pipeline_mode<synchronous>, transform_indices = @transform_2, window_bounds = array<i64: 1, 128>}, {transform_indices = @transform_3, window_bounds = array<i64: 8, 128>}]} {
    %c0 = arith.constant 0 : index
    %c0_0 = arith.constant 0 : index
    %0 = vector.load %arg1[%c0, %c0_0] : memref<8x1024xbf16, #tpu.memory_space<vmem>>, vector<8x1024xbf16>
    %c0_1 = arith.constant 0 : index
    %c0_2 = arith.constant 0 : index
    %1 = vector.load %arg2[%c0_1, %c0_2] : memref<1024x128xbf16, #tpu.memory_space<vmem>>, vector<1024x128xbf16>
    %cst = arith.constant dense<0.000000e+00> : vector<8x128xf32>
    %2 = tpu.matmul %0, %1, %cst {dimension_numbers = #tpu.dot_dimension_numbers<[1], [0], [0], [1], [0, 0, 1, 1], [], []>} : vector<8x1024xbf16>, vector<1024x128xbf16>, vector<8x128xf32> -> vector<8x128xf32>
    %c0_3 = arith.constant 0 : index
    %c0_4 = arith.constant 0 : index
    %3 = vector.load %arg3[%c0_3, %c0_4] : memref<1x128xf32, #tpu.memory_space<vmem>>, vector<1x128xf32>
    %4 = vector.broadcast %3 : vector<1x128xf32> to vector<8x128xf32>
    %5 = arith.addf %2, %4 : vector<8x128xf32>
    %c0_5 = arith.constant 0 : index
    %c0_6 = arith.constant 0 : index
    %6 = vector.load %arg4[%c0_5, %c0_6] : memref<8x128xf32, #tpu.memory_space<vmem>>, vector<8x128xf32>
    tpu.vector_store %arg4[%c0_5, %c0_6], %5 {strides = array<i32>} : memref<8x128xf32, #tpu.memory_space<vmem>>, vector<8x128xf32>,
    return
  }
  func.func @transform_0(%arg0: i32) -> (i32, i32) {
    %c0_i32 = arith.constant 0 : i32
    %c0_i32_0 = arith.constant 0 : i32
    return %arg0, %c0_i32 : i32, i32
  }
  func.func @transform_1(%arg0: i32) -> (i32, i32) {
    %c0_i32 = arith.constant 0 : i32
    %c0_i32_0 = arith.constant 0 : i32
    %c0_i32_1 = arith.constant 0 : i32
    return %c0_i32, %c0_i32_0 : i32, i32
  }
  func.func @transform_2(%arg0: i32) -> (i32, i32) {
    %c0_i32 = arith.constant 0 : i32
    %c0_i32_0 = arith.constant 0 : i32
    %c0_i32_1 = arith.constant 0 : i32
    return %c0_i32, %c0_i32_0 : i32, i32
  }
  func.func @transform_3(%arg0: i32) -> (i32, i32) {
    %c0_i32 = arith.constant 0 : i32
    %c0_i32_0 = arith.constant 0 : i32
    return %arg0, %c0_i32 : i32, i32
  }
}

</mosaic_0001>

<bundles_post_ra>
// kernel: custom-call.2
= control target key start
LH: loop header
LB: loop body
LE: loop exit
PB: predicated region body
PF: predicated region fallthrough
CT: control target
= control target key end

     0   :  { %s2639_s0 = inlined_call_operand.vmem [shape: f32[8,16,16], index: 0, kind: input, shape index: {}]   ;;  %s2640_s1 = inlined_call_operand.vmem [shape: f32[8,16,16], index: 1, kind: input, shape index: {}]   ;;  %s2641_s2 = inlined_call_operand.vmem [shape: f32[8,16,16], index: 2, kind: input, shape index: {}]   ;;  %s2642_s3 = inlined_call_operand.vmem [shape: f32[8,16,16], index: 3, kind: input, shape index: {}]   ;;  %s2643_s4 = inlined_call_operand.vmem [shape: f32[8,16], index: 4, kind: output, shape index: {0}]   ;;  %s2644_s5 = inlined_call_operand.vmem [shape: f32[8,16], index: 5, kind: output, shape index: {1}]   ;;  %s2645_s6 = inlined_call_operand.vmem [shape: f32[8,16,16], index: 6, kind: output, shape index: {2}]   ;;  %s2646_s7 = inlined_call_operand.vmem [shape: f32[8,16,16], index: 7, kind: output, shape index: {3}]   ;;  %s2647_s8 = inlined_call_operand.vmem [shape: f32[8,16,16], index: 8, kind: output, shape index: {4}]   ;;  %s2648_s9 = inlined_call_operand.vmem [shape: f32[8,16,16], index: 9, kind: output, shape index: {5}]  }
   0x1   :  { %2649 = sst [smem:[#allocation23_spill]] %s2639_s0 }
   0x2   :  { %s2109_s30 = smov 0   ;;  %s2111_s10 = smov 0  }
   0x3   :  { %s2113_s11 = smov 0  }
   0x4 LB: > { %s2125_s12 = sadd.s32 4294967295, %s2046_s11   ;;  %s2128_s13 = sadd.s32 1, %s2046_s11   ;;  %s2046_s11 = sphi %s2113_s11, %s2659_s11   ;;  %s2042_s10 = sphi %s2111_s10, %s2658_s10   ;;  %s2038_s30 = sphi %s2109_s30, %s2657_s30  }
   0x5   : > { %s20_s14 = sshrl.u32 %s2046_s11, 3  ;;  %s21_s15 = sshrl.u32 %s2128_s13, 3 }
   0x6   : > { %s22_s16 = ssub.s32 %s20_s14, %s21_s15  ;;  %s25_s17 = sadd.s32 1, %s2042_s10 }
   0x7   : > { %p23_p0 = scmp.eq.s32.totalorder %s22_s16, 0  ;;  %p35_p1 = scmp.ne.s32.totalorder %s2042_s10, %s2038_s30 }
   0x8   : > { %p36_p2 = scmp.eq.s32.totalorder %s2125_s12, 7  ;;  %p1804_p4 = scmp.ge.s32.totalorder %s2046_s11, 8 }
   0x9   : > { %s2137_s18 = scalar_select %p23_p0, %s2042_s10, %s25_s17  }
   0xa   : > { %p2139_p3 = por %p36_p2, %p35_p1  ;;  %86 = sbr.rel (%p1804_p4) target bundleno = 23 (0x17), region = 16 }
   0xb   : > { %s88_s20 = sand.u32 (!%p1804_p4), 1, %s2046_s11   ;;  %s1806_s21 = sshll.u32 (!%p1804_p4), %s2046_s11, 4 }
   0xc   : > { %s1805_s22 = sshll.u32 (!%p1804_p4), %s88_s20, 4  ;;  %s2651_s0 = sld [smem:[#allocation23_spill]] (!%p1804_p4) }
   0xd   : > { %s90_s26 = scalar_lea.vmem (!%p1804_p4), [#allocation0], %s1805_s22  ;;  %s117_s29 = scalar_lea.vmem (!%p1804_p4), %s2640_s1, %s1806_s21 }
   0xe   : > { %v130_v2 = vld [vmem:[%s117_s29] sm:$0xff] (!%p1804_p4)  ;;  %v132_v3 = vld [vmem:[%s117_s29 + $0x8] sm:$0xff] (!%p1804_p4)  ;;  %s142_s16 = scalar_lea.vmem (!%p1804_p4), %s2641_s2, %s1806_s21  ;;  %s115_s17 = scalar_lea.vmem (!%p1804_p4), [#allocation1], %s1805_s22 }
   0xf   : > { %131 = vst [vmem:[%s115_s17] sm:$0xff] (!%p1804_p4), %v130_v2  ;;  %133 = vst [vmem:[%s115_s17 + $0x8] sm:$0xff] (!%p1804_p4), %v132_v3  ;;  %v155_v4 = vld [vmem:[%s142_s16] sm:$0xff] (!%p1804_p4)  ;;  %v157_v5 = vld [vmem:[%s142_s16 + $0x8] sm:$0xff] (!%p1804_p4)  ;;  %s167_s24 = scalar_lea.vmem (!%p1804_p4), %s2642_s3, %s1806_s21 }
  0x10   : > { %v180_v6 = vld [vmem:[%s167_s24] sm:$0xff] (!%p1804_p4)  ;;  %v182_v7 = vld [vmem:[%s167_s24 + $0x8] sm:$0xff] (!%p1804_p4) }
  0x12   : > { %s92_s25 = scalar_lea.vmem %s2651_s0, %s1806_s21 }
  0x13   : > { %v105_v0 = vld [vmem:[%s92_s25] sm:$0xff]  ;;  %v107_v1 = vld [vmem:[%s92_s25 + $0x8] sm:$0xff]  ;;  %s140_s25 = scalar_lea.vmem [#allocation2], %s1805_s22 }
  0x14   : > { %106 = vst [vmem:[%s90_s26] sm:$0xff] %v105_v0  ;;  %108 = vst [vmem:[%s90_s26 + $0x8] sm:$0xff] %v107_v1  ;;  %s165_s26 = scalar_lea.vmem [#allocation3], %s1805_s22 }
  0x15   : > { %156 = vst [vmem:[%s140_s25] sm:$0xff] %v155_v4  ;;  %158 = vst [vmem:[%s140_s25 + $0x8] sm:$0xff] %v157_v5 }
  0x16   : > { %181 = vst [vmem:[%s165_s26] sm:$0xff] %v180_v6  ;;  %183 = vst [vmem:[%s165_s26 + $0x8] sm:$0xff] %v182_v7 }
  0x17 PF: > { %p1813_p5 = scmp.ge.s32.totalorder %s2046_s11, 1  ;;  %p188_p6 = scmp.lt.s32.totalorder %s2046_s11, 9 }
  0x19   : > { %p189_p7 = pnand %p1813_p5, %p188_p6 }
  0x1b   : > { %192 = sbr.rel (%p189_p7) target bundleno = 1048 (0x418), region = 96 }
  0x22   : > { %s195_s27 = sand.u32 1, %s2125_s12   ;;  %s229_s28 = sand.u32 1, %s2038_s30   ;;  %v297_v8 = vlaneseq  ;;  %v2056_v19 = vmov 0.0  }
  0x23   : > { %s2162_s21 = sshll.u32 %s195_s27, 4  ;;  %s2164_s22 = sshll.u32 %s229_s28, 3 }
  0x24   : > { %v2166_v9 = vshrl.u32 %v297_v8, 7  ;;  %s197_s29 = scalar_lea.vmem [#allocation0], %s2162_s21  ;;  %v2169_v12 = vand.u32 127, %v297_v8  ;;  %s201_s30 = scalar_lea.vmem [#allocation1], %s2162_s21 }
  0x25   : > { %v257_v10 = vld [vmem:[%s197_s29] sm:$0xff]  ;;  %v1824_v11 = vld [vmem:[%s197_s29 + $0x8] sm:$0xff]  ;;  %s205_s11 = scalar_lea.vmem [#allocation2], %s2162_s21  ;;  %s209_s14 = scalar_lea.vmem [#allocation3], %s2162_s21 }
  0x26   : > { %v302_v9 = vmov %v2166_v9  ;;  %v264_v13 = vld [vmem:[%s201_s30] sm:$0xff]  ;;  %v1826_v14 = vld [vmem:[%s201_s30 + $0x8] sm:$0xff]  ;;  %s2177_s15 = scalar_lea.vmem [#allocation6], %s2162_s21  ;;  %s2182_s16 = scalar_lea.vmem [#allocation7], %s2162_s21  ;;  %v299_v12 = vmov %v2169_v12  ;;  %vm1663_vm4 = vcmp.lt.s32.totalorder %v2169_v12, 16 }
  0x27   : > { %v271_v15 = vld [vmem:[%s205_s11] sm:$0xff]  ;;  %v322_v9 = vmov %v2166_v9  ;;  %v1828_v16 = vld [vmem:[%s205_s11 + $0x8] sm:$0xff]  ;;  %284 = vst [vmem:[%s2177_s15] sm:$0xff] %v2056_v19  ;;  %1832 = vst [vmem:[%s2177_s15 + $0x8] sm:$0xff] %v2056_v19  ;;  %s256_s17 = smov [#allocation10]  ;;  %s263_s20 = smov [#allocation11]  ;;  %v312_v20 = vadd.s32 8, %v302_v9  ;;  %v319_v12 = vmov %v2169_v12  ;;  %vm306_vm0 = vcmp.eq.s32.totalorder %v302_v9, %v299_v12 }
  0x28   : > { %v278_v17 = vld [vmem:[%s209_s14] sm:$0xff]  ;;  %v1830_v18 = vld [vmem:[%s209_s14 + $0x8] sm:$0xff]  ;;  %287 = vst [vmem:[%s2182_s16] sm:$0xff] %v2056_v19  ;;  %1833 = vst [vmem:[%s2182_s16 + $0x8] sm:$0xff] %v2056_v19  ;;  %s2187_s23 = scalar_lea.vmem [#allocation8], %s2162_s21  ;;  %s2192_s24 = scalar_lea.vmem [#allocation9], %s2162_s21  ;;  %v332_v21 = vadd.s32 8, %v322_v9  ;;  %vm326_vm2 = vcmp.eq.s32.totalorder %v322_v9, %v319_v12  ;;  %v1658_v9 = vmov %v2166_v9 }
  0x29   : > { %290 = vst [vmem:[%s2187_s23] sm:$0xff] %v2056_v19  ;;  %1834 = vst [vmem:[%s2187_s23 + $0x8] sm:$0xff] %v2056_v19  ;;  %s270_s25 = smov [#allocation12]  ;;  %s277_s26 = smov [#allocation13]  ;;  %vm313_vm1 = vcmp.eq.s32.totalorder %v312_v20, %v299_v12  ;;  %v1674_v38 = vadd.s32 8, %v1658_v9 }
  0x2a   : > { %293 = vst [vmem:[%s2192_s24] sm:$0xff] %v2056_v19  ;;  %1835 = vst [vmem:[%s2192_s24 + $0x8] sm:$0xff] %v2056_v19  ;;  %s296_s15 = smov %s2177_s15  ;;  %s316_s24 = smov %s2192_s24  ;;  %vm333_vm3 = vcmp.eq.s32.totalorder %v332_v21, %v319_v12  ;;  %v1655_v12 = vmov %v2169_v12 }
  0x2b   : > { %258 = vst [vmem:[%s256_s17] sm:$0xff] %v257_v10  ;;  %1825 = vst [vmem:[%s256_s17 + $0x8] sm:$0xff] %v1824_v11  ;;  %s1659_s21 = smov [#allocation10]  ;;  %s1685_s29 = smov [#allocation11]  ;;  %vm1668_vm5 = vcmp.eq.s32.totalorder %v1658_v9, %v1655_v12  ;;  %v1681_v12 = vmov %v2169_v12  ;;  %vm1675_vm6 = vcmp.eq.s32.totalorder %v1674_v38, %v1655_v12  ;;  %v1730_v9 = vmov %v2166_v9 }
  0x2c   : > { %265 = vst [vmem:[%s263_s20] sm:$0xff] %v264_v13  ;;  %1827 = vst [vmem:[%s263_s20 + $0x8] sm:$0xff] %v1826_v14  ;;  %s1708_s30 = smov [#allocation12]  ;;  %s1731_s11 = smov [#allocation13]  ;;  %v1684_v9 = vmov %v2166_v9  ;;  %v1704_v12 = vmov %v2169_v12  ;;  %v1748_v60 = vadd.s32 8, %v1730_v9 }
  0x2d   : > { %272 = vst [vmem:[%s270_s25] sm:$0xff] %v271_v15  ;;  %1829 = vst [vmem:[%s270_s25 + $0x8] sm:$0xff] %v1828_v16  ;;  %v1727_v12 = vmov %v2169_v12  ;;  %v1707_v9 = vmov %v2166_v9 }
  0x2e   : > { %279 = vst [vmem:[%s277_s26] sm:$0xff] %v278_v17  ;;  %1831 = vst [vmem:[%s277_s26 + $0x8] sm:$0xff] %v1830_v18  ;;  %v303_v22 = vld [vmem:[%s296_s15] sm:$0xff]  ;;  %v1836_v23 = vld [vmem:[%s296_s15 + $0x8] sm:$0xff]  ;;  %vm1740_vm7 = vcmp.eq.s32.totalorder %v1730_v9, %v1727_v12  ;;  %vm1749_vm8 = vcmp.eq.s32.totalorder %v1748_v60, %v1727_v12 }
  0x2f   : > { %v307_v24 = vsel %vm306_vm0, 1.0, %v303_v22  ;;  %v314_v25 = vsel %vm313_vm1, 1.0, %v1836_v23 }
  0x30   : > { %308 = vst [vmem:[%s296_s15] sm:$0xff] %v307_v24  ;;  %1837 = vst [vmem:[%s296_s15 + $0x8] sm:$0xff] %v314_v25 }
  0x31   : > { %v323_v26 = vld [vmem:[%s316_s24] sm:$0xff]  ;;  %v1838_v27 = vld [vmem:[%s316_s24 + $0x8] sm:$0xff] }
  0x32   : > { %v327_v28 = vsel %vm326_vm2, 1.0, %v323_v26  ;;  %v334_v29 = vsel %vm333_vm3, 1.0, %v1838_v27  ;;  %v1665_v30 = vld [vmem:[%s1659_s21] sm:$0xff]  ;;  %v1840_v31 = vld [vmem:[%s1659_s21 + $0x8] sm:$0xff] }
  0x33   : > { %328 = vst [vmem:[%s316_s24] sm:$0xff] %v327_v28  ;;  %1839 = vst [vmem:[%s316_s24 + $0x8] sm:$0xff] %v334_v29  ;;  %v1691_v32 = vld [vmem:[%s1685_s29] sm:$0xff]  ;;  %v1666_v33 = vsel %vm1663_vm4, %v1665_v30, 0.0  ;;  %v1672_v34 = vsel %vm1663_vm4, %v1840_v31, 0.0  ;;  %v1841_v36 = vld [vmem:[%s1685_s29 + $0x8] sm:$0xff] }
  0x34   : > { %v1692_v35 = vsel %vm1663_vm4, %v1691_v32, 0.0  ;;  %v1714_v37 = vld [vmem:[%s1708_s30] sm:$0xff]  ;;  %v1667_v39 = vmul.f32 %v1666_v33, %v1666_v33  ;;  %v1673_v40 = vmul.f32 %v1672_v34, %v1672_v34  ;;  %v1698_v42 = vsel %vm1663_vm4, %v1841_v36, 0.0  ;;  %v1842_v43 = vld [vmem:[%s1708_s30 + $0x8] sm:$0xff] }
  0x35   : > { %v1693_v41 = vmul.f32 %v1692_v35, %v1692_v35  ;;  %v1715_v44 = vsel %vm1663_vm4, %v1714_v37, 0.0  ;;  %v1699_v46 = vmul.f32 %v1698_v42, %v1698_v42  ;;  %v1737_v47 = vld [vmem:[%s1731_s11] sm:$0xff]  ;;  %v1721_v48 = vsel %vm1663_vm4, %v1842_v43, 0.0  ;;  %v1843_v52 = vld [vmem:[%s1731_s11 + $0x8] sm:$0xff] }
  0x36   : > { %v1678_v45 = vadd.f32 %v1673_v40, %v1667_v39  ;;  %v1669_v49 = vsel %vm1668_vm5, 0.0, %v1667_v39  ;;  %v1716_v51 = vmul.f32 %v1715_v44, %v1715_v44  ;;  %v1676_v53 = vsel %vm1675_vm6, 0.0, %v1673_v40 }
  0x37   : > { %v1738_v54 = vsel %vm1663_vm4, %v1737_v47, 0.0  ;;  %v1677_v55 = vadd.f32 %v1676_v53, %v1669_v49  ;;  %v1722_v57 = vmul.f32 %v1721_v48, %v1721_v48  ;;  %v1746_v58 = vsel %vm1663_vm4, %v1843_v52, 0.0 }
  0x38   : > { %v1695_v50 = vadd.f32 %v1693_v41, %v1678_v45  ;;  %v1739_v62 = vmul.f32 %v1738_v54, %v1738_v54  ;;  %v1747_v1 = vmul.f32 %v1746_v58, %v1746_v58 }
  0x39   : > { %v1694_v59 = vadd.f32 %v1693_v41, %v1677_v55 }
  0x3a   : > { %v1701_v56 = vadd.f32 %v1699_v46, %v1695_v50  ;;  %v1741_v4 = vsel %vm1740_vm7, 0.0, %v1739_v62  ;;  %v1750_v7 = vsel %vm1749_vm8, 0.0, %v1747_v1 }
  0x3b   : > { %v1700_v63 = vadd.f32 %v1699_v46, %v1694_v59 }
  0x3c   : > { %v1718_v61 = vadd.f32 %v1716_v51, %v1701_v56 }
  0x3d   : > { %v1717_v2 = vadd.f32 %v1716_v51, %v1700_v63 }
  0x3e   : > { %v1724_v0 = vadd.f32 %v1722_v57, %v1718_v61 }
  0x3f   : > { %v1723_v5 = vadd.f32 %v1722_v57, %v1717_v2 }
  0x40   : > { %v1743_v3 = vadd.f32 %v1739_v62, %v1724_v0 }
  0x41   : > { %v1742_v8 = vadd.f32 %v1741_v4, %v1723_v5 }
  0x42   : > { %v1752_v6 = vadd.f32 %v1747_v1, %v1743_v3 }
  0x43   : > { %v1751_v10 = vadd.f32 %v1750_v7, %v1742_v8 }
  0x44   : > { %1753 = vadd.xlane.f32.xlu0 %v1752_v6 }
  0x48   : > { %1761 = vadd.xlane.f32.xlu0 %v1751_v10 }
  0xd1   : > { %v1754_v11 = vpop.xlane.xlu0 %1753 }
  0xd2   : > { %v1755_v13 = vrot.slane %v1754_v11, 4 }
  0xd4   : > { %v1756_v14 = vadd.f32 %v1755_v13, %v1754_v11 }
  0xd5   : > { %v1762_v15 = vpop.xlane.xlu0 %1761 }
  0xd6   : > { %v1757_v16 = vrot.slane %v1756_v14, 2  ;;  %v1763_v17 = vrot.slane %v1762_v15, 4 }
  0xd8   : > { %v1764_v18 = vadd.f32 %v1763_v17, %v1762_v15  ;;  %v1758_v19 = vadd.f32 %v1757_v16, %v1756_v14 }
  0xda   : > { %v1765_v20 = vrot.slane %v1764_v18, 2  ;;  %v1759_v22 = vrot.slane %v1758_v19, 1 }
  0xdc   : > { %v1766_v21 = vadd.f32 %v1765_v20, %v1764_v18  ;;  %v1760_v25 = vadd.f32 %v1759_v22, %v1758_v19 }
  0xde   : > { %v1767_v23 = vrot.slane %v1766_v21, 1 }
  0xe0   : > { %v1768_v24 = vadd.f32 %v1767_v23, %v1766_v21 }
  0xe2   : > { %1957 = vpush %v1768_v24 }
  0xe3   : > { %1959 = vpush %v1760_v25 }
 0x113   : > { %s1958_s14 = spop %1957 }
 0x114   : > { %s1960_s17 = spop %1959 }
 0x115   : > { %s1771_s20 = smul.f32 1e-10, %s1960_s17 }
 0x117   : > { %p1772_p8 = scmp.le.f32.partialorder %s1958_s14, %s1771_s20 }
 0x118   : > { %s2228_s25 = smov (!%p1772_p8), 0  }
 0x119   : > { %1775 = sbr.rel (%p1772_p8) target bundleno = 1008 (0x3f0), region = 456 }
 0x120 LB: >> { %s2233_s26 = smov 0   ;;  %s2050_s25 = sphi %s2228_s25, %s2652_s25  }
 0x121 LB: >>> { %s472_s21 = smov [#allocation10]  ;;  %v476_v12 = vmov %v2169_v12  ;;  %v479_v9 = vmov %v2166_v9  ;;  %s498_s29 = smov [#allocation11]  ;;  %vm1005_vm8 = vcmp.eq.s32.totalorder %v2166_v9, 0  ;;  %s2054_s26 = sphi %s2233_s26, %s471_s26  }
 0x122   : >>> { %v502_v12 = vmov %v2169_v12  ;;  %v505_v9 = vmov %v2166_v9  ;;  %v480_v26 = vld [vmem:[%s472_s21] sm:$0xff]  ;;  %vm483_vm9 = vcmp.eq.s32.totalorder %v479_v9, %v476_v12  ;;  %v1844_v27 = vld [vmem:[%s472_s21 + $0x8] sm:$0xff]  ;;  %v488_v28 = vadd.s32 8, %v479_v9  ;;  %s524_s30 = smov [#allocation13]  ;;  %s473_s11 = smov [#allocation14] }
 0x123   : >>> { %vm509_vm10 = vcmp.eq.s32.totalorder %v505_v9, %v502_v12  ;;  %v514_v29 = vadd.s32 8, %v505_v9  ;;  %v484_v30 = vsel %vm483_vm9, %v480_v26, 0.0  ;;  %v506_v31 = vld [vmem:[%s498_s29] sm:$0xff]  ;;  %v1845_v32 = vld [vmem:[%s498_s29 + $0x8] sm:$0xff]  ;;  %v528_v12 = vmov %v2169_v12  ;;  %s499_s14 = smov [#allocation15]  ;;  %s525_s17 = smov [#allocation16] }
 0x124   : >>> { %v531_v9 = vmov %v2166_v9  ;;  %vm489_vm11 = vcmp.eq.s32.totalorder %v488_v28, %v476_v12  ;;  %v510_v33 = vsel %vm509_vm10, %v506_v31, 0.0  ;;  %v532_v34 = vld [vmem:[%s524_s30] sm:$0xff]  ;;  %v1846_v38 = vld [vmem:[%s524_s30 + $0x8] sm:$0xff]  ;;  %s554_s20 = smov [#allocation15]  ;;  %s552_s21 = smov [#allocation14]  ;;  %vm1029_vm9 = vcmp.eq.s32.totalorder %v2166_v9, 7 }
 0x125   : >>> { %vm515_vm12 = vcmp.eq.s32.totalorder %v514_v29, %v502_v12  ;;  %vm535_vm13 = vcmp.eq.s32.totalorder %v531_v9, %v528_v12  ;;  %v490_v35 = vsel %vm489_vm11, %v1844_v27, %v484_v30  ;;  %v540_v39 = vadd.s32 8, %v531_v9  ;;  %s556_s29 = smov [#allocation16]  ;;  %s591_s30 = smov [#allocation17] }
 0x126   : >>> { %v516_v36 = vsel %vm515_vm12, %v1845_v32, %v510_v33  ;;  %v536_v37 = vsel %vm535_vm13, %v532_v34, 0.0  ;;  %v491_v40 = vrot.slane %v490_v35, 4  ;;  %v621_v9 = vmov %v2166_v9  ;;  %s2256_s28 = smov [#allocation12]  ;;  %s2258_s27 = smov [#allocation13] }
 0x127   : >>> { %v517_v41 = vrot.slane %v516_v36, 4  ;;  %vm541_vm14 = vcmp.eq.s32.totalorder %v540_v39, %v528_v12  ;;  %v652_v9 = vmov %v2166_v9  ;;  %v622_v28 = vadd.s32 8, %v621_v9  ;;  %s2261_s15 = smov %s2177_s15  ;;  %s2264_s16 = smov %s2182_s16 }
 0x128   : >>> { %v492_v42 = vadd.f32 %v491_v40, %v490_v35  ;;  %v542_v44 = vsel %vm541_vm14, %v1846_v38, %v536_v37  ;;  %v603_v12 = vmov %v2169_v12  ;;  %v606_v9 = vmov %v2166_v9  ;;  %s2268_s23 = smov %s2187_s23  ;;  %s2271_s24 = smov %s2192_s24 }
 0x129   : >>> { %v518_v43 = vadd.f32 %v517_v41, %v516_v36  ;;  %v543_v45 = vrot.slane %v542_v44, 4  ;;  %v618_v12 = vmov %v2169_v12  ;;  %v653_v29 = vadd.s32 8, %v652_v9  ;;  %s2457_s0 = smov [#allocation13]  ;;  %s471_s26 = sadd.s32 1, %s2054_s26  }
 0x12a   : >>> { %v493_v46 = vrot.slane %v492_v42, 2  ;;  %v634_v12 = vmov %v2169_v12  ;;  %v637_v9 = vmov %v2166_v9  ;;  %vm608_vm3 = vcmp.eq.s32.totalorder %v606_v9, %v603_v12  ;;  %p468_p9 = scmp.ge.s32.totalorder %s471_s26, 31  }
 0x12b   : >>> { %v519_v47 = vrot.slane %v518_v43, 2  ;;  %v544_v48 = vadd.f32 %v543_v45, %v542_v44  ;;  %v649_v12 = vmov %v2169_v12  ;;  %vm623_vm5 = vcmp.eq.s32.totalorder %v622_v28, %v618_v12  ;;  %v671_v44 = vld [vmem:[%s2256_s28] sm:$0xff]  ;;  %s419_s26 = smov (%p468_p9), [#allocation13] }
 0x12c   : >>> { %v494_v49 = vadd.f32 %v493_v46, %v492_v42  ;;  %vm639_vm6 = vcmp.eq.s32.totalorder %v637_v9, %v634_v12  ;;  %vm654_vm7 = vcmp.eq.s32.totalorder %v653_v29, %v649_v12  ;;  %v672_v45 = vld [vmem:[%s2258_s27] sm:$0xff]  ;;  %v808_v9 = vmov %v2166_v9 }
 0x12d   : >>> { %v520_v50 = vadd.f32 %v519_v47, %v518_v43  ;;  %v545_v51 = vrot.slane %v544_v48, 2  ;;  %v1093_v46 = vld [vmem:[%s2261_s15] sm:$0xff]  ;;  %v786_v9 = vmov %v2166_v9  ;;  %v805_v12 = vmov %v2169_v12 }
 0x12e   : >>> { %v495_v52 = vrot.slane %v494_v49, 1  ;;  %v1094_v47 = vld [vmem:[%s2264_s16] sm:$0xff]  ;;  %v828_v9 = vmov %v2166_v9  ;;  %v783_v12 = vmov %v2169_v12  ;;  %vm812_vm10 = vcmp.eq.s32.totalorder %v808_v9, %v805_v12 }
 0x12f   : >>> { %v521_v53 = vrot.slane %v520_v50, 1  ;;  %v546_v54 = vadd.f32 %v545_v51, %v544_v48  ;;  %v849_v9 = vmov %v2166_v9  ;;  %v825_v12 = vmov %v2169_v12 }
 0x130   : >>> { %v496_v55 = vadd.f32 %v495_v52, %v494_v49  ;;  %v1095_v49 = vld [vmem:[%s2268_s23] sm:$0xff]  ;;  %v846_v12 = vmov %v2169_v12  ;;  %vm791_vm12 = vcmp.eq.s32.totalorder %v786_v9, %v783_v12  ;;  %vm832_vm14 = vcmp.eq.s32.totalorder %v828_v9, %v825_v12 }
 0x131   : >>> { %v522_v56 = vadd.f32 %v521_v53, %v520_v50  ;;  %v547_v57 = vrot.slane %v546_v54, 1  ;;  %v1096_v50 = vld [vmem:[%s2271_s24] sm:$0xff] }
 0x132   : >>> { %497 = vst [vmem:[%s473_s11] sm:$0x1] %v496_v55  ;;  %s593_s11 = smov [#allocation18] }
 0x133   : >>> { %523 = vst [vmem:[%s499_s14] sm:$0x1] %v522_v56  ;;  %v548_v58 = vadd.f32 %v547_v57, %v546_v54  ;;  %s550_s14 = smov [#allocation19] }
 0x134   : >>> { %s595_s14 = smov %s550_s14 }
 0x135   : >>> { %549 = vst [vmem:[%s525_s17] sm:$0x1] %v548_v58  ;;  %s551_s17 = smov [#allocation20] }
 0x136   : >>> { %s597_s17 = smov %s551_s17 }
 0x139   : >>> { %v553_v61 = vld [vmem:[%s552_s21] sm:$0xff]  ;;  %s614_s21 = smov [#allocation19] }
 0x13a   : >>> { %v555_v59 = vld [vmem:[%s554_s20] sm:$0xff]  ;;  %v576_v11 = vand.u32 2147483647, %v553_v61  ;;  %s599_s20 = smov [#allocation19] }
 0x13b   : >>> { %v559_v60 = vmul.f32 2.0, %v555_v59  ;;  %v577_v17 = vand.u32 2147483647, %v555_v59 }
 0x13c   : >>> { %v557_v62 = vld [vmem:[%s556_s29] sm:$0xff]  ;;  %s630_s29 = smov [#allocation20] }
 0x13d   : >>> { %2008 = vrcp.f32 %v559_v60  ;;  %v558_v63 = vsub.f32 %v557_v62, %v553_v61  ;;  %v578_v13 = vand.u32 2147483647, %v557_v62 }
 0x13f   : >>> { %v579_v16 = vmin.f32 %v576_v11, %v578_v13 }
 0x141   : >>> { %v580_v18 = vmul.f32 1.1920929e-08, %v579_v16 }
 0x143   : >>> { %vm581_vm2 = vcmp.le.f32.partialorder %v577_v17, %v580_v18 }
 0x147   : >>> { %v2009_v0 = vpop.eup %2008 }
 0x148   : >>> { %v561_v1 = vmul.f32 %v2009_v0, %v558_v63 }
 0x14a   : >>> { %v563_v2 = vmul.f32 %v561_v1, %v561_v1  ;;  %vm562_vm1 = vcmp.ge.f32.partialorder %v561_v1, 0.0 }
 0x14c   : >>> { %v564_v3 = vadd.f32 1.0, %v563_v2 }
 0x14e   : >>> { %2010 = vrsqrt.f32 %v564_v3  ;;  %vm567_vm15 = vcmp.eq.f32.partialorder %v564_v3, inf  ;;  %v570_v5 = vand.u32 2147483648, %v564_v3  ;;  %vm569_vm0 = vcmp.eq.f32.partialorder %v564_v3, 0.0 }
 0x158   : >>> { %v2011_v4 = vpop.eup %2010 }
 0x159   : >>> { %v566_v6 = vmul.f32 %v2011_v4, %v564_v3 }
 0x15b   : >>> { %v568_v7 = vsel %vm567_vm15, %v564_v3, %v566_v6 }
 0x15c   : >>> { %v571_v8 = vsel %vm569_vm0, %v570_v5, %v568_v7  ;;  %vm854_vm0 = vcmp.eq.s32.totalorder %v849_v9, %v846_v12 }
 0x15d   : >>> { %v572_v10 = vxor.u32 2147483648, %v571_v8 }
 0x15f   : >>> { %v573_v14 = vsel %vm562_vm1, %v571_v8, %v572_v10 }
 0x160   : >>> { %v574_v15 = vadd.f32 %v573_v14, %v561_v1 }
 0x162   : >>> { %2012 = vrcp.f32 %v574_v15 }
 0x16c   : >>> { %v2013_v19 = vpop.eup %2012 }
 0x16d   : >>> { %v582_v20 = vsel %vm581_vm2, 0.0, %v2013_v19  ;;  %vm876_vm2 = vcmp.eq.s32.totalorder %v2169_v12, 0 }
 0x16e   : >>> { %v583_v21 = vmul.f32 %v582_v20, %v582_v20  ;;  %v587_v22 = vmul.f32 %v582_v20, %v555_v59 }
 0x170   : >>> { %v584_v23 = vadd.f32 1.0, %v583_v21  ;;  %v588_v24 = vsub.f32 %v553_v61, %v587_v22  ;;  %v590_v25 = vadd.f32 %v587_v22, %v557_v62 }
 0x172   : >>> { %2014 = vrsqrt.f32 %v584_v23  ;;  %592 = vst [vmem:[%s591_s30] sm:$0xff] %v588_v24  ;;  %594 = vst [vmem:[%s593_s11] sm:$0xff] %v590_v25  ;;  %s645_s30 = smov [#allocation20]  ;;  %s612_s11 = smov [#allocation21] }
 0x17c   : >>> { %v2015_v26 = vpop.eup %2014 }
 0x17d   : >>> { %596 = vst [vmem:[%s595_s14] sm:$0xff] %v2015_v26  ;;  %v586_v27 = vmul.f32 %v2015_v26, %v582_v20  ;;  %s627_s14 = smov [#allocation21] }
 0x17f   : >>> { %598 = vst [vmem:[%s597_s17] sm:$0xff] %v586_v27  ;;  %s661_s17 = smov [#allocation21] }
 0x184   : >>> { %v600_v30 = vld [vmem:[%s599_s20] ss:$0 sm:$0xff]  ;;  %s643_s20 = smov [#allocation22] }
 0x185   : >>> { %v615_v31 = vld [vmem:[%s614_s21] ss:$0 sm:$0xff]  ;;  %v609_v32 = vsel %vm608_vm3, %v600_v30, 0.0  ;;  %s2252_s21 = smov [#allocation10]  ;;  %vm880_vm3 = vcmp.eq.s32.totalorder %v2169_v12, 1 }
 0x186   : >>> { %v624_v33 = vsel %vm623_vm5, %v615_v31, 0.0  ;;  %610 = vadd.xlane.f32.xlu0 %v609_v32  ;;  %v631_v34 = vld [vmem:[%s630_s29] ss:$0 sm:$0xff]  ;;  %s658_s29 = smov [#allocation22]  ;;  %vm893_vm5 = vcmp.eq.s32.totalorder %v2169_v12, 15 }
 0x187   : >>> { %625 = vadd.xlane.f32.xlu1 %v624_v33  ;;  %v646_v35 = vld [vmem:[%s645_s30] ss:$0 sm:$0xff]  ;;  %v640_v36 = vsel %vm639_vm6, %v631_v34, 0.0  ;;  %s2254_s30 = smov [#allocation11] }
 0x188   : >>> { %v655_v37 = vsel %vm654_vm7, %v646_v35, 0.0  ;;  %v669_v42 = vld [vmem:[%s2252_s21] sm:$0xff] }
 0x189   : >>> { %v670_v43 = vld [vmem:[%s2254_s30] sm:$0xff] }
 0x18a   : >>> { %641 = vadd.xlane.f32.xlu0 %v640_v36 }
 0x18b   : >>> { %656 = vadd.xlane.f32.xlu1 %v655_v37 }
 0x213   : >>> { %v611_v38 = vpop.xlane.xlu0 %610 }
 0x214   : >>> { %v626_v39 = vpop.xlane.xlu1 %625  ;;  %613 = vst [vmem:[%s612_s11] sm:$0xff] %v611_v38  ;;  %s1085_s11 = smov [#allocation21] }
 0x215   : >>> { %1847 = vst [vmem:[%s627_s14 + $0x8] sm:$0xff] %v626_v39  ;;  %s663_s14 = smov [#allocation22] }
 0x217   : >>> { %v642_v40 = vpop.xlane.xlu0 %641 }
 0x218   : >>> { %v657_v41 = vpop.xlane.xlu1 %656  ;;  %644 = vst [vmem:[%s643_s20] sm:$0xff] %v642_v40  ;;  %s1087_s20 = smov [#allocation22] }
 0x219   : >>> { %1848 = vst [vmem:[%s658_s29 + $0x8] sm:$0xff] %v657_v41  ;;  %s1113_s29 = smov [#allocation21] }
 0x21c   : >>> { %v662_v48 = vld [vmem:[%s661_s17] sm:$0xff]  ;;  %s689_s17 = smov [#allocation21]  ;;  %v1907_v17 = vld [vmem:[%s1113_s29 + $0x8] sm:$0xff]  ;;  %s2330_s29 = smov [#allocation10] }
 0x21d   : >>> { %v1086_v51 = vld [vmem:[%s1085_s11] sm:$0xff]  ;;  %v673_v52 = vmul.f32 %v669_v42, %v662_v48  ;;  %v676_v53 = vmul.f32 %v670_v43, %v662_v48  ;;  %v680_v54 = vmul.f32 %v671_v44, %v662_v48  ;;  %v683_v55 = vmul.f32 %v672_v45, %v662_v48  ;;  %s692_s11 = smov [#allocation22]  ;;  %v1849_v16 = vld [vmem:[%s689_s17 + $0x8] sm:$0xff]  ;;  %s725_s17 = smov [#allocation20] }
 0x21e   : >>> { %v1097_v56 = vmul.f32 %v1093_v46, %v1086_v51  ;;  %v1100_v57 = vmul.f32 %v1094_v47, %v1086_v51  ;;  %v1104_v58 = vmul.f32 %v1095_v49, %v1086_v51  ;;  %v1107_v59 = vmul.f32 %v1096_v50, %v1086_v51 }
 0x220   : >>> { %v664_v60 = vld [vmem:[%s663_s14] sm:$0xff]  ;;  %s2288_s14 = smov [#allocation10]  ;;  %v1850_v18 = vld [vmem:[%s692_s11 + $0x8] sm:$0xff]  ;;  %s2336_s11 = smov [#allocation11] }
 0x221   : >>> { %v1088_v61 = vld [vmem:[%s1087_s20] sm:$0xff]  ;;  %v674_v62 = vmul.f32 %v671_v44, %v664_v60  ;;  %v677_v63 = vmul.f32 %v672_v45, %v664_v60  ;;  %v679_v0 = vmul.f32 %v669_v42, %v664_v60  ;;  %v682_v1 = vmul.f32 %v670_v43, %v664_v60  ;;  %s2290_s20 = smov [#allocation12] }
 0x222   : >>> { %v1098_v2 = vmul.f32 %v1095_v49, %v1088_v61  ;;  %v1101_v3 = vmul.f32 %v1096_v50, %v1088_v61  ;;  %v1103_v4 = vmul.f32 %v1093_v46, %v1088_v61  ;;  %v1106_v5 = vmul.f32 %v1094_v47, %v1088_v61 }
 0x223   : >>> { %v675_v6 = vsub.f32 %v673_v52, %v674_v62  ;;  %v678_v7 = vsub.f32 %v676_v53, %v677_v63  ;;  %v681_v8 = vadd.f32 %v680_v54, %v679_v0  ;;  %v684_v10 = vadd.f32 %v683_v55, %v682_v1 }
 0x224   : >>> { %v1099_v11 = vsub.f32 %v1097_v56, %v1098_v2  ;;  %v1102_v13 = vsub.f32 %v1100_v57, %v1101_v3  ;;  %v1105_v14 = vadd.f32 %v1104_v58, %v1103_v4  ;;  %v1108_v15 = vadd.f32 %v1107_v59, %v1106_v5  ;;  %v2348_v56 = vld [vmem:[%s725_s17] ss:$0 sm:$0xff]  ;;  %s780_s17 = smov [#allocation17] }
 0x225   : >>> { %685 = vst [vmem:[%s2252_s21] sm:$0xff] %v675_v6  ;;  %687 = vst [vmem:[%s2256_s28] sm:$0xff] %v681_v8  ;;  %s1116_s21 = smov [#allocation22]  ;;  %s2292_s28 = smov [#allocation13] }
 0x226   : >>> { %688 = vst [vmem:[%s2258_s27] sm:$0xff] %v684_v10  ;;  %686 = vst [vmem:[%s2254_s30] sm:$0xff] %v678_v7  ;;  %v1908_v19 = vld [vmem:[%s1116_s21 + $0x8] sm:$0xff]  ;;  %s2306_s27 = smov [#allocation11]  ;;  %s723_s30 = smov [#allocation19] }
 0x227   : >>> { %1109 = vst [vmem:[%s2261_s15] sm:$0xff] %v1099_v11  ;;  %1110 = vst [vmem:[%s2264_s16] sm:$0xff] %v1102_v13  ;;  %s2295_s15 = smov %s2177_s15  ;;  %s2298_s16 = smov %s2182_s16  ;;  %v2346_v55 = vld [vmem:[%s723_s30] ss:$0 sm:$0xff] }
 0x228   : >>> { %1111 = vst [vmem:[%s2268_s23] sm:$0xff] %v1105_v14  ;;  %1112 = vst [vmem:[%s2271_s24] sm:$0xff] %v1108_v15  ;;  %s2301_s23 = smov %s2187_s23  ;;  %s2304_s24 = smov %s2192_s24 }
 0x229   : >>> { %s751_s21 = smov [#allocation10]  ;;  %s757_s30 = smov [#allocation13] }
 0x22c   : >>> { %v1851_v20 = vld [vmem:[%s2288_s14 + $0x8] sm:$0xff] }
 0x22d   : >>> { %v1853_v21 = vld [vmem:[%s2290_s20 + $0x8] sm:$0xff]  ;;  %v707_v23 = vmul.f32 %v1851_v20, %v1849_v16  ;;  %v713_v26 = vmul.f32 %v1851_v20, %v1850_v18 }
 0x22e   : >>> { %v1854_v22 = vld [vmem:[%s2292_s28 + $0x8] sm:$0xff]  ;;  %v708_v24 = vmul.f32 %v1853_v21, %v1850_v18  ;;  %v714_v30 = vmul.f32 %v1853_v21, %v1849_v16 }
 0x22f   : >>> { %v711_v25 = vmul.f32 %v1854_v22, %v1850_v18  ;;  %v1909_v27 = vld [vmem:[%s2295_s15 + $0x8] sm:$0xff]  ;;  %v717_v31 = vmul.f32 %v1854_v22, %v1849_v16 }
 0x230   : >>> { %v1910_v28 = vld [vmem:[%s2298_s16 + $0x8] sm:$0xff]  ;;  %v1131_v33 = vmul.f32 %v1909_v27, %v1907_v17  ;;  %v709_v36 = vsub.f32 %v707_v23, %v708_v24  ;;  %v1137_v39 = vmul.f32 %v1909_v27, %v1908_v19  ;;  %v715_v40 = vadd.f32 %v714_v30, %v713_v26 }
 0x231   : >>> { %v1911_v29 = vld [vmem:[%s2301_s23 + $0x8] sm:$0xff]  ;;  %v1134_v37 = vmul.f32 %v1910_v28, %v1907_v17  ;;  %v1140_v43 = vmul.f32 %v1910_v28, %v1908_v19 }
 0x232   : >>> { %v1912_v32 = vld [vmem:[%s2304_s24 + $0x8] sm:$0xff]  ;;  %v1132_v34 = vmul.f32 %v1911_v29, %v1908_v19  ;;  %v1138_v42 = vmul.f32 %v1911_v29, %v1907_v17  ;;  %1855 = vst [vmem:[%s2288_s14 + $0x8] sm:$0xff] %v709_v36  ;;  %1857 = vst [vmem:[%s2290_s20 + $0x8] sm:$0xff] %v715_v40  ;;  %s2339_s14 = smov [#allocation12]  ;;  %s2341_s20 = smov [#allocation13] }
 0x233   : >>> { %v1852_v35 = vld [vmem:[%s2306_s27 + $0x8] sm:$0xff]  ;;  %v1135_v38 = vmul.f32 %v1912_v32, %v1908_v19  ;;  %v1141_v45 = vmul.f32 %v1912_v32, %v1907_v17 }
 0x234   : >>> { %v1133_v41 = vsub.f32 %v1131_v33, %v1132_v34  ;;  %v710_v46 = vmul.f32 %v1852_v35, %v1849_v16  ;;  %v716_v47 = vmul.f32 %v1852_v35, %v1850_v18  ;;  %v1139_v48 = vadd.f32 %v1138_v42, %v1137_v39 }
 0x235   : >>> { %v1136_v44 = vsub.f32 %v1134_v37, %v1135_v38  ;;  %v1142_v49 = vadd.f32 %v1141_v45, %v1140_v43 }
 0x236   : >>> { %1913 = vst [vmem:[%s2295_s15 + $0x8] sm:$0xff] %v1133_v41  ;;  %v712_v50 = vsub.f32 %v710_v46, %v711_v25  ;;  %v718_v51 = vadd.f32 %v717_v31, %v716_v47  ;;  %s2321_s15 = smov %s2177_s15  ;;  %1915 = vst [vmem:[%s2301_s23 + $0x8] sm:$0xff] %v1139_v48  ;;  %s2325_s23 = smov %s2187_s23 }
 0x237   : >>> { %1914 = vst [vmem:[%s2298_s16 + $0x8] sm:$0xff] %v1136_v44  ;;  %1916 = vst [vmem:[%s2304_s24 + $0x8] sm:$0xff] %v1142_v49  ;;  %s2334_s16 = smov %s2182_s16  ;;  %s2352_s24 = smov %s2192_s24 }
 0x238   : >>> { %1856 = vst [vmem:[%s2306_s27 + $0x8] sm:$0xff] %v712_v50  ;;  %1858 = vst [vmem:[%s2292_s28 + $0x8] sm:$0xff] %v718_v51  ;;  %s753_s28 = smov [#allocation11]  ;;  %s755_s27 = smov [#allocation12]  ;;  %v818_v50 = vadd.s32 8, %v808_v9  ;;  %v798_v51 = vadd.s32 8, %v786_v9 }
 0x239   : >>> { %v731_v57 = vld [vmem:[%s2330_s29] sm:$0xff] }
 0x23a   : >>> { %v735_v17 = vmul.f32 %v731_v57, %v2346_v55  ;;  %v738_v18 = vmul.f32 %v731_v57, %v2348_v56  ;;  %v733_v22 = vld [vmem:[%s2339_s14] sm:$0xff]  ;;  %vm819_vm11 = vcmp.eq.s32.totalorder %v818_v50, %v805_v12  ;;  %vm799_vm13 = vcmp.eq.s32.totalorder %v798_v51, %v783_v12 }
 0x23b   : >>> { %v741_v26 = vmul.f32 %v733_v22, %v2346_v55  ;;  %v744_v28 = vmul.f32 %v733_v22, %v2348_v56 }
 0x23d   : >>> { %v1149_v52 = vld [vmem:[%s2321_s15] ss:$0 sm:$0xff]  ;;  %v1918_v54 = vld [vmem:[%s2321_s15 + $0x7] ss:$0 sm:$0xff]  ;;  %v1919_v59 = vld [vmem:[%s2321_s15 + $0x7] sm:$0xfe] }
 0x23e   : >>> { %v1917_v53 = vld [vmem:[%s2321_s15 - $0x1] sm:$0xfe]  ;;  %v1920_v60 = vld [vmem:[%s2321_s15 + $0xf] ss:$0 sm:$0xff]  ;;  %v1167_v62 = vsel %vm1005_vm8, %v1918_v54, %v1919_v59  ;;  %v1924_v1 = vld [vmem:[%s2325_s23 + $0x8] ss:$0 sm:$0xff] }
 0x23f   : >>> { %v1156_v58 = vsel %vm1005_vm8, %v1149_v52, %v1917_v53  ;;  %v1193_v61 = vld [vmem:[%s2334_s16] ss:$0 sm:$0xff]  ;;  %v1923_v0 = vld [vmem:[%s2325_s23 + $0x9] sm:$0x7f]  ;;  %1921 = vst [vmem:[%s2321_s15 + $0x8] sm:$0xff] %v1167_v62  ;;  %v838_v52 = vadd.s32 8, %v828_v9 }
 0x240   : >>> { %1159 = vst [vmem:[%s2321_s15] sm:$0xff] %v1156_v58  ;;  %v1171_v63 = vld [vmem:[%s2325_s23] ss:$0 sm:$0xff]  ;;  %v1180_v2 = vsel %vm1029_vm9, %v1920_v60, %v1923_v0  ;;  %v1926_v3 = vld [vmem:[%s2325_s23 + $0x1] sm:$0x7f]  ;;  %v1929_v8 = vld [vmem:[%s2334_s16 + $0x7] sm:$0xfe] }
 0x241   : >>> { %1922 = vst [vmem:[%s2321_s15 + $0x1] sm:$0x1] %v1171_v63  ;;  %v1927_v4 = vld [vmem:[%s2334_s16 - $0x1] sm:$0xfe]  ;;  %v1928_v5 = vld [vmem:[%s2334_s16 + $0x7] ss:$0 sm:$0xff]  ;;  %v1188_v6 = vsel %vm1029_vm9, %v1924_v1, %v1926_v3  ;;  %vm839_vm15 = vcmp.eq.s32.totalorder %v838_v52, %v825_v12 }
 0x242   : >>> { %1925 = vst [vmem:[%s2325_s23 + $0x8] sm:$0xff] %v1180_v2  ;;  %v1200_v7 = vsel %vm1005_vm8, %v1193_v61, %v1927_v4  ;;  %v1930_v10 = vld [vmem:[%s2334_s16 + $0xf] ss:$0 sm:$0xff]  ;;  %v1215_v11 = vld [vmem:[%s2352_s24] ss:$0 sm:$0xff]  ;;  %1190 = vst [vmem:[%s2325_s23] sm:$0xff] %v1188_v6  ;;  %v1211_v13 = vsel %vm1005_vm8, %v1928_v5, %v1929_v8  ;;  %v861_v53 = vadd.s32 8, %v849_v9  ;;  %v343_v9 = vmov (%p468_p9), %v2166_v9 }
 0x243   : >>> { %1203 = vst [vmem:[%s2334_s16] sm:$0xff] %v1200_v7  ;;  %v1933_v14 = vld [vmem:[%s2352_s24 + $0x9] sm:$0x7f]  ;;  %v1934_v15 = vld [vmem:[%s2352_s24 + $0x8] ss:$0 sm:$0xff]  ;;  %v1936_v16 = vld [vmem:[%s2352_s24 + $0x1] sm:$0x7f] }
 0x244   : >>> { %1931 = vst [vmem:[%s2334_s16 + $0x8] sm:$0xff] %v1211_v13  ;;  %1932 = vst [vmem:[%s2334_s16 + $0x1] sm:$0x1] %v1215_v11  ;;  %v1224_v19 = vsel %vm1029_vm9, %v1930_v10, %v1933_v14  ;;  %v1232_v20 = vsel %vm1029_vm9, %v1934_v15, %v1936_v16  ;;  %v732_v21 = vld [vmem:[%s2336_s11] sm:$0xff]  ;;  %vm862_vm1 = vcmp.eq.s32.totalorder %v861_v53, %v846_v12  ;;  %v340_v12 = vmov (%p468_p9), %v2169_v12 }
 0x245   : >>> { %v734_v23 = vld [vmem:[%s2341_s20] sm:$0xff]  ;;  %1935 = vst [vmem:[%s2352_s24 + $0x8] sm:$0xff] %v1224_v19  ;;  %1234 = vst [vmem:[%s2352_s24] sm:$0xff] %v1232_v20  ;;  %v736_v24 = vmul.f32 %v732_v21, %v2348_v56  ;;  %v739_v25 = vmul.f32 %v732_v21, %v2346_v55  ;;  %vm355_vm6 = vcmp.eq.s32.totalorder (%p468_p9), %v343_v9, %v340_v12  ;;  %v369_v12 = vmov (%p468_p9), %v2169_v12 }
 0x246   : >>> { %v742_v27 = vmul.f32 %v734_v23, %v2348_v56  ;;  %v745_v29 = vmul.f32 %v734_v23, %v2346_v55  ;;  %v787_v54 = vld [vmem:[%s780_s17] ss:$0 sm:$0xff]  ;;  %s2443_s17 = smov [#allocation10] }
 0x247   : >>> { %v737_v30 = vsub.f32 %v735_v17, %v736_v24  ;;  %v740_v31 = vadd.f32 %v739_v25, %v738_v18 }
 0x248   : >>> { %v743_v32 = vsub.f32 %v741_v26, %v742_v27  ;;  %v746_v33 = vadd.f32 %v745_v29, %v744_v28 }
 0x249   : >>> { %747 = vst [vmem:[%s2330_s29] sm:$0xff] %v737_v30  ;;  %748 = vst [vmem:[%s2336_s11] sm:$0xff] %v740_v31  ;;  %s843_s29 = smov [#allocation18]  ;;  %s802_s11 = smov [#allocation11] }
 0x24a   : >>> { %749 = vst [vmem:[%s2339_s14] sm:$0xff] %v743_v32  ;;  %750 = vst [vmem:[%s2341_s20] sm:$0xff] %v746_v33  ;;  %s2425_s14 = smov [#allocation10]  ;;  %s822_s20 = smov [#allocation12] }
 0x250   : >>> { %v1859_v34 = vld [vmem:[%s751_s21 + $0x8] sm:$0xff] }
 0x251   : >>> { %v1860_v35 = vld [vmem:[%s753_s28 + $0x8] sm:$0xff]  ;;  %v766_v38 = vmul.f32 %v1859_v34, %v2348_v56  ;;  %v763_v40 = vmul.f32 %v1859_v34, %v2346_v55 }
 0x252   : >>> { %v1861_v36 = vld [vmem:[%s755_s27 + $0x8] sm:$0xff]  ;;  %v764_v37 = vmul.f32 %v1860_v35, %v2348_v56  ;;  %v767_v39 = vmul.f32 %v1860_v35, %v2346_v55 }
 0x253   : >>> { %v1862_v41 = vld [vmem:[%s757_s30 + $0x8] sm:$0xff]  ;;  %v769_v42 = vmul.f32 %v1861_v36, %v2346_v55  ;;  %v772_v44 = vmul.f32 %v1861_v36, %v2348_v56 }
 0x254   : >>> { %v770_v43 = vmul.f32 %v1862_v41, %v2348_v56  ;;  %v773_v45 = vmul.f32 %v1862_v41, %v2346_v55  ;;  %v768_v46 = vadd.f32 %v767_v39, %v766_v38  ;;  %v765_v47 = vsub.f32 %v763_v40, %v764_v37  ;;  %v850_v55 = vld [vmem:[%s843_s29] ss:$0 sm:$0xff]  ;;  %s2446_s29 = smov [#allocation12] }
 0x256   : >>> { %v771_v48 = vsub.f32 %v769_v42, %v770_v43  ;;  %v774_v49 = vadd.f32 %v773_v45, %v772_v44  ;;  %1864 = vst [vmem:[%s753_s28 + $0x8] sm:$0xff] %v768_v46  ;;  %1863 = vst [vmem:[%s751_s21 + $0x8] sm:$0xff] %v765_v47  ;;  %s842_s21 = smov [#allocation13]  ;;  %s2437_s28 = smov [#allocation11] }
 0x258   : >>> { %1865 = vst [vmem:[%s755_s27 + $0x8] sm:$0xff] %v771_v48  ;;  %1866 = vst [vmem:[%s757_s30 + $0x8] sm:$0xff] %v774_v49  ;;  %s2439_s27 = smov [#allocation10]  ;;  %s2057_s30 = smov 1  }
 0x25d   : >>> { %v809_v56 = vld [vmem:[%s802_s11] sm:$0xff]  ;;  %v1869_v57 = vld [vmem:[%s802_s11 + $0x8] sm:$0xff] }
 0x25e   : >>> { %v788_v58 = vld [vmem:[%s2425_s14] sm:$0xff]  ;;  %v813_v59 = vsel %vm812_vm10, 0.0, %v809_v56  ;;  %v820_v60 = vsel %vm819_vm11, 0.0, %v1869_v57  ;;  %v1867_v62 = vld [vmem:[%s2425_s14 + $0x8] sm:$0xff] }
 0x25f   : >>> { %v792_v61 = vsel %vm791_vm12, %v787_v54, %v788_v58  ;;  %v829_v63 = vld [vmem:[%s822_s20] sm:$0xff]  ;;  %v1871_v0 = vld [vmem:[%s822_s20 + $0x8] sm:$0xff]  ;;  %814 = vst [vmem:[%s802_s11] sm:$0xff] %v813_v59  ;;  %1870 = vst [vmem:[%s802_s11 + $0x8] sm:$0xff] %v820_v60  ;;  %v800_v1 = vsel %vm799_vm13, %v787_v54, %v1867_v62  ;;  %s2058_s11 = smov 127  }
 0x260   : >>> { %793 = vst [vmem:[%s2425_s14] sm:$0xff] %v792_v61  ;;  %v833_v2 = vsel %vm832_vm14, 0.0, %v829_v63  ;;  %v840_v3 = vsel %vm839_vm15, 0.0, %v1871_v0  ;;  %v851_v4 = vld [vmem:[%s842_s21] sm:$0xff]  ;;  %v1873_v5 = vld [vmem:[%s842_s21 + $0x8] sm:$0xff]  ;;  %1868 = vst [vmem:[%s2425_s14 + $0x8] sm:$0xff] %v800_v1  ;;  %s2448_s14 = smov [#allocation13] }
 0x261   : >>> { %834 = vst [vmem:[%s822_s20] sm:$0xff] %v833_v2  ;;  %1872 = vst [vmem:[%s822_s20 + $0x8] sm:$0xff] %v840_v3  ;;  %v855_v6 = vsel %vm854_vm0, %v850_v55, %v851_v4  ;;  %v863_v7 = vsel %vm862_vm1, %v850_v55, %v1873_v5  ;;  %s2452_s20 = smov [#allocation11] }
 0x262   : >>> { %856 = vst [vmem:[%s842_s21] sm:$0xff] %v855_v6  ;;  %1874 = vst [vmem:[%s842_s21 + $0x8] sm:$0xff] %v863_v7  ;;  %s2455_s21 = smov [#allocation12] }
 0x266   : >>> { %v867_v8 = vld [vmem:[%s2437_s28] sm:$0xff]  ;;  %v1875_v15 = vld [vmem:[%s2452_s20 + $0x8] sm:$0xff] }
 0x267   : >>> { %868 = vrot.lane.b32.xlu1 %v867_v8, %s2057_s30  ;;  %v871_v10 = vld [vmem:[%s2439_s27] sm:$0xff]  ;;  %v1877_v11 = vld [vmem:[%s2443_s17 + $0x8] sm:$0xff] }
 0x268   : >>> { %872 = vrot.lane.b32.xlu0 %v871_v10, %s2057_s30  ;;  %v937_v13 = vld [vmem:[%s2446_s29] sm:$0xff]  ;;  %v1883_v16 = vld [vmem:[%s2455_s21 + $0x8] sm:$0xff] }
 0x269   : >>> { %v933_v14 = vld [vmem:[%s2448_s14] sm:$0xff]  ;;  %v1881_v17 = vld [vmem:[%s2457_s0 + $0x8] sm:$0xff] }
 0x26b   : >>> { %904 = vrot.lane.b32.xlu1 %v1877_v11, %s2057_s30 }
 0x26c   : >>> { %889 = vrot.lane.b32.xlu0 %v867_v8, %s2058_s11 }
 0x26f   : >>> { %938 = vrot.lane.b32.xlu1 %v937_v13, %s2057_s30 }
 0x270   : >>> { %934 = vrot.lane.b32.xlu0 %v933_v14, %s2057_s30 }
 0x273   : >>> { %900 = vrot.lane.b32.xlu1 %v1875_v15, %s2057_s30 }
 0x274   : >>> { %921 = vrot.lane.b32.xlu0 %v1875_v15, %s2058_s11 }
 0x277   : >>> { %970 = vrot.lane.b32.xlu1 %v1883_v16, %s2057_s30 }
 0x278   : >>> { %966 = vrot.lane.b32.xlu0 %v1881_v17, %s2057_s30  ;;  %s2504_s30 = smov [#allocation12] }
 0x27b   : >>> { %955 = vrot.lane.b32.xlu1 %v933_v14, %s2058_s11 }
 0x27f   : >>> { %987 = vrot.lane.b32.xlu1 %v1881_v17, %s2058_s11  ;;  %s373_s11 = smov (%p468_p9), [#allocation11] }
 0x2d9   : >>> { %v869_v18 = vpop.permute.xlu1 %868 }
 0x2da   : >>> { %v873_v19 = vpop.permute.xlu0 %872 }
 0x2db   : >>> { %v877_v20 = vsel %vm876_vm2, %v871_v10, %v873_v19 }
 0x2dc   : >>> { %v881_v21 = vsel %vm880_vm3, %v869_v18, %v877_v20 }
 0x2dd   : >>> { %v887_v22 = vsel %vm1663_vm4, %v881_v21, 0.0  ;;  %v905_v23 = vpop.permute.xlu1 %904 }
 0x2de   : >>> { %v890_v24 = vpop.permute.xlu0 %889  ;;  %927 = vst [vmem:[%s2439_s27] sm:$0xff] %v887_v22  ;;  %v909_v31 = vsel %vm876_vm2, %v1877_v11, %v905_v23  ;;  %s2499_s27 = smov [#allocation11] }
 0x2df   : >>> { %v894_v25 = vsel %vm893_vm5, %v871_v10, %v890_v24 }
 0x2e0   : >>> { %928 = vst [vmem:[%s2437_s28] sm:$0xff] %v894_v25  ;;  %s2495_s28 = smov [#allocation10] }
 0x2e1   : >>> { %v939_v26 = vpop.permute.xlu1 %938 }
 0x2e2   : >>> { %v943_v27 = vsel %vm876_vm2, %v937_v13, %v939_v26  ;;  %v935_v28 = vpop.permute.xlu0 %934 }
 0x2e3   : >>> { %v947_v29 = vsel %vm880_vm3, %v935_v28, %v943_v27 }
 0x2e4   : >>> { %v953_v30 = vsel %vm1663_vm4, %v947_v29, 0.0 }
 0x2e5   : >>> { %v901_v32 = vpop.permute.xlu1 %900  ;;  %993 = vst [vmem:[%s2446_s29] sm:$0xff] %v953_v30  ;;  %s344_s29 = smov (%p468_p9), [#allocation10] }
 0x2e6   : >>> { %v913_v33 = vsel %vm880_vm3, %v901_v32, %v909_v31  ;;  %v922_v34 = vpop.permute.xlu0 %921 }
 0x2e7   : >>> { %v919_v35 = vsel %vm1663_vm4, %v913_v33, 0.0  ;;  %v926_v36 = vsel %vm893_vm5, %v1877_v11, %v922_v34 }
 0x2e8   : >>> { %1879 = vst [vmem:[%s2443_s17 + $0x8] sm:$0xff] %v919_v35  ;;  %1880 = vst [vmem:[%s2452_s20 + $0x8] sm:$0xff] %v926_v36  ;;  %s1042_s17 = smov [#allocation13] }
 0x2e9   : >>> { %v971_v37 = vpop.permute.xlu1 %970 }
 0x2ea   : >>> { %v975_v38 = vsel %vm876_vm2, %v1883_v16, %v971_v37  ;;  %v967_v39 = vpop.permute.xlu0 %966 }
 0x2eb   : >>> { %v979_v40 = vsel %vm880_vm3, %v967_v39, %v975_v38 }
 0x2ec   : >>> { %v985_v41 = vsel %vm1663_vm4, %v979_v40, 0.0 }
 0x2ed   : >>> { %v956_v42 = vpop.permute.xlu1 %955  ;;  %1885 = vst [vmem:[%s2455_s21 + $0x8] sm:$0xff] %v985_v41 }
 0x2ee   : >>> { %v960_v43 = vsel %vm893_vm5, %v937_v13, %v956_v42  ;;  %v362_v13 = vadd.s32 (%p468_p9), 8, %v343_v9  ;;  %v372_v9 = vmov (%p468_p9), %v2166_v9 }
 0x2ef   : >>> { %v999_v44 = vld [vmem:[%s2495_s28] ss:$0 sm:$0xff]  ;;  %v1888_v46 = vld [vmem:[%s2495_s28 + $0x7] ss:$0 sm:$0xff]  ;;  %994 = vst [vmem:[%s2448_s14] sm:$0xff] %v960_v43  ;;  %v1889_v48 = vld [vmem:[%s2495_s28 + $0x7] sm:$0xfe]  ;;  %v418_v9 = vmov (%p468_p9), %v2166_v9 }
 0x2f0   : >>> { %v1887_v45 = vld [vmem:[%s2495_s28 - $0x1] sm:$0xfe]  ;;  %v1017_v51 = vsel %vm1005_vm8, %v1888_v46, %v1889_v48  ;;  %v1898_v53 = vld [vmem:[%s2499_s27 + $0x7] ss:$0 sm:$0xff]  ;;  %v1899_v54 = vld [vmem:[%s2499_s27 + $0x7] sm:$0xfe]  ;;  %vm363_vm7 = vcmp.eq.s32.totalorder (%p468_p9), %v362_v13, %v340_v12  ;;  %v392_v12 = vmov (%p468_p9), %v2169_v12  ;;  %v395_v9 = vmov (%p468_p9), %v2166_v9 }
 0x2f1   : >>> { %v1006_v47 = vsel %vm1005_vm8, %v999_v44, %v1887_v45  ;;  %v1043_v49 = vld [vmem:[%s2499_s27] ss:$0 sm:$0xff]  ;;  %v1900_v55 = vld [vmem:[%s2499_s27 + $0xf] ss:$0 sm:$0xff]  ;;  %v988_v56 = vpop.permute.xlu1 %987  ;;  %v1061_v57 = vsel %vm1005_vm8, %v1898_v53, %v1899_v54  ;;  %s396_s14 = smov (%p468_p9), [#allocation12]  ;;  %v415_v12 = vmov (%p468_p9), %v2169_v12  ;;  %v439_v40 = vadd.s32 (%p468_p9), 8, %v418_v9 }
 0x2f2   : >>> { %v1897_v50 = vld [vmem:[%s2499_s27 - $0x1] sm:$0xfe]  ;;  %1009 = vst [vmem:[%s2495_s28] sm:$0xff] %v1006_v47  ;;  %v992_v58 = vsel %vm893_vm5, %v1883_v16, %v988_v56  ;;  %v1890_v59 = vld [vmem:[%s2495_s28 + $0xf] ss:$0 sm:$0xff]  ;;  %1901 = vst [vmem:[%s2499_s27 + $0x8] sm:$0xff] %v1061_v57 }
 0x2f3   : >>> { %v1050_v52 = vsel %vm1005_vm8, %v1043_v49, %v1897_v50  ;;  %1886 = vst [vmem:[%s2457_s0 + $0x8] sm:$0xff] %v992_v58  ;;  %1891 = vst [vmem:[%s2495_s28 + $0x8] sm:$0xff] %v1017_v51  ;;  %s1235_s0 = sadd.s32 (%p468_p9), 1, %s2050_s25   ;;  %vm430_vm8 = vcmp.eq.s32.totalorder (%p468_p9), %v418_v9, %v415_v12 }
 0x2f4   : >>> { %1053 = vst [vmem:[%s2499_s27] sm:$0xff] %v1050_v52  ;;  %v1021_v60 = vld [vmem:[%s2504_s30] ss:$0 sm:$0xff]  ;;  %v1893_v61 = vld [vmem:[%s2504_s30 + $0x9] sm:$0x7f]  ;;  %v1894_v62 = vld [vmem:[%s2504_s30 + $0x8] ss:$0 sm:$0xff]  ;;  %s2652_s25 = smov (%p468_p9), %s1235_s0 }
 0x2f5   : >>> { %1892 = vst [vmem:[%s2495_s28 + $0x1] sm:$0x1] %v1021_v60  ;;  %v1030_v63 = vsel %vm1029_vm9, %v1890_v59, %v1893_v61  ;;  %v1896_v0 = vld [vmem:[%s2504_s30 + $0x1] sm:$0x7f]  ;;  %p464_p10 = scmp.ge.s32.totalorder (%p468_p9), %s1235_s0, 15 }
 0x2f6   : >>> { %1895 = vst [vmem:[%s2504_s30 + $0x8] sm:$0xff] %v1030_v63  ;;  %v1038_v1 = vsel %vm1029_vm9, %v1894_v62, %v1896_v0 }
 0x2f7   : >>> { %1040 = vst [vmem:[%s2504_s30] sm:$0xff] %v1038_v1 }
 0x2f9   : >> { %470 = sbr.rel (!%p468_p9) target bundleno = 289 (0x121), region = 451 }
 0x2fa   : >>> { %v1065_v2 = vld [vmem:[%s1042_s17] ss:$0 sm:$0xff]  ;;  %v1903_v3 = vld [vmem:[%s1042_s17 + $0x9] sm:$0x7f]  ;;  %v1904_v4 = vld [vmem:[%s1042_s17 + $0x8] ss:$0 sm:$0xff] }
 0x2fb   : >>> { %1902 = vst [vmem:[%s2499_s27 + $0x1] sm:$0x1] %v1065_v2  ;;  %v1074_v5 = vsel %vm1029_vm9, %v1900_v55, %v1903_v3  ;;  %v1906_v6 = vld [vmem:[%s1042_s17 + $0x1] sm:$0x7f] }
 0x2fc   : >>> { %1905 = vst [vmem:[%s1042_s17 + $0x8] sm:$0xff] %v1074_v5  ;;  %v1082_v7 = vsel %vm1029_vm9, %v1904_v4, %v1906_v6  ;;  %v350_v8 = vld [vmem:[%s344_s29] sm:$0xff] (%p468_p9)  ;;  %v1937_v10 = vld [vmem:[%s344_s29 + $0x8] sm:$0xff] (%p468_p9)  ;;  %vm440_vm9 = vcmp.eq.s32.totalorder (%p468_p9), %v439_v40, %v415_v12 }
 0x2fd   : >>> { %1084 = vst [vmem:[%s1042_s17] sm:$0xff] %v1082_v7  ;;  %v351_v14 = vsel (%p468_p9), %vm1663_vm4, %v350_v8, 0.0  ;;  %v359_v15 = vsel (%p468_p9), %vm1663_vm4, %v1937_v10, 0.0 }
 0x2fe   : >> { %v402_v18 = vld [vmem:[%s396_s14] sm:$0xff] (%p468_p9)  ;;  %v352_v19 = vmul.f32 (%p468_p9), %v351_v14, %v351_v14  ;;  %v360_v20 = vmul.f32 (%p468_p9), %v359_v15, %v359_v15  ;;  %v1939_v23 = vld [vmem:[%s396_s14 + $0x8] sm:$0xff] (%p468_p9) }
 0x2ff   : >> { %v403_v24 = vsel (%p468_p9), %vm1663_vm4, %v402_v18, 0.0  ;;  %v409_v28 = vsel (%p468_p9), %vm1663_vm4, %v1939_v23, 0.0 }
 0x300   : >> { %v366_v25 = vadd.f32 %v360_v20, %v352_v19  ;;  %v356_v29 = vsel %vm355_vm6, 0.0, %v352_v19  ;;  %v404_v31 = vmul.f32 %v403_v24, %v403_v24  ;;  %v364_v33 = vsel %vm363_vm7, 0.0, %v360_v20 }
 0x301   : >> { %v365_v35 = vadd.f32 %v364_v33, %v356_v29  ;;  %v410_v37 = vmul.f32 %v409_v28, %v409_v28 }
 0x302   : >> { %v379_v11 = vld [vmem:[%s373_s11] sm:$0xff]  ;;  %v1938_v17 = vld [vmem:[%s373_s11 + $0x8] sm:$0xff] }
 0x303   : >> { %v380_v16 = vsel %vm1663_vm4, %v379_v11, 0.0  ;;  %v386_v22 = vsel %vm1663_vm4, %v1938_v17, 0.0 }
 0x304   : >> { %v381_v21 = vmul.f32 %v380_v16, %v380_v16  ;;  %v387_v26 = vmul.f32 %v386_v22, %v386_v22  ;;  %v425_v27 = vld [vmem:[%s419_s26] sm:$0xff]  ;;  %v1940_v32 = vld [vmem:[%s419_s26 + $0x8] sm:$0xff] }
 0x305   : >> { %v426_v34 = vsel %vm1663_vm4, %v425_v27, 0.0  ;;  %v436_v38 = vsel %vm1663_vm4, %v1940_v32, 0.0 }
 0x306   : >> { %v383_v30 = vadd.f32 %v381_v21, %v366_v25  ;;  %v382_v39 = vadd.f32 %v381_v21, %v365_v35  ;;  %v427_v42 = vmul.f32 %v426_v34, %v426_v34  ;;  %v437_v45 = vmul.f32 %v436_v38, %v436_v38 }
 0x308   : >> { %v389_v36 = vadd.f32 %v387_v26, %v383_v30  ;;  %v388_v43 = vadd.f32 %v387_v26, %v382_v39  ;;  %v431_v48 = vsel %vm430_vm8, 0.0, %v427_v42  ;;  %v441_v51 = vsel %vm440_vm9, 0.0, %v437_v45 }
 0x30a   : >> { %v406_v41 = vadd.f32 %v404_v31, %v389_v36  ;;  %v405_v46 = vadd.f32 %v404_v31, %v388_v43 }
 0x30c   : >> { %v412_v44 = vadd.f32 %v410_v37, %v406_v41  ;;  %v411_v49 = vadd.f32 %v410_v37, %v405_v46 }
 0x30e   : >> { %v433_v47 = vadd.f32 %v427_v42, %v412_v44  ;;  %v432_v52 = vadd.f32 %v431_v48, %v411_v49 }
 0x310   : >> { %v443_v50 = vadd.f32 %v437_v45, %v433_v47  ;;  %v442_v53 = vadd.f32 %v441_v51, %v432_v52 }
 0x312   : >> { %444 = vadd.xlane.f32.xlu0 %v443_v50 }
 0x316   : >> { %452 = vadd.xlane.f32.xlu0 %v442_v53 }
 0x39f   : >> { %v445_v54 = vpop.xlane.xlu0 %444 }
 0x3a0   : >> { %v446_v55 = vrot.slane %v445_v54, 4 }
 0x3a2   : >> { %v447_v56 = vadd.f32 %v446_v55, %v445_v54 }
 0x3a3   : >> { %v453_v57 = vpop.xlane.xlu0 %452 }
 0x3a4   : >> { %v448_v58 = vrot.slane %v447_v56, 2  ;;  %v454_v59 = vrot.slane %v453_v57, 4 }
 0x3a6   : >> { %v455_v60 = vadd.f32 %v454_v59, %v453_v57  ;;  %v449_v61 = vadd.f32 %v448_v58, %v447_v56 }
 0x3a8   : >> { %v456_v62 = vrot.slane %v455_v60, 2  ;;  %v450_v0 = vrot.slane %v449_v61, 1 }
 0x3aa   : >> { %v457_v63 = vadd.f32 %v456_v62, %v455_v60  ;;  %v451_v3 = vadd.f32 %v450_v0, %v449_v61 }
 0x3ac   : >> { %v458_v1 = vrot.slane %v457_v63, 1 }
 0x3ae   : >> { %v459_v2 = vadd.f32 %v458_v1, %v457_v63 }
 0x3b0   : >> { %1961 = vpush %v459_v2 }
 0x3b1   : >> { %1963 = vpush %v451_v3 }
 0x3e1   : >> { %s1962_s20 = spop %1961 }
 0x3e2   : >> { %s1964_s21 = spop %1963 }
 0x3e3   : >> { %s462_s28 = smul.f32 1e-10, %s1964_s21 }
 0x3e5   : >> { %p463_p11 = scmp.le.f32.partialorder %s1962_s20, %s462_s28 }
 0x3e7   : >> { %p465_p12 = por %p464_p10, %p463_p11 }
 0x3e9   : > { %1237 = sbr.rel (!%p465_p12) target bundleno = 288 (0x120), region = 462 }
 0x3f0 PF: > { %s1242_s27 = smov [#allocation10]  ;;  %v1246_v12 = vmov %v2169_v12  ;;  %v1249_v9 = vmov %v2166_v9  ;;  %s1268_s25 = smov [#allocation13] }
 0x3f1   : > { %v1272_v12 = vmov %v2169_v12  ;;  %v1275_v9 = vmov %v2166_v9  ;;  %v1250_v4 = vld [vmem:[%s1242_s27] sm:$0xff]  ;;  %vm1253_vm10 = vcmp.eq.s32.totalorder %v1249_v9, %v1246_v12  ;;  %v1941_v5 = vld [vmem:[%s1242_s27 + $0x8] sm:$0xff]  ;;  %v1258_v6 = vadd.s32 8, %v1249_v9  ;;  %s1238_s30 = sand.u32 7, %s2125_s12   ;;  %s2653_s17 = scalar_lea.vmem [#allocation4], %s2164_s22 }
 0x3f2   : > { %vm1279_vm11 = vcmp.eq.s32.totalorder %v1275_v9, %v1272_v12  ;;  %v1284_v7 = vadd.s32 8, %v1275_v9  ;;  %v1254_v8 = vsel %vm1253_vm10, %v1250_v4, 0.0  ;;  %v1276_v10 = vld [vmem:[%s1268_s25] sm:$0xff]  ;;  %v1942_v11 = vld [vmem:[%s1268_s25 + $0x8] sm:$0xff]  ;;  %s1239_s0 = scalar_lea.vmem %s2653_s17, %s1238_s30 [#allocation4]  ;;  %s2654_s29 = scalar_lea.vmem [#allocation5], %s2164_s22 }
 0x3f3   : > { %vm1259_vm4 = vcmp.eq.s32.totalorder %v1258_v6, %v1246_v12  ;;  %v1280_v14 = vsel %vm1279_vm11, %v1276_v10, 0.0  ;;  %s1241_s11 = scalar_lea.vmem %s2654_s29, %s1238_s30 [#allocation5]  ;;  %s1243_s0 = smov %s1239_s0 }
 0x3f4   : > { %vm1285_vm12 = vcmp.eq.s32.totalorder %v1284_v7, %v1272_v12  ;;  %v1260_v13 = vsel %vm1259_vm4, %v1941_v5, %v1254_v8  ;;  %s1269_s11 = smov %s1241_s11  ;;  %s1321_s14 = sshrl.u32 (%p2139_p3), %s2125_s12, 3 }
 0x3f5   : > { %v1261_v15 = vrot.slane %v1260_v13, 4  ;;  %v1286_v16 = vsel %vm1285_vm12, %v1942_v11, %v1280_v14  ;;  %s2655_s26 = scalar_lea.vmem (%p2139_p3), [#allocation4], %s2164_s22  ;;  %s1949_s20 = sshll.u32 (%p2139_p3), %s1321_s14, 3 }
 0x3f6   : > { %v1287_v17 = vrot.slane %v1286_v16, 4  ;;  %s1323_s27 = scalar_lea.vmem (%p2139_p3), %s2643_s4, %s1949_s20 }
 0x3f7   : > { %v1262_v18 = vadd.f32 %v1261_v15, %v1260_v13 }
 0x3f8   : > { %v1288_v19 = vadd.f32 %v1287_v17, %v1286_v16 }
 0x3f9   : > { %v1263_v20 = vrot.slane %v1262_v18, 2 }
 0x3fa   : > { %v1289_v21 = vrot.slane %v1288_v19, 2 }
 0x3fb   : > { %v1264_v9 = vadd.f32 %v1263_v20, %v1262_v18 }
 0x3fc   : > { %v1290_v22 = vadd.f32 %v1289_v21, %v1288_v19  ;;  %1320 = sbr.rel (!%p2139_p3) target bundleno = 1034 (0x40a), region = 114 }
 0x3fd   : > { %v1265_v23 = vrot.slane %v1264_v9, 1 }
 0x3fe   : > { %v1291_v24 = vrot.slane %v1290_v22, 1 }
 0x3ff   : > { %v1266_v12 = vadd.f32 %v1265_v23, %v1264_v9 }
 0x400   : > { %v1292_v25 = vadd.f32 %v1291_v24, %v1290_v22 }
 0x401   : > { %1267 = vst [vmem:[%s1243_s0] sm:$0x1] %v1266_v12 }
 0x402   : > { %1293 = vst [vmem:[%s1269_s11] sm:$0x1] %v1292_v25 }
 0x408   : > { %v1351_v26 = vld [vmem:[%s2655_s26] sm:$0xff] }
 0x409   : > { %1352 = vst [vmem:[%s1323_s27] sm:$0xff] %v1351_v26 }
 0x40a PF: > { %1358 = sbr.rel (!%p2139_p3) target bundleno = 1042 (0x412), region = 152  ;;  %s1359_s25 = sshrl.u32 (%p2139_p3), %s2125_s12, 3 }
 0x40b   : > { %s2656_s30 = scalar_lea.vmem (%p2139_p3), [#allocation5], %s2164_s22  ;;  %s1950_s17 = sshll.u32 (%p2139_p3), %s1359_s25, 3 }
 0x40c   : > { %s1361_s11 = scalar_lea.vmem (%p2139_p3), %s2644_s5, %s1950_s17 }
 0x410   : > { %v1389_v27 = vld [vmem:[%s2656_s30] sm:$0xff] (%p2139_p3) }
 0x411   : > { %1390 = vst [vmem:[%s1361_s11] sm:$0xff] %v1389_v27 }
 0x412 PF: > { %s1951_s19 = sshll.u32 %s2125_s12, 4  ;;  %v1408_v28 = vld [vmem:[%s2177_s15] sm:$0xff]  ;;  %v1410_v29 = vld [vmem:[%s2177_s15 + $0x8] sm:$0xff] }
 0x413   : > { %v1429_v30 = vld [vmem:[%s2182_s16] sm:$0xff]  ;;  %s1395_s26 = scalar_lea.vmem %s2645_s6, %s1951_s19  ;;  %s1416_s28 = scalar_lea.vmem %s2646_s7, %s1951_s19  ;;  %v1431_v31 = vld [vmem:[%s2182_s16 + $0x8] sm:$0xff] }
 0x414   : > { %v1450_v32 = vld [vmem:[%s2187_s23] sm:$0xff]  ;;  %v1452_v33 = vld [vmem:[%s2187_s23 + $0x8] sm:$0xff]  ;;  %1409 = vst [vmem:[%s1395_s26] sm:$0xff] %v1408_v28  ;;  %1411 = vst [vmem:[%s1395_s26 + $0x8] sm:$0xff] %v1410_v29  ;;  %s1437_s15 = scalar_lea.vmem %s2647_s8, %s1951_s19  ;;  %s1458_s17 = scalar_lea.vmem %s2648_s9, %s1951_s19 }
 0x415   : > { %1430 = vst [vmem:[%s1416_s28] sm:$0xff] %v1429_v30  ;;  %1432 = vst [vmem:[%s1416_s28 + $0x8] sm:$0xff] %v1431_v31  ;;  %v1471_v34 = vld [vmem:[%s2192_s24] sm:$0xff]  ;;  %v1473_v35 = vld [vmem:[%s2192_s24 + $0x8] sm:$0xff] }
 0x416   : > { %1451 = vst [vmem:[%s1437_s15] sm:$0xff] %v1450_v32  ;;  %1453 = vst [vmem:[%s1437_s15 + $0x8] sm:$0xff] %v1452_v33 }
 0x417   : > { %1472 = vst [vmem:[%s1458_s17] sm:$0xff] %v1471_v34  ;;  %1474 = vst [vmem:[%s1458_s17 + $0x8] sm:$0xff] %v1473_v35 }
 0x418 PF: > { %p13_p13 = scmp.ge.s32.totalorder %s2128_s13, 10   ;;  %s2657_s30 = smov %s2042_s10 }
 0x419   : > { %s2658_s10 = smov %s2137_s18  ;;  %s2659_s11 = smov %s2128_s13 }
 0x41a   :  { %15 = sbr.rel (!%p13_p13) target bundleno = 4 (0x4), region = 473 }

// kernel: hdmnet_forward.3
= control target key start
LH: loop header
LB: loop body
LE: loop exit
PB: predicated region body
PF: predicated region fallthrough
CT: control target
= control target key end

     0   :  { %vm398_vm0 = vcmask 760832   ;;  %vm543_vm1 = vcmask 1045504   ;;  %vm544_vm2 = vcmask 1046528   ;;  %v2503_v5 = vmov 65535   ;;  %s3083_s1 = inlined_call_operand.vmem [shape: bf16[93,32], index: 1, kind: input, shape index: {}]   ;;  %s3084_s0 = inlined_call_operand.vmem [shape: bf16[768,93], index: 0, kind: input, shape index: {}]   ;;  %s3085_s2 = inlined_call_operand.vmem [shape: bf16[32,96], index: 2, kind: input, shape index: {}]   ;;  %s3086_s3 = inlined_call_operand.vmem [shape: f32[8,32,32], index: 3, kind: output, shape index: {}]  }
   0x1   :  { %v2447_v0 = vld [vmem:[%s3083_s1] sm:$0xff]   ;;  %v2448_v1 = vld [vmem:[%s3083_s1 + $0x8] sm:$0xff]   ;;  %v2449_v2 = vld [vmem:[%s3083_s1 + $0x10] sm:$0xff]   ;;  %v545_v6 = vsel %vm543_vm1, 4294967295, %v2503_v5  ;;  %vm1107_vm3 = vcmask 785408   ;;  %vm1015_vm4 = vcmask 261120  }
   0x2   :  { %2209 = vmatprep.subr.bf16.mxu0 %v2447_v0  ;;  %v2453_v3 = vld [vmem:[%s3084_s0] sm:$0xff]   ;;  %v2450_v4 = vld [vmem:[%s3083_s1 + $0x18] sm:$0xff]   ;;  %v2452_v8 = vld [vmem:[%s3083_s1 + $0x28] sm:$0x7f]   ;;  %v546_v9 = vsel %vm544_vm2, %v545_v6, 0 }
   0x3   :  { %2210 = vmatpush3.bf16.msra.mxu0 %v2447_v0  ;;  %2221 = vmatprep.mubr.msk.bf16.mxu0 %vm398_vm0, %v2453_v3  ;;  %v2451_v7 = vld [vmem:[%s3083_s1 + $0x20] sm:$0xff]   ;;  %v548_v10 = vand.u32 %v2452_v8, %v546_v9  ;;  %v2454_v11 = vld [vmem:[%s3084_s0 + $0x8] sm:$0xff]   ;;  %v2455_v12 = vld [vmem:[%s3084_s0 + $0x10] sm:$0xff]  }
   0x4   :  { %2211 = vmatprep.subr.bf16.mxu0 %v2448_v1  ;;  %v2456_v13 = vld [vmem:[%s3084_s0 + $0x18] sm:$0xff]   ;;  %v2457_v14 = vld [vmem:[%s3084_s0 + $0x20] sm:$0xff]   ;;  %v2458_v15 = vld [vmem:[%s3084_s0 + $0x28] sm:$0xff]  }
   0x5   :  { %v2459_v16 = vld [vmem:[%s3084_s0 + $0x30] sm:$0xff]   ;;  %v2460_v17 = vld [vmem:[%s3084_s0 + $0x38] sm:$0xff]   ;;  %v2461_v18 = vld [vmem:[%s3084_s0 + $0x40] sm:$0xff]  }
   0x6   :  { %v2462_v19 = vld [vmem:[%s3084_s0 + $0x48] sm:$0xff]   ;;  %v2463_v20 = vld [vmem:[%s3084_s0 + $0x50] sm:$0xff]   ;;  %v2464_v21 = vld [vmem:[%s3084_s0 + $0x58] sm:$0xff]  }
   0x7   :  { %2212 = vmatpush3.bf16.msra.mxu0 %v2448_v1  ;;  %v2465_v22 = vld [vmem:[%s3084_s0 + $0x60] sm:$0xff]   ;;  %v2466_v23 = vld [vmem:[%s3084_s0 + $0x68] sm:$0xff]   ;;  %v2467_v24 = vld [vmem:[%s3084_s0 + $0x70] sm:$0xff]  }
   0x8   :  { %2213 = vmatprep.subr.bf16.mxu0 %v2449_v2  ;;  %v2468_v25 = vld [vmem:[%s3084_s0 + $0x78] sm:$0xff]   ;;  %v2469_v26 = vld [vmem:[%s3084_s0 + $0x80] sm:$0xff]   ;;  %v2470_v27 = vld [vmem:[%s3084_s0 + $0x88] sm:$0xff]  }
   0x9   :  { %v2471_v28 = vld [vmem:[%s3084_s0 + $0x90] sm:$0xff]   ;;  %v2472_v29 = vld [vmem:[%s3084_s0 + $0x98] sm:$0xff]   ;;  %v2473_v30 = vld [vmem:[%s3084_s0 + $0xa0] sm:$0xff]  }
   0xa   :  { %v2474_v31 = vld [vmem:[%s3084_s0 + $0xa8] sm:$0xff]   ;;  %v2475_v32 = vld [vmem:[%s3084_s0 + $0xb0] sm:$0xff]   ;;  %v2476_v33 = vld [vmem:[%s3084_s0 + $0xb8] sm:$0xff]  }
   0xb   :  { %2214 = vmatpush3.bf16.msra.mxu0 %v2449_v2  ;;  %v2477_v34 = vld [vmem:[%s3084_s0 + $0xc0] sm:$0xff]   ;;  %v2478_v35 = vld [vmem:[%s3084_s0 + $0xc8] sm:$0xff]   ;;  %v2479_v36 = vld [vmem:[%s3084_s0 + $0xd0] sm:$0xff]  }
   0xc   :  { %2215 = vmatprep.subr.bf16.mxu0 %v2450_v4  ;;  %v2480_v37 = vld [vmem:[%s3084_s0 + $0xd8] sm:$0xff]   ;;  %v2481_v38 = vld [vmem:[%s3084_s0 + $0xe0] sm:$0xff]   ;;  %v2482_v39 = vld [vmem:[%s3084_s0 + $0xe8] sm:$0xff]  }
   0xd   :  { %v2483_v40 = vld [vmem:[%s3084_s0 + $0xf0] sm:$0xff]   ;;  %v2484_v41 = vld [vmem:[%s3084_s0 + $0xf8] sm:$0xff]   ;;  %v2485_v42 = vld [vmem:[%s3084_s0 + $0x100] sm:$0xff]  }
   0xe   :  { %v2676_v43 = vld [vmem:[%s3085_s2] sm:$0xff]   ;;  %v2486_v44 = vld [vmem:[%s3084_s0 + $0x108] sm:$0xff]   ;;  %v2487_v45 = vld [vmem:[%s3084_s0 + $0x110] sm:$0xff]  }
   0xf   :  { %2216 = vmatpush3.bf16.msra.mxu0 %v2450_v4  ;;  %2329 = vmatprep.mubr.msk.bf16.mxu1 %vm1107_vm3, %v2676_v43  ;;  %v2488_v46 = vld [vmem:[%s3084_s0 + $0x118] sm:$0xff]   ;;  %v2489_v47 = vld [vmem:[%s3084_s0 + $0x120] sm:$0xff]   ;;  %v2490_v48 = vld [vmem:[%s3084_s0 + $0x128] sm:$0xff]  }
  0x10   :  { %2217 = vmatprep.subr.bf16.mxu0 %v2451_v7  ;;  %v2491_v49 = vld [vmem:[%s3084_s0 + $0x130] sm:$0xff]   ;;  %v2492_v50 = vld [vmem:[%s3084_s0 + $0x138] sm:$0xff]   ;;  %v2493_v51 = vld [vmem:[%s3084_s0 + $0x140] sm:$0xff]  }
  0x11   :  { %v2494_v52 = vld [vmem:[%s3084_s0 + $0x148] sm:$0xff]   ;;  %v2495_v53 = vld [vmem:[%s3084_s0 + $0x150] sm:$0xff]   ;;  %v2496_v54 = vld [vmem:[%s3084_s0 + $0x158] sm:$0xff]  }
  0x12   :  { %v2497_v55 = vld [vmem:[%s3084_s0 + $0x160] sm:$0xff]   ;;  %v2498_v56 = vld [vmem:[%s3084_s0 + $0x168] sm:$0xff]   ;;  %v2499_v57 = vld [vmem:[%s3084_s0 + $0x170] sm:$0xff]  }
  0x13   :  { %2218 = vmatpush3.bf16.msra.mxu0 %v2451_v7  ;;  %v2500_v58 = vld [vmem:[%s3084_s0 + $0x178] sm:$0xff]  }
  0x14   :  { %2219 = vmatprep.subr.bf16.mxu0 %v548_v10 }
  0x17   :  { %2220 = vmatpush3.bf16.msra.mxu0 %v548_v10 }
  0x1a   :  { %2222 = vmatmul.mubr.msk.bf16.vlgmr.msra.gmra.mrb[0].mxu0 %vm398_vm0, %v2454_v11 }
  0x1b   :  { %2225 = vmatprep.mubr.msk.bf16.mxu0 %vm398_vm0, %v2455_v12 }
  0x22   :  { %2226 = vmatmul.mubr.msk.bf16.gmra.mrb[4].mxu0 %vm398_vm0, %v2456_v13 }
  0x23   :  { %2229 = vmatprep.mubr.msk.bf16.mxu0 %vm398_vm0, %v2457_v14 }
  0x2a   :  { %2230 = vmatmul.mubr.msk.bf16.gmra.mrb[8].mxu0 %vm398_vm0, %v2458_v15 }
  0x2b   :  { %2233 = vmatprep.mubr.msk.bf16.mxu0 %vm398_vm0, %v2459_v16 }
  0x32   :  { %2234 = vmatmul.mubr.msk.bf16.gmra.mrb[12].mxu0 %vm398_vm0, %v2460_v17 }
  0x33   :  { %2237 = vmatprep.mubr.msk.bf16.mxu0 %vm398_vm0, %v2461_v18 }
  0x3a   :  { %2238 = vmatmul.mubr.msk.bf16.gmra.mrb[16].mxu0 %vm398_vm0, %v2462_v19 }
  0x3b   :  { %2241 = vmatprep.mubr.msk.bf16.mxu0 %vm398_vm0, %v2463_v20 }
  0x42   :  { %2242 = vmatmul.mubr.msk.bf16.gmra.mrb[20].mxu0 %vm398_vm0, %v2464_v21 }
  0x43   :  { %2245 = vmatprep.mubr.msk.bf16.mxu0 %vm398_vm0, %v2465_v22 }
  0x4a   :  { %2246 = vmatmul.mubr.msk.bf16.gmra.mrb[24].mxu0 %vm398_vm0, %v2466_v23 }
  0x4b   :  { %2249 = vmatprep.mubr.msk.bf16.mxu0 %vm398_vm0, %v2467_v24 }
  0x52   :  { %2250 = vmatmul.mubr.msk.bf16.gmra.mrb[28].mxu0 %vm398_vm0, %v2468_v25 }
  0x53   :  { %2253 = vmatprep.mubr.msk.bf16.mxu0 %vm398_vm0, %v2469_v26 }
  0x5a   :  { %2254 = vmatmul.mubr.msk.bf16.gmra.mrb[32].mxu0 %vm398_vm0, %v2470_v27 }
  0x5b   :  { %2257 = vmatprep.mubr.msk.bf16.mxu0 %vm398_vm0, %v2471_v28  ;;  %v2753_v28 = vld [vmem:[%s3085_s2 + $0x8] sm:$0xff]  }
  0x62   :  { %2258 = vmatmul.mubr.msk.bf16.gmra.mrb[36].mxu0 %vm398_vm0, %v2472_v29 }
  0x63   :  { %2261 = vmatprep.mubr.msk.bf16.mxu0 %vm398_vm0, %v2473_v30 }
  0x6a   :  { %2262 = vmatmul.mubr.msk.bf16.gmra.mrb[40].mxu0 %vm398_vm0, %v2474_v31 }
  0x6b   :  { %2265 = vmatprep.mubr.msk.bf16.mxu0 %vm398_vm0, %v2475_v32 }
  0x72   :  { %2266 = vmatmul.mubr.msk.bf16.gmra.mrb[44].mxu0 %vm398_vm0, %v2476_v33 }
  0x73   :  { %2269 = vmatprep.mubr.msk.bf16.mxu0 %vm398_vm0, %v2477_v34 }
  0x7a   :  { %2270 = vmatmul.mubr.msk.bf16.gmra.mrb[48].mxu0 %vm398_vm0, %v2478_v35 }
  0x7b   :  { %2273 = vmatprep.mubr.msk.bf16.mxu0 %vm398_vm0, %v2479_v36 }
  0x82   :  { %2274 = vmatmul.mubr.msk.bf16.gmra.mrb[52].mxu0 %vm398_vm0, %v2480_v37 }
  0x83   :  { %2277 = vmatprep.mubr.msk.bf16.mxu0 %vm398_vm0, %v2481_v38 }
  0x8a   :  { %2278 = vmatmul.mubr.msk.bf16.gmra.mrb[56].mxu0 %vm398_vm0, %v2482_v39 }
  0x8b   :  { %2281 = vmatprep.mubr.msk.bf16.mxu0 %vm398_vm0, %v2483_v40 }
  0x92   :  { %2282 = vmatmul.mubr.msk.bf16.gmra.mrb[60].mxu0 %vm398_vm0, %v2484_v41 }
  0x93   :  { %2285 = vmatprep.mubr.msk.bf16.mxu0 %vm398_vm0, %v2485_v42 }
  0x9a   :  { %2286 = vmatmul.mubr.msk.bf16.gmra.mrb[64].mxu0 %vm398_vm0, %v2486_v44 }
  0x9b   :  { %2289 = vmatprep.mubr.msk.bf16.mxu0 %vm398_vm0, %v2487_v45 }
  0xa2   :  { %2290 = vmatmul.mubr.msk.bf16.gmra.mrb[68].mxu0 %vm398_vm0, %v2488_v46 }
  0xa3   :  { %2293 = vmatprep.mubr.msk.bf16.mxu0 %vm398_vm0, %v2489_v47 }
  0xaa   :  { %2294 = vmatmul.mubr.msk.bf16.gmra.mrb[72].mxu0 %vm398_vm0, %v2490_v48 }
  0xab   :  { %2297 = vmatprep.mubr.msk.bf16.mxu0 %vm398_vm0, %v2491_v49 }
  0xb2   :  { %2298 = vmatmul.mubr.msk.bf16.gmra.mrb[76].mxu0 %vm398_vm0, %v2492_v50 }
  0xb3   :  { %2301 = vmatprep.mubr.msk.bf16.mxu0 %vm398_vm0, %v2493_v51 }
  0xba   :  { %2302 = vmatmul.mubr.msk.bf16.gmra.mrb[80].mxu0 %vm398_vm0, %v2494_v52 }
  0xbb   :  { %2305 = vmatprep.mubr.msk.bf16.mxu0 %vm398_vm0, %v2495_v53 }
  0xc2   :  { %2306 = vmatmul.mubr.msk.bf16.gmra.mrb[84].mxu0 %vm398_vm0, %v2496_v54 }
  0xc3   :  { %2309 = vmatprep.mubr.msk.bf16.mxu0 %vm398_vm0, %v2497_v55 }
  0xca   :  { %2310 = vmatmul.mubr.msk.bf16.gmra.mrb[88].mxu0 %vm398_vm0, %v2498_v56 }
  0xcb   :  { %2313 = vmatprep.mubr.msk.bf16.mxu0 %vm398_vm0, %v2499_v57 }
  0xd2   :  { %2314 = vmatmul.mubr.msk.bf16.gmra.mrb[92].mxu0 %vm398_vm0, %v2500_v58 }
  0xed   :  { %v2223_v59 = vpop.f32.mrb[0].mxu0 }
  0xee   :  { %v584_v60 = vpop.f32.mrb[1].mxu0 }
  0xef   :  { %v2224_v61 = vpop.f32.mrb[2].mxu0 }
  0xf0   :  { %v968_v62 = vpack.c.bf16 %v2224_v61, %v2223_v59  ;;  %v587_v63 = vpop.f32.mrb[3].mxu0 }
  0xf1   :  { %v967_v0 = vpack.c.bf16 %v587_v63, %v584_v60 }
  0xf2   :  { %1017 = vst.msk [vmem:[#allocation2 + $0x8] sm:$0xff] %vm1015_vm4, %v968_v62 }
  0xf3   :  { %1016 = vst.msk [vmem:[#allocation2] sm:$0xff] %vm1015_vm4, %v967_v0 }
  0xf5   :  { %v2227_v1 = vpop.f32.mrb[4].mxu0 }
  0xf6   :  { %v600_v2 = vpop.f32.mrb[5].mxu0 }
  0xf7   :  { %v2228_v3 = vpop.f32.mrb[6].mxu0 }
  0xf8   :  { %v970_v4 = vpack.c.bf16 %v2228_v3, %v2227_v1  ;;  %v603_v5 = vpop.f32.mrb[7].mxu0 }
  0xf9   :  { %v969_v6 = vpack.c.bf16 %v603_v5, %v600_v2  ;;  %v1092_v8 = vld [vmem:[#allocation2 + $0x8] sm:$0xff] }
  0xfa   :  { %1019 = vst.msk [vmem:[#allocation2 + $0x18] sm:$0xff] %vm1015_vm4, %v970_v4  ;;  %v1091_v7 = vld [vmem:[#allocation2] sm:$0xff] }
  0xfb   :  { %1018 = vst.msk [vmem:[#allocation2 + $0x10] sm:$0xff] %vm1015_vm4, %v969_v6  ;;  %2317 = vmatprep.subr.bf16.mxu1 %v1091_v7 }
  0xfc   :  { %2318 = vmatpush3.bf16.msra.mxu1 %v1091_v7 }
  0xfd   :  { %v2231_v9 = vpop.f32.mrb[8].mxu0  ;;  %2319 = vmatprep.subr.bf16.mxu1 %v1092_v8 }
  0xfe   :  { %v616_v10 = vpop.f32.mrb[9].mxu0 }
  0xff   :  { %v2232_v11 = vpop.f32.mrb[10].mxu0 }
 0x100   :  { %v972_v12 = vpack.c.bf16 %v2232_v11, %v2231_v9  ;;  %v619_v13 = vpop.f32.mrb[11].mxu0  ;;  %2320 = vmatpush3.bf16.msra.mxu1 %v1092_v8 }
 0x101   :  { %v971_v14 = vpack.c.bf16 %v619_v13, %v616_v10  ;;  %v1094_v16 = vld [vmem:[#allocation2 + $0x18] sm:$0xff] }
 0x102   :  { %1021 = vst.msk [vmem:[#allocation2 + $0x28] sm:$0xff] %vm1015_vm4, %v972_v12  ;;  %v1093_v15 = vld [vmem:[#allocation2 + $0x10] sm:$0xff] }
 0x103   :  { %1020 = vst.msk [vmem:[#allocation2 + $0x20] sm:$0xff] %vm1015_vm4, %v971_v14  ;;  %2321 = vmatprep.subr.bf16.mxu1 %v1093_v15 }
 0x104   :  { %2322 = vmatpush3.bf16.msra.mxu1 %v1093_v15 }
 0x105   :  { %v2235_v17 = vpop.f32.mrb[12].mxu0  ;;  %2323 = vmatprep.subr.bf16.mxu1 %v1094_v16 }
 0x106   :  { %v632_v18 = vpop.f32.mrb[13].mxu0 }
 0x107   :  { %v2236_v19 = vpop.f32.mrb[14].mxu0 }
 0x108   :  { %v974_v20 = vpack.c.bf16 %v2236_v19, %v2235_v17  ;;  %v635_v21 = vpop.f32.mrb[15].mxu0  ;;  %2324 = vmatpush3.bf16.msra.mxu1 %v1094_v16 }
 0x109   :  { %v973_v22 = vpack.c.bf16 %v635_v21, %v632_v18  ;;  %v1096_v24 = vld [vmem:[#allocation2 + $0x28] sm:$0xff] }
 0x10a   :  { %1023 = vst.msk [vmem:[#allocation2 + $0x38] sm:$0xff] %vm1015_vm4, %v974_v20  ;;  %v1095_v23 = vld [vmem:[#allocation2 + $0x20] sm:$0xff] }
 0x10b   :  { %1022 = vst.msk [vmem:[#allocation2 + $0x30] sm:$0xff] %vm1015_vm4, %v973_v22  ;;  %2325 = vmatprep.subr.bf16.mxu1 %v1095_v23 }
 0x10c   :  { %2326 = vmatpush3.bf16.msra.mxu1 %v1095_v23 }
 0x10d   :  { %v2239_v25 = vpop.f32.mrb[16].mxu0  ;;  %2327 = vmatprep.subr.bf16.mxu1 %v1096_v24 }
 0x10e   :  { %v648_v26 = vpop.f32.mrb[17].mxu0 }
 0x10f   :  { %v2240_v27 = vpop.f32.mrb[18].mxu0 }
 0x110   :  { %v976_v29 = vpack.c.bf16 %v2240_v27, %v2239_v25  ;;  %v651_v30 = vpop.f32.mrb[19].mxu0  ;;  %2328 = vmatpush3.bf16.msra.mxu1 %v1096_v24 }
 0x111   :  { %v975_v31 = vpack.c.bf16 %v651_v30, %v648_v26  ;;  %v1212_v33 = vld [vmem:[#allocation2 + $0x38] sm:$0xff] }
 0x112   :  { %1025 = vst.msk [vmem:[#allocation2 + $0x48] sm:$0xff] %vm1015_vm4, %v976_v29  ;;  %v1211_v32 = vld [vmem:[#allocation2 + $0x30] sm:$0xff] }
 0x113   :  { %1024 = vst.msk [vmem:[#allocation2 + $0x40] sm:$0xff] %vm1015_vm4, %v975_v31  ;;  %2330 = vmatmul.mubr.msk.bf16.vlgmr.msra.gmra.mrb[0].mxu1 %vm1107_vm3, %v2753_v28  ;;  %2333 = vmatprep.subr.bf16.mxu1 %v1211_v32 }
 0x114   :  { %2334 = vmatpush3.bf16.msra.mxu1 %v1211_v32  ;;  %2345 = vmatprep.mubr.msk.bf16.mxu1 %vm1107_vm3, %v2676_v43 }
 0x115   :  { %v2243_v34 = vpop.f32.mrb[20].mxu0  ;;  %2335 = vmatprep.subr.bf16.mxu1 %v1212_v33 }
 0x116   :  { %v664_v35 = vpop.f32.mrb[21].mxu0 }
 0x117   :  { %v2244_v36 = vpop.f32.mrb[22].mxu0 }
 0x118   :  { %v978_v37 = vpack.c.bf16 %v2244_v36, %v2243_v34  ;;  %v667_v38 = vpop.f32.mrb[23].mxu0  ;;  %2336 = vmatpush3.bf16.msra.mxu1 %v1212_v33 }
 0x119   :  { %v977_v39 = vpack.c.bf16 %v667_v38, %v664_v35  ;;  %v1214_v41 = vld [vmem:[#allocation2 + $0x48] sm:$0xff] }
 0x11a   :  { %1027 = vst.msk [vmem:[#allocation2 + $0x58] sm:$0xff] %vm1015_vm4, %v978_v37  ;;  %v1213_v40 = vld [vmem:[#allocation2 + $0x40] sm:$0xff] }
 0x11b   :  { %1026 = vst.msk [vmem:[#allocation2 + $0x50] sm:$0xff] %vm1015_vm4, %v977_v39  ;;  %2337 = vmatprep.subr.bf16.mxu1 %v1213_v40 }
 0x11c   :  { %2338 = vmatpush3.bf16.msra.mxu1 %v1213_v40 }
 0x11d   :  { %v2247_v42 = vpop.f32.mrb[24].mxu0  ;;  %2339 = vmatprep.subr.bf16.mxu1 %v1214_v41 }
 0x11e   :  { %v680_v44 = vpop.f32.mrb[25].mxu0 }
 0x11f   :  { %v2248_v45 = vpop.f32.mrb[26].mxu0 }
 0x120   :  { %v980_v46 = vpack.c.bf16 %v2248_v45, %v2247_v42  ;;  %v683_v47 = vpop.f32.mrb[27].mxu0  ;;  %2340 = vmatpush3.bf16.msra.mxu1 %v1214_v41 }
 0x121   :  { %v979_v48 = vpack.c.bf16 %v683_v47, %v680_v44  ;;  %v1216_v50 = vld [vmem:[#allocation2 + $0x58] sm:$0xff] }
 0x122   :  { %1029 = vst.msk [vmem:[#allocation2 + $0x68] sm:$0xff] %vm1015_vm4, %v980_v46  ;;  %v1215_v49 = vld [vmem:[#allocation2 + $0x50] sm:$0xff] }
 0x123   :  { %1028 = vst.msk [vmem:[#allocation2 + $0x60] sm:$0xff] %vm1015_vm4, %v979_v48  ;;  %2341 = vmatprep.subr.bf16.mxu1 %v1215_v49 }
 0x124   :  { %2342 = vmatpush3.bf16.msra.mxu1 %v1215_v49 }
 0x125   :  { %v2251_v51 = vpop.f32.mrb[28].mxu0  ;;  %2343 = vmatprep.subr.bf16.mxu1 %v1216_v50 }
 0x126   :  { %v696_v52 = vpop.f32.mrb[29].mxu0 }
 0x127   :  { %v2252_v53 = vpop.f32.mrb[30].mxu0 }
 0x128   :  { %v982_v54 = vpack.c.bf16 %v2252_v53, %v2251_v51  ;;  %v699_v55 = vpop.f32.mrb[31].mxu0  ;;  %2344 = vmatpush3.bf16.msra.mxu1 %v1216_v50 }
 0x129   :  { %v981_v56 = vpack.c.bf16 %v699_v55, %v696_v52  ;;  %v1316_v58 = vld [vmem:[#allocation2 + $0x68] sm:$0xff] }
 0x12a   :  { %1031 = vst.msk [vmem:[#allocation2 + $0x78] sm:$0xff] %vm1015_vm4, %v982_v54  ;;  %v1315_v57 = vld [vmem:[#allocation2 + $0x60] sm:$0xff] }
 0x12b   :  { %1030 = vst.msk [vmem:[#allocation2 + $0x70] sm:$0xff] %vm1015_vm4, %v981_v56  ;;  %2346 = vmatmul.mubr.msk.bf16.vlgmr.msra.gmra.mrb[4].mxu1 %vm1107_vm3, %v2753_v28  ;;  %2349 = vmatprep.subr.bf16.mxu1 %v1315_v57 }
 0x12c   :  { %2350 = vmatpush3.bf16.msra.mxu1 %v1315_v57  ;;  %2361 = vmatprep.mubr.msk.bf16.mxu1 %vm1107_vm3, %v2676_v43 }
 0x12d   :  { %v2255_v59 = vpop.f32.mrb[32].mxu0  ;;  %2351 = vmatprep.subr.bf16.mxu1 %v1316_v58 }
 0x12e   :  { %v712_v60 = vpop.f32.mrb[33].mxu0 }
 0x12f   :  { %v2256_v61 = vpop.f32.mrb[34].mxu0 }
 0x130   :  { %v984_v62 = vpack.c.bf16 %v2256_v61, %v2255_v59  ;;  %v715_v63 = vpop.f32.mrb[35].mxu0  ;;  %2352 = vmatpush3.bf16.msra.mxu1 %v1316_v58 }
 0x131   :  { %v983_v0 = vpack.c.bf16 %v715_v63, %v712_v60  ;;  %v1318_v2 = vld [vmem:[#allocation2 + $0x78] sm:$0xff] }
 0x132   :  { %1033 = vst.msk [vmem:[#allocation2 + $0x88] sm:$0xff] %vm1015_vm4, %v984_v62  ;;  %v1317_v1 = vld [vmem:[#allocation2 + $0x70] sm:$0xff] }
 0x133   :  { %1032 = vst.msk [vmem:[#allocation2 + $0x80] sm:$0xff] %vm1015_vm4, %v983_v0  ;;  %2353 = vmatprep.subr.bf16.mxu1 %v1317_v1 }
 0x134   :  { %2354 = vmatpush3.bf16.msra.mxu1 %v1317_v1 }
 0x135   :  { %v2259_v3 = vpop.f32.mrb[36].mxu0  ;;  %2355 = vmatprep.subr.bf16.mxu1 %v1318_v2 }
 0x136   :  { %v728_v4 = vpop.f32.mrb[37].mxu0 }
 0x137   :  { %v2260_v5 = vpop.f32.mrb[38].mxu0 }
 0x138   :  { %v986_v6 = vpack.c.bf16 %v2260_v5, %v2259_v3  ;;  %v731_v7 = vpop.f32.mrb[39].mxu0  ;;  %2356 = vmatpush3.bf16.msra.mxu1 %v1318_v2 }
 0x139   :  { %v985_v8 = vpack.c.bf16 %v731_v7, %v728_v4  ;;  %v1320_v10 = vld [vmem:[#allocation2 + $0x88] sm:$0xff] }
 0x13a   :  { %1035 = vst.msk [vmem:[#allocation2 + $0x98] sm:$0xff] %vm1015_vm4, %v986_v6  ;;  %v1319_v9 = vld [vmem:[#allocation2 + $0x80] sm:$0xff] }
 0x13b   :  { %1034 = vst.msk [vmem:[#allocation2 + $0x90] sm:$0xff] %vm1015_vm4, %v985_v8  ;;  %2357 = vmatprep.subr.bf16.mxu1 %v1319_v9 }
 0x13c   :  { %2358 = vmatpush3.bf16.msra.mxu1 %v1319_v9 }
 0x13d   :  { %v2263_v11 = vpop.f32.mrb[40].mxu0  ;;  %2359 = vmatprep.subr.bf16.mxu1 %v1320_v10 }
 0x13e   :  { %v744_v12 = vpop.f32.mrb[41].mxu0 }
 0x13f   :  { %v2264_v13 = vpop.f32.mrb[42].mxu0 }
 0x140   :  { %v988_v14 = vpack.c.bf16 %v2264_v13, %v2263_v11  ;;  %v747_v15 = vpop.f32.mrb[43].mxu0  ;;  %2360 = vmatpush3.bf16.msra.mxu1 %v1320_v10 }
 0x141   :  { %v987_v16 = vpack.c.bf16 %v747_v15, %v744_v12  ;;  %v1420_v18 = vld [vmem:[#allocation2 + $0x98] sm:$0xff] }
 0x142   :  { %1037 = vst.msk [vmem:[#allocation2 + $0xa8] sm:$0xff] %vm1015_vm4, %v988_v14  ;;  %v1419_v17 = vld [vmem:[#allocation2 + $0x90] sm:$0xff] }
 0x143   :  { %1036 = vst.msk [vmem:[#allocation2 + $0xa0] sm:$0xff] %vm1015_vm4, %v987_v16  ;;  %2362 = vmatmul.mubr.msk.bf16.vlgmr.msra.gmra.mrb[8].mxu1 %vm1107_vm3, %v2753_v28  ;;  %2365 = vmatprep.subr.bf16.mxu1 %v1419_v17 }
 0x144   :  { %2366 = vmatpush3.bf16.msra.mxu1 %v1419_v17  ;;  %2377 = vmatprep.mubr.msk.bf16.mxu1 %vm1107_vm3, %v2676_v43 }
 0x145   :  { %v2267_v19 = vpop.f32.mrb[44].mxu0  ;;  %2367 = vmatprep.subr.bf16.mxu1 %v1420_v18 }
 0x146   :  { %v760_v20 = vpop.f32.mrb[45].mxu0 }
 0x147   :  { %v2268_v21 = vpop.f32.mrb[46].mxu0 }
 0x148   :  { %v990_v22 = vpack.c.bf16 %v2268_v21, %v2267_v19  ;;  %v763_v23 = vpop.f32.mrb[47].mxu0  ;;  %2368 = vmatpush3.bf16.msra.mxu1 %v1420_v18 }
 0x149   :  { %v989_v24 = vpack.c.bf16 %v763_v23, %v760_v20  ;;  %v1422_v26 = vld [vmem:[#allocation2 + $0xa8] sm:$0xff] }
 0x14a   :  { %1039 = vst.msk [vmem:[#allocation2 + $0xb8] sm:$0xff] %vm1015_vm4, %v990_v22  ;;  %v1421_v25 = vld [vmem:[#allocation2 + $0xa0] sm:$0xff] }
 0x14b   :  { %1038 = vst.msk [vmem:[#allocation2 + $0xb0] sm:$0xff] %vm1015_vm4, %v989_v24  ;;  %2369 = vmatprep.subr.bf16.mxu1 %v1421_v25 }
 0x14c   :  { %2370 = vmatpush3.bf16.msra.mxu1 %v1421_v25 }
 0x14d   :  { %v2271_v27 = vpop.f32.mrb[48].mxu0  ;;  %2371 = vmatprep.subr.bf16.mxu1 %v1422_v26 }
 0x14e   :  { %v776_v29 = vpop.f32.mrb[49].mxu0 }
 0x14f   :  { %v2272_v30 = vpop.f32.mrb[50].mxu0 }
 0x150   :  { %v992_v31 = vpack.c.bf16 %v2272_v30, %v2271_v27  ;;  %v779_v32 = vpop.f32.mrb[51].mxu0  ;;  %2372 = vmatpush3.bf16.msra.mxu1 %v1422_v26 }
 0x151   :  { %v991_v33 = vpack.c.bf16 %v779_v32, %v776_v29  ;;  %v1424_v35 = vld [vmem:[#allocation2 + $0xb8] sm:$0xff] }
 0x152   :  { %1041 = vst.msk [vmem:[#allocation2 + $0xc8] sm:$0xff] %vm1015_vm4, %v992_v31  ;;  %v1423_v34 = vld [vmem:[#allocation2 + $0xb0] sm:$0xff] }
 0x153   :  { %1040 = vst.msk [vmem:[#allocation2 + $0xc0] sm:$0xff] %vm1015_vm4, %v991_v33  ;;  %2373 = vmatprep.subr.bf16.mxu1 %v1423_v34 }
 0x154   :  { %2374 = vmatpush3.bf16.msra.mxu1 %v1423_v34 }
 0x155   :  { %v2275_v36 = vpop.f32.mrb[52].mxu0  ;;  %2375 = vmatprep.subr.bf16.mxu1 %v1424_v35 }
 0x156   :  { %v792_v37 = vpop.f32.mrb[53].mxu0 }
 0x157   :  { %v2276_v38 = vpop.f32.mrb[54].mxu0 }
 0x158   :  { %v994_v39 = vpack.c.bf16 %v2276_v38, %v2275_v36  ;;  %v795_v40 = vpop.f32.mrb[55].mxu0  ;;  %2376 = vmatpush3.bf16.msra.mxu1 %v1424_v35 }
 0x159   :  { %v993_v41 = vpack.c.bf16 %v795_v40, %v792_v37  ;;  %v1524_v44 = vld [vmem:[#allocation2 + $0xc8] sm:$0xff] }
 0x15a   :  { %1043 = vst.msk [vmem:[#allocation2 + $0xd8] sm:$0xff] %vm1015_vm4, %v994_v39  ;;  %v1523_v42 = vld [vmem:[#allocation2 + $0xc0] sm:$0xff] }
 0x15b   :  { %1042 = vst.msk [vmem:[#allocation2 + $0xd0] sm:$0xff] %vm1015_vm4, %v993_v41  ;;  %2378 = vmatmul.mubr.msk.bf16.vlgmr.msra.gmra.mrb[12].mxu1 %vm1107_vm3, %v2753_v28  ;;  %2381 = vmatprep.subr.bf16.mxu1 %v1523_v42 }
 0x15c   :  { %2382 = vmatpush3.bf16.msra.mxu1 %v1523_v42  ;;  %2393 = vmatprep.mubr.msk.bf16.mxu1 %vm1107_vm3, %v2676_v43 }
 0x15d   :  { %v2279_v45 = vpop.f32.mrb[56].mxu0  ;;  %2383 = vmatprep.subr.bf16.mxu1 %v1524_v44 }
 0x15e   :  { %v808_v46 = vpop.f32.mrb[57].mxu0 }
 0x15f   :  { %v2280_v47 = vpop.f32.mrb[58].mxu0 }
 0x160   :  { %v996_v48 = vpack.c.bf16 %v2280_v47, %v2279_v45  ;;  %v811_v49 = vpop.f32.mrb[59].mxu0  ;;  %2384 = vmatpush3.bf16.msra.mxu1 %v1524_v44 }
 0x161   :  { %v995_v50 = vpack.c.bf16 %v811_v49, %v808_v46  ;;  %v1526_v52 = vld [vmem:[#allocation2 + $0xd8] sm:$0xff] }
 0x162   :  { %1045 = vst.msk [vmem:[#allocation2 + $0xe8] sm:$0xff] %vm1015_vm4, %v996_v48  ;;  %v1525_v51 = vld [vmem:[#allocation2 + $0xd0] sm:$0xff] }
 0x163   :  { %1044 = vst.msk [vmem:[#allocation2 + $0xe0] sm:$0xff] %vm1015_vm4, %v995_v50  ;;  %2385 = vmatprep.subr.bf16.mxu1 %v1525_v51 }
 0x164   :  { %2386 = vmatpush3.bf16.msra.mxu1 %v1525_v51 }
 0x165   :  { %v2283_v53 = vpop.f32.mrb[60].mxu0  ;;  %2387 = vmatprep.subr.bf16.mxu1 %v1526_v52 }
 0x166   :  { %v824_v54 = vpop.f32.mrb[61].mxu0 }
 0x167   :  { %v2284_v55 = vpop.f32.mrb[62].mxu0 }
 0x168   :  { %v998_v56 = vpack.c.bf16 %v2284_v55, %v2283_v53  ;;  %v827_v57 = vpop.f32.mrb[63].mxu0  ;;  %2388 = vmatpush3.bf16.msra.mxu1 %v1526_v52 }
 0x169   :  { %v997_v58 = vpack.c.bf16 %v827_v57, %v824_v54  ;;  %v1528_v60 = vld [vmem:[#allocation2 + $0xe8] sm:$0xff] }
 0x16a   :  { %1047 = vst.msk [vmem:[#allocation2 + $0xf8] sm:$0xff] %vm1015_vm4, %v998_v56  ;;  %v1527_v59 = vld [vmem:[#allocation2 + $0xe0] sm:$0xff] }
 0x16b   :  { %1046 = vst.msk [vmem:[#allocation2 + $0xf0] sm:$0xff] %vm1015_vm4, %v997_v58  ;;  %2389 = vmatprep.subr.bf16.mxu1 %v1527_v59 }
 0x16c   :  { %2390 = vmatpush3.bf16.msra.mxu1 %v1527_v59 }
 0x16d   :  { %v2287_v61 = vpop.f32.mrb[64].mxu0  ;;  %2391 = vmatprep.subr.bf16.mxu1 %v1528_v60 }
 0x16e   :  { %v840_v62 = vpop.f32.mrb[65].mxu0 }
 0x16f   :  { %v2288_v63 = vpop.f32.mrb[66].mxu0 }
 0x170   :  { %v1000_v0 = vpack.c.bf16 %v2288_v63, %v2287_v61  ;;  %v843_v1 = vpop.f32.mrb[67].mxu0  ;;  %2392 = vmatpush3.bf16.msra.mxu1 %v1528_v60 }
 0x171   :  { %v999_v2 = vpack.c.bf16 %v843_v1, %v840_v62  ;;  %v1628_v4 = vld [vmem:[#allocation2 + $0xf8] sm:$0xff] }
 0x172   :  { %1049 = vst.msk [vmem:[#allocation2 + $0x108] sm:$0xff] %vm1015_vm4, %v1000_v0  ;;  %v1627_v3 = vld [vmem:[#allocation2 + $0xf0] sm:$0xff] }
 0x173   :  { %1048 = vst.msk [vmem:[#allocation2 + $0x100] sm:$0xff] %vm1015_vm4, %v999_v2  ;;  %2394 = vmatmul.mubr.msk.bf16.vlgmr.msra.gmra.mrb[16].mxu1 %vm1107_vm3, %v2753_v28  ;;  %2397 = vmatprep.subr.bf16.mxu1 %v1627_v3 }
 0x174   :  { %2398 = vmatpush3.bf16.msra.mxu1 %v1627_v3  ;;  %2409 = vmatprep.mubr.msk.bf16.mxu1 %vm1107_vm3, %v2676_v43 }
 0x175   :  { %v2291_v5 = vpop.f32.mrb[68].mxu0  ;;  %2399 = vmatprep.subr.bf16.mxu1 %v1628_v4 }
 0x176   :  { %v856_v6 = vpop.f32.mrb[69].mxu0 }
 0x177   :  { %v2292_v7 = vpop.f32.mrb[70].mxu0 }
 0x178   :  { %v1002_v8 = vpack.c.bf16 %v2292_v7, %v2291_v5  ;;  %v859_v9 = vpop.f32.mrb[71].mxu0  ;;  %2400 = vmatpush3.bf16.msra.mxu1 %v1628_v4 }
 0x179   :  { %v1001_v10 = vpack.c.bf16 %v859_v9, %v856_v6  ;;  %v1630_v12 = vld [vmem:[#allocation2 + $0x108] sm:$0xff] }
 0x17a   :  { %1051 = vst.msk [vmem:[#allocation2 + $0x118] sm:$0xff] %vm1015_vm4, %v1002_v8  ;;  %v1629_v11 = vld [vmem:[#allocation2 + $0x100] sm:$0xff] }
 0x17b   :  { %1050 = vst.msk [vmem:[#allocation2 + $0x110] sm:$0xff] %vm1015_vm4, %v1001_v10  ;;  %2401 = vmatprep.subr.bf16.mxu1 %v1629_v11 }
 0x17c   :  { %2402 = vmatpush3.bf16.msra.mxu1 %v1629_v11 }
 0x17d   :  { %v2295_v13 = vpop.f32.mrb[72].mxu0  ;;  %2403 = vmatprep.subr.bf16.mxu1 %v1630_v12 }
 0x17e   :  { %v872_v14 = vpop.f32.mrb[73].mxu0 }
 0x17f   :  { %v2296_v15 = vpop.f32.mrb[74].mxu0 }
 0x180   :  { %v1004_v16 = vpack.c.bf16 %v2296_v15, %v2295_v13  ;;  %v875_v17 = vpop.f32.mrb[75].mxu0  ;;  %2404 = vmatpush3.bf16.msra.mxu1 %v1630_v12 }
 0x181   :  { %v1003_v18 = vpack.c.bf16 %v875_v17, %v872_v14  ;;  %v1632_v20 = vld [vmem:[#allocation2 + $0x118] sm:$0xff] }
 0x182   :  { %1053 = vst.msk [vmem:[#allocation2 + $0x128] sm:$0xff] %vm1015_vm4, %v1004_v16  ;;  %v1631_v19 = vld [vmem:[#allocation2 + $0x110] sm:$0xff] }
 0x183   :  { %1052 = vst.msk [vmem:[#allocation2 + $0x120] sm:$0xff] %vm1015_vm4, %v1003_v18  ;;  %2405 = vmatprep.subr.bf16.mxu1 %v1631_v19 }
 0x184   :  { %2406 = vmatpush3.bf16.msra.mxu1 %v1631_v19 }
 0x185   :  { %v2299_v21 = vpop.f32.mrb[76].mxu0  ;;  %2407 = vmatprep.subr.bf16.mxu1 %v1632_v20 }
 0x186   :  { %v888_v22 = vpop.f32.mrb[77].mxu0 }
 0x187   :  { %v2300_v23 = vpop.f32.mrb[78].mxu0 }
 0x188   :  { %v1006_v24 = vpack.c.bf16 %v2300_v23, %v2299_v21  ;;  %v891_v25 = vpop.f32.mrb[79].mxu0  ;;  %2408 = vmatpush3.bf16.msra.mxu1 %v1632_v20  ;;  %v1064_v23 = vlaneseq }
 0x189   :  { %v1005_v26 = vpack.c.bf16 %v891_v25, %v888_v22  ;;  %v1732_v29 = vld [vmem:[#allocation2 + $0x128] sm:$0xff] }
 0x18a   :  { %1055 = vst.msk [vmem:[#allocation2 + $0x138] sm:$0xff] %vm1015_vm4, %v1006_v24  ;;  %v1731_v27 = vld [vmem:[#allocation2 + $0x120] sm:$0xff]  ;;  %v1065_v25 = vshrl.u32 %v1064_v23, 7 }
 0x18b   :  { %1054 = vst.msk [vmem:[#allocation2 + $0x130] sm:$0xff] %vm1015_vm4, %v1005_v26  ;;  %2410 = vmatmul.mubr.msk.bf16.vlgmr.msra.gmra.mrb[20].mxu1 %vm1107_vm3, %v2753_v28  ;;  %2413 = vmatprep.subr.bf16.mxu1 %v1731_v27 }
 0x18c   :  { %2414 = vmatpush3.bf16.msra.mxu1 %v1731_v27  ;;  %2425 = vmatprep.mubr.msk.bf16.mxu1 %vm1107_vm3, %v2676_v43 }
 0x18d   :  { %v2303_v30 = vpop.f32.mrb[80].mxu0  ;;  %2415 = vmatprep.subr.bf16.mxu1 %v1732_v29 }
 0x18e   :  { %v904_v31 = vpop.f32.mrb[81].mxu0 }
 0x18f   :  { %v2304_v32 = vpop.f32.mrb[82].mxu0 }
 0x190   :  { %v1008_v33 = vpack.c.bf16 %v2304_v32, %v2303_v30  ;;  %v907_v34 = vpop.f32.mrb[83].mxu0  ;;  %2416 = vmatpush3.bf16.msra.mxu1 %v1732_v29  ;;  %v1068_v30 = vadd.s32 24, %v1065_v25 }
 0x191   :  { %v1007_v35 = vpack.c.bf16 %v907_v34, %v904_v31  ;;  %v1734_v37 = vld [vmem:[#allocation2 + $0x138] sm:$0xff]  ;;  %v1070_v31 = vand.u32 127, %v1064_v23 }
 0x192   :  { %1057 = vst.msk [vmem:[#allocation2 + $0x148] sm:$0xff] %vm1015_vm4, %v1008_v33  ;;  %v1733_v36 = vld [vmem:[#allocation2 + $0x130] sm:$0xff]  ;;  %vm1078_vm6 = vcmp.ge.s32.totalorder %v1068_v30, 30 }
 0x193   :  { %1056 = vst.msk [vmem:[#allocation2 + $0x140] sm:$0xff] %vm1015_vm4, %v1007_v35  ;;  %2417 = vmatprep.subr.bf16.mxu1 %v1733_v36  ;;  %vm1074_vm5 = vcmp.eq.s32.totalorder %v1068_v30, %v1070_v31 }
 0x194   :  { %2418 = vmatpush3.bf16.msra.mxu1 %v1733_v36  ;;  %vm1082_vm7 = vmand %vm1074_vm5, %vm1078_vm6 }
 0x195   :  { %v2307_v38 = vpop.f32.mrb[84].mxu0  ;;  %2419 = vmatprep.subr.bf16.mxu1 %v1734_v37 }
 0x196   :  { %v920_v39 = vpop.f32.mrb[85].mxu0 }
 0x197   :  { %v2308_v40 = vpop.f32.mrb[86].mxu0 }
 0x198   :  { %v1010_v41 = vpack.c.bf16 %v2308_v40, %v2307_v38  ;;  %v923_v42 = vpop.f32.mrb[87].mxu0  ;;  %2420 = vmatpush3.bf16.msra.mxu1 %v1734_v37 }
 0x199   :  { %v1009_v44 = vpack.c.bf16 %v923_v42, %v920_v39  ;;  %v1736_v46 = vld [vmem:[#allocation2 + $0x148] sm:$0xff]  ;;  %v2504_v39 = vmov 0.0  }
 0x19a   :  { %1059 = vst.msk [vmem:[#allocation2 + $0x158] sm:$0xff] %vm1015_vm4, %v1010_v41  ;;  %v1735_v45 = vld [vmem:[#allocation2 + $0x140] sm:$0xff]  ;;  %v2905_v40 = vsel %vm1082_vm7, 1.0, %v2504_v39 }
 0x19b   :  { %1058 = vst.msk [vmem:[#allocation2 + $0x150] sm:$0xff] %vm1015_vm4, %v1009_v44  ;;  %2421 = vmatprep.subr.bf16.mxu1 %v1735_v45 }
 0x19c   :  { %2422 = vmatpush3.bf16.msra.mxu1 %v1735_v45 }
 0x19d   :  { %v2311_v47 = vpop.f32.mrb[88].mxu0  ;;  %2423 = vmatprep.subr.bf16.mxu1 %v1736_v46 }
 0x19e   :  { %v936_v48 = vpop.f32.mrb[89].mxu0 }
 0x19f   :  { %v2312_v49 = vpop.f32.mrb[90].mxu0 }
 0x1a0   :  { %v1012_v50 = vpack.c.bf16 %v2312_v49, %v2311_v47  ;;  %v939_v51 = vpop.f32.mrb[91].mxu0  ;;  %2424 = vmatpush3.bf16.msra.mxu1 %v1736_v46 }
 0x1a1   :  { %v1011_v52 = vpack.c.bf16 %v939_v51, %v936_v48  ;;  %v1836_v54 = vld [vmem:[#allocation2 + $0x158] sm:$0xff] }
 0x1a2   :  { %1061 = vst.msk [vmem:[#allocation2 + $0x168] sm:$0xff] %vm1015_vm4, %v1012_v50  ;;  %v1835_v53 = vld [vmem:[#allocation2 + $0x150] sm:$0xff] }
 0x1a3   :  { %1060 = vst.msk [vmem:[#allocation2 + $0x160] sm:$0xff] %vm1015_vm4, %v1011_v52  ;;  %2426 = vmatmul.mubr.msk.bf16.vlgmr.msra.gmra.mrb[24].mxu1 %vm1107_vm3, %v2753_v28  ;;  %2429 = vmatprep.subr.bf16.mxu1 %v1835_v53 }
 0x1a4   :  { %2430 = vmatpush3.bf16.msra.mxu1 %v1835_v53  ;;  %2441 = vmatprep.mubr.msk.bf16.mxu1 %vm1107_vm3, %v2676_v43 }
 0x1a5   :  { %v2315_v55 = vpop.f32.mrb[92].mxu0  ;;  %2431 = vmatprep.subr.bf16.mxu1 %v1836_v54 }
 0x1a6   :  { %v952_v56 = vpop.f32.mrb[93].mxu0 }
 0x1a7   :  { %v2316_v57 = vpop.f32.mrb[94].mxu0 }
 0x1a8   :  { %v1014_v58 = vpack.c.bf16 %v2316_v57, %v2315_v55  ;;  %v955_v59 = vpop.f32.mrb[95].mxu0  ;;  %2432 = vmatpush3.bf16.msra.mxu1 %v1836_v54 }
 0x1a9   :  { %v1013_v60 = vpack.c.bf16 %v955_v59, %v952_v56  ;;  %v1838_v62 = vld [vmem:[#allocation2 + $0x168] sm:$0xff] }
 0x1aa   :  { %1063 = vst.msk [vmem:[#allocation2 + $0x178] sm:$0xff] %vm1015_vm4, %v1014_v58  ;;  %v1837_v61 = vld [vmem:[#allocation2 + $0x160] sm:$0xff] }
 0x1ab   :  { %1062 = vst.msk [vmem:[#allocation2 + $0x170] sm:$0xff] %vm1015_vm4, %v1013_v60  ;;  %2433 = vmatprep.subr.bf16.mxu1 %v1837_v61 }
 0x1ac   :  { %2434 = vmatpush3.bf16.msra.mxu1 %v1837_v61 }
 0x1ad   :  { %2435 = vmatprep.subr.bf16.mxu1 %v1838_v62 }
 0x1b0   :  { %2436 = vmatpush3.bf16.msra.mxu1 %v1838_v62 }
 0x1b1   :  { %v1840_v43 = vld [vmem:[#allocation2 + $0x178] sm:$0xff] }
 0x1b2   :  { %v1839_v63 = vld [vmem:[#allocation2 + $0x170] sm:$0xff] }
 0x1b3   :  { %2437 = vmatprep.subr.bf16.mxu1 %v1839_v63 }
 0x1b4   :  { %2438 = vmatpush3.bf16.msra.mxu1 %v1839_v63 }
 0x1b5   :  { %2439 = vmatprep.subr.bf16.mxu1 %v1840_v43 }
 0x1b8   :  { %2440 = vmatpush3.bf16.msra.mxu1 %v1840_v43 }
 0x1bb   :  { %2442 = vmatmul.mubr.msk.bf16.vlgmr.msra.gmra.mrb[28].mxu1 %vm1107_vm3, %v2753_v28 }
 0x1e6   :  { %v2825_v0 = vpop.f32.mrb[0].mxu1 }
 0x1e7   :  { %v1148_v1 = vpop.f32.mrb[1].mxu1 }
 0x1e8   :  { %1163 = vxpose.xlu0.b32.start [1/4] (short) (narrow) %v1148_v1, 32  ;;  %v2827_v2 = vpop.f32.mrb[2].mxu1 }
 0x1e9   :  { %v1151_v3 = vpop.f32.mrb[3].mxu1 }
 0x1ec   :  { %1164 = vxpose.xlu0.b32.cont [2/4] (short) (narrow) %v1151_v3, 32 }
 0x1f0   :  { %1165 = vxpose.xlu0.b32.cont [3/4] (short) (narrow) %v2825_v0, 32 }
 0x1f4   :  { %1166 = vxpose.xlu0.b32.end [4/4] (short) (narrow) %v2827_v2, 32 }
 0x1fe   :  { %v2831_v4 = vpop.f32.mrb[4].mxu1 }
 0x1ff   :  { %v2833_v5 = vpop.f32.mrb[5].mxu1 }
 0x200   :  { %1266 = vxpose.xlu1.b32.start [1/4] (short) (narrow) %v2833_v5, 32  ;;  %v2836_v6 = vpop.f32.mrb[6].mxu1 }
 0x201   :  { %v2838_v28 = vpop.f32.mrb[7].mxu1 }
 0x204   :  { %1267 = vxpose.xlu1.b32.cont [2/4] (short) (narrow) %v2838_v28, 32 }
 0x208   :  { %1268 = vxpose.xlu1.b32.cont [3/4] (short) (narrow) %v2831_v4, 32 }
 0x20c   :  { %1269 = vxpose.xlu1.b32.end [4/4] (short) (narrow) %v2836_v6, 32 }
 0x216   :  { %v2843_v7 = vpop.f32.mrb[8].mxu1 }
 0x217   :  { %v2845_v8 = vpop.f32.mrb[9].mxu1 }
 0x218   :  { %1370 = vxpose.xlu0.b32.start [1/4] (short) (narrow) %v2845_v8, 32  ;;  %v2848_v9 = vpop.f32.mrb[10].mxu1 }
 0x219   :  { %v2850_v10 = vpop.f32.mrb[11].mxu1 }
 0x21c   :  { %1371 = vxpose.xlu0.b32.cont [2/4] (short) (narrow) %v2850_v10, 32 }
 0x220   :  { %1372 = vxpose.xlu0.b32.cont [3/4] (short) (narrow) %v2843_v7, 32 }
 0x224   :  { %1373 = vxpose.xlu0.b32.end [4/4] (short) (narrow) %v2848_v9, 32 }
 0x22e   :  { %v2855_v11 = vpop.f32.mrb[12].mxu1 }
 0x22f   :  { %v2857_v12 = vpop.f32.mrb[13].mxu1 }
 0x230   :  { %1474 = vxpose.xlu1.b32.start [1/4] (short) (narrow) %v2857_v12, 32  ;;  %v2860_v13 = vpop.f32.mrb[14].mxu1 }
 0x231   :  { %v2862_v14 = vpop.f32.mrb[15].mxu1 }
 0x234   :  { %1475 = vxpose.xlu1.b32.cont [2/4] (short) (narrow) %v2862_v14, 32 }
 0x238   :  { %1476 = vxpose.xlu1.b32.cont [3/4] (short) (narrow) %v2855_v11, 32 }
 0x23c   :  { %1477 = vxpose.xlu1.b32.end [4/4] (short) (narrow) %v2860_v13, 32 }
 0x246   :  { %v2867_v15 = vpop.f32.mrb[16].mxu1 }
 0x247   :  { %v2869_v16 = vpop.f32.mrb[17].mxu1 }
 0x248   :  { %1578 = vxpose.xlu0.b32.start [1/4] (short) (narrow) %v2869_v16, 32  ;;  %v2872_v17 = vpop.f32.mrb[18].mxu1 }
 0x249   :  { %v2874_v18 = vpop.f32.mrb[19].mxu1 }
 0x24c   :  { %1579 = vxpose.xlu0.b32.cont [2/4] (short) (narrow) %v2874_v18, 32 }
 0x250   :  { %1580 = vxpose.xlu0.b32.cont [3/4] (short) (narrow) %v2867_v15, 32 }
 0x254   :  { %1581 = vxpose.xlu0.b32.end [4/4] (short) (narrow) %v2872_v17, 32 }
 0x25e   :  { %v2879_v19 = vpop.f32.mrb[20].mxu1 }
 0x25f   :  { %v2881_v20 = vpop.f32.mrb[21].mxu1 }
 0x260   :  { %1682 = vxpose.xlu1.b32.start [1/4] (short) (narrow) %v2881_v20, 32  ;;  %v2884_v21 = vpop.f32.mrb[22].mxu1 }
 0x261   :  { %v2886_v22 = vpop.f32.mrb[23].mxu1 }
 0x264   :  { %1683 = vxpose.xlu1.b32.cont [2/4] (short) (narrow) %v2886_v22, 32 }
 0x268   :  { %v1179_v24 = vpop.trf.xlu0  ;;  %1684 = vxpose.xlu1.b32.cont [3/4] (short) (narrow) %v2879_v19, 32 }
 0x269   :  { %v1195_v26 = vadd.f32 %v1179_v24, %v1148_v1 }
 0x26b   :  { %v1199_v27 = vmul.f32 0.5, %v1195_v26 }
 0x26c   :  { %v1180_v29 = vpop.trf.xlu0  ;;  %1685 = vxpose.xlu1.b32.end [4/4] (short) (narrow) %v2884_v21, 32 }
 0x26d   :  { %1207 = vst.msk [vmem:[%s3086_s3] sm:$0xff] %vm1015_vm4, %v1199_v27  ;;  %v1196_v32 = vadd.f32 %v1180_v29, %v1151_v3 }
 0x26f   :  { %v1200_v33 = vmul.f32 0.5, %v1196_v32 }
 0x270   :  { %v1181_v34 = vpop.trf.xlu0 }
 0x271   :  { %1208 = vst.msk [vmem:[%s3086_s3 + $0x8] sm:$0xff] %vm1015_vm4, %v1200_v33  ;;  %v1197_v35 = vadd.f32 %v2825_v0, %v1181_v34 }
 0x273   :  { %v1201_v36 = vmul.f32 0.5, %v1197_v35 }
 0x274   :  { %v1182_v37 = vpop.trf.xlu0 }
 0x275   :  { %1209 = vst.msk [vmem:[%s3086_s3 + $0x10] sm:$0xff] %vm1015_vm4, %v1201_v36  ;;  %v1198_v38 = vadd.f32 %v2827_v2, %v1182_v37 }
 0x276   :  { %v2907_v41 = vpop.f32.mrb[24].mxu1 }
 0x277   :  { %v1202_v42 = vmul.f32 0.5, %v1198_v38  ;;  %v2909_v44 = vpop.f32.mrb[25].mxu1 }
 0x278   :  { %1786 = vxpose.xlu0.b32.start [1/4] (short) (narrow) %v2909_v44, 32  ;;  %v2912_v45 = vpop.f32.mrb[26].mxu1 }
 0x279   :  { %v1206_v46 = vadd.f32 %v1202_v42, %v2905_v40  ;;  %v2915_v47 = vpop.f32.mrb[27].mxu1 }
 0x27b   :  { %1210 = vst.msk [vmem:[%s3086_s3 + $0x18] sm:$0xff] %vm1015_vm4, %v1206_v46 }
 0x27c   :  { %1787 = vxpose.xlu0.b32.cont [2/4] (short) (narrow) %v2915_v47, 32 }
 0x280   :  { %v1282_v48 = vpop.trf.xlu1  ;;  %1788 = vxpose.xlu0.b32.cont [3/4] (short) (narrow) %v2907_v41, 32 }
 0x281   :  { %v1298_v49 = vadd.f32 %v1282_v48, %v2833_v5 }
 0x283   :  { %v1302_v50 = vmul.f32 0.5, %v1298_v49 }
 0x284   :  { %v1283_v51 = vpop.trf.xlu1  ;;  %1789 = vxpose.xlu0.b32.end [4/4] (short) (narrow) %v2912_v45, 32 }
 0x285   :  { %2051 = vst.msk [vmem:[%s3086_s3 + $0x20] sm:$0xff] %vm1015_vm4, %v1302_v50  ;;  %v1299_v52 = vadd.f32 %v1283_v51, %v2838_v28 }
 0x287   :  { %v1303_v53 = vmul.f32 0.5, %v1299_v52 }
 0x288   :  { %v1284_v54 = vpop.trf.xlu1 }
 0x289   :  { %2052 = vst.msk [vmem:[%s3086_s3 + $0x28] sm:$0xff] %vm1015_vm4, %v1303_v53  ;;  %v1300_v55 = vadd.f32 %v2831_v4, %v1284_v54 }
 0x28b   :  { %v1304_v56 = vmul.f32 0.5, %v1300_v55 }
 0x28c   :  { %v1285_v57 = vpop.trf.xlu1 }
 0x28d   :  { %2053 = vst.msk [vmem:[%s3086_s3 + $0x30] sm:$0xff] %vm1015_vm4, %v1304_v56  ;;  %v1301_v58 = vadd.f32 %v2836_v6, %v1285_v57 }
 0x28e   :  { %v2940_v59 = vpop.f32.mrb[28].mxu1 }
 0x28f   :  { %v1305_v60 = vmul.f32 0.5, %v1301_v58  ;;  %v2942_v61 = vpop.f32.mrb[29].mxu1 }
 0x290   :  { %1890 = vxpose.xlu1.b32.start [1/4] (short) (narrow) %v2942_v61, 32  ;;  %v2945_v62 = vpop.f32.mrb[30].mxu1 }
 0x291   :  { %v1309_v63 = vadd.f32 %v1305_v60, %v2905_v40  ;;  %v2948_v43 = vpop.f32.mrb[31].mxu1 }
 0x293   :  { %2054 = vst.msk [vmem:[%s3086_s3 + $0x38] sm:$0xff] %vm1015_vm4, %v1309_v63 }
 0x294   :  { %1891 = vxpose.xlu1.b32.cont [2/4] (short) (narrow) %v2948_v43, 32 }
 0x298   :  { %v1386_v0 = vpop.trf.xlu0  ;;  %1892 = vxpose.xlu1.b32.cont [3/4] (short) (narrow) %v2940_v59, 32 }
 0x299   :  { %v1402_v1 = vadd.f32 %v1386_v0, %v2845_v8 }
 0x29b   :  { %v1406_v2 = vmul.f32 0.5, %v1402_v1 }
 0x29c   :  { %v1387_v3 = vpop.trf.xlu0  ;;  %1893 = vxpose.xlu1.b32.end [4/4] (short) (narrow) %v2945_v62, 32 }
 0x29d   :  { %2057 = vst.msk [vmem:[%s3086_s3 + $0x40] sm:$0xff] %vm1015_vm4, %v1406_v2  ;;  %v1403_v4 = vadd.f32 %v1387_v3, %v2850_v10 }
 0x29f   :  { %v1407_v5 = vmul.f32 0.5, %v1403_v4 }
 0x2a0   :  { %v1388_v6 = vpop.trf.xlu0 }
 0x2a1   :  { %2058 = vst.msk [vmem:[%s3086_s3 + $0x48] sm:$0xff] %vm1015_vm4, %v1407_v5  ;;  %v1404_v28 = vadd.f32 %v2843_v7, %v1388_v6 }
 0x2a3   :  { %v1408_v8 = vmul.f32 0.5, %v1404_v28 }
 0x2a4   :  { %v1389_v23 = vpop.trf.xlu0 }
 0x2a5   :  { %2059 = vst.msk [vmem:[%s3086_s3 + $0x50] sm:$0xff] %vm1015_vm4, %v1408_v8  ;;  %v1405_v24 = vadd.f32 %v2848_v9, %v1389_v23 }
 0x2a7   :  { %v1409_v25 = vmul.f32 0.5, %v1405_v24 }
 0x2a9   :  { %v1413_v10 = vadd.f32 %v1409_v25, %v2905_v40 }
 0x2ab   :  { %2060 = vst.msk [vmem:[%s3086_s3 + $0x58] sm:$0xff] %vm1015_vm4, %v1413_v10 }
 0x2b0   :  { %v1490_v26 = vpop.trf.xlu1 }
 0x2b1   :  { %v1506_v7 = vadd.f32 %v1490_v26, %v2857_v12 }
 0x2b3   :  { %v1510_v27 = vmul.f32 0.5, %v1506_v7 }
 0x2b4   :  { %v1491_v29 = vpop.trf.xlu1 }
 0x2b5   :  { %2063 = vst.msk [vmem:[%s3086_s3 + $0x60] sm:$0xff] %vm1015_vm4, %v1510_v27  ;;  %v1507_v9 = vadd.f32 %v1491_v29, %v2862_v14 }
 0x2b7   :  { %v1511_v30 = vmul.f32 0.5, %v1507_v9 }
 0x2b8   :  { %v1492_v31 = vpop.trf.xlu1 }
 0x2b9   :  { %2064 = vst.msk [vmem:[%s3086_s3 + $0x68] sm:$0xff] %vm1015_vm4, %v1511_v30  ;;  %v1508_v32 = vadd.f32 %v2855_v11, %v1492_v31 }
 0x2bb   :  { %v1512_v33 = vmul.f32 0.5, %v1508_v32 }
 0x2bc   :  { %v1493_v12 = vpop.trf.xlu1 }
 0x2bd   :  { %2065 = vst.msk [vmem:[%s3086_s3 + $0x70] sm:$0xff] %vm1015_vm4, %v1512_v33  ;;  %v1509_v34 = vadd.f32 %v2860_v13, %v1493_v12 }
 0x2bf   :  { %v1513_v35 = vmul.f32 0.5, %v1509_v34 }
 0x2c1   :  { %v1517_v14 = vadd.f32 %v1513_v35, %v2905_v40 }
 0x2c3   :  { %2066 = vst.msk [vmem:[%s3086_s3 + $0x78] sm:$0xff] %vm1015_vm4, %v1517_v14 }
 0x2c8   :  { %v1594_v36 = vpop.trf.xlu0 }
 0x2c9   :  { %v1610_v11 = vadd.f32 %v1594_v36, %v2869_v16 }
 0x2cb   :  { %v1614_v37 = vmul.f32 0.5, %v1610_v11 }
 0x2cc   :  { %v1595_v38 = vpop.trf.xlu0 }
 0x2cd   :  { %2069 = vst.msk [vmem:[%s3086_s3 + $0x80] sm:$0xff] %vm1015_vm4, %v1614_v37  ;;  %v1611_v13 = vadd.f32 %v1595_v38, %v2874_v18 }
 0x2cf   :  { %v1615_v39 = vmul.f32 0.5, %v1611_v13 }
 0x2d0   :  { %v1596_v42 = vpop.trf.xlu0 }
 0x2d1   :  { %2070 = vst.msk [vmem:[%s3086_s3 + $0x88] sm:$0xff] %vm1015_vm4, %v1615_v39  ;;  %v1612_v46 = vadd.f32 %v2867_v15, %v1596_v42 }
 0x2d3   :  { %v1616_v48 = vmul.f32 0.5, %v1612_v46 }
 0x2d4   :  { %v1597_v16 = vpop.trf.xlu0 }
 0x2d5   :  { %2071 = vst.msk [vmem:[%s3086_s3 + $0x90] sm:$0xff] %vm1015_vm4, %v1616_v48  ;;  %v1613_v49 = vadd.f32 %v2872_v17, %v1597_v16 }
 0x2d7   :  { %v1617_v50 = vmul.f32 0.5, %v1613_v49 }
 0x2d9   :  { %v1621_v18 = vadd.f32 %v1617_v50, %v2905_v40 }
 0x2db   :  { %2072 = vst.msk [vmem:[%s3086_s3 + $0x98] sm:$0xff] %vm1015_vm4, %v1621_v18 }
 0x2e0   :  { %v1698_v51 = vpop.trf.xlu1 }
 0x2e1   :  { %v1714_v15 = vadd.f32 %v1698_v51, %v2881_v20 }
 0x2e3   :  { %v1718_v52 = vmul.f32 0.5, %v1714_v15 }
 0x2e4   :  { %v1699_v53 = vpop.trf.xlu1 }
 0x2e5   :  { %2075 = vst.msk [vmem:[%s3086_s3 + $0xa0] sm:$0xff] %vm1015_vm4, %v1718_v52  ;;  %v1715_v17 = vadd.f32 %v1699_v53, %v2886_v22 }
 0x2e7   :  { %v1719_v54 = vmul.f32 0.5, %v1715_v17 }
 0x2e8   :  { %v1700_v55 = vpop.trf.xlu1 }
 0x2e9   :  { %2076 = vst.msk [vmem:[%s3086_s3 + $0xa8] sm:$0xff] %vm1015_vm4, %v1719_v54  ;;  %v1716_v56 = vadd.f32 %v2879_v19, %v1700_v55 }
 0x2eb   :  { %v1720_v57 = vmul.f32 0.5, %v1716_v56 }
 0x2ec   :  { %v1701_v20 = vpop.trf.xlu1 }
 0x2ed   :  { %2077 = vst.msk [vmem:[%s3086_s3 + $0xb0] sm:$0xff] %vm1015_vm4, %v1720_v57  ;;  %v1717_v58 = vadd.f32 %v2884_v21, %v1701_v20 }
 0x2ef   :  { %v1721_v60 = vmul.f32 0.5, %v1717_v58 }
 0x2f1   :  { %v1725_v22 = vadd.f32 %v1721_v60, %v2905_v40 }
 0x2f3   :  { %2078 = vst.msk [vmem:[%s3086_s3 + $0xb8] sm:$0xff] %vm1015_vm4, %v1725_v22 }
 0x2f8   :  { %v1802_v63 = vpop.trf.xlu0 }
 0x2f9   :  { %v1818_v19 = vadd.f32 %v1802_v63, %v2909_v44 }
 0x2fb   :  { %v1822_v0 = vmul.f32 0.5, %v1818_v19 }
 0x2fc   :  { %v1803_v1 = vpop.trf.xlu0 }
 0x2fd   :  { %2081 = vst.msk [vmem:[%s3086_s3 + $0xc0] sm:$0xff] %vm1015_vm4, %v1822_v0  ;;  %v1819_v21 = vadd.f32 %v1803_v1, %v2915_v47 }
 0x2ff   :  { %v1823_v2 = vmul.f32 0.5, %v1819_v21 }
 0x300   :  { %v1804_v3 = vpop.trf.xlu0 }
 0x301   :  { %2082 = vst.msk [vmem:[%s3086_s3 + $0xc8] sm:$0xff] %vm1015_vm4, %v1823_v2  ;;  %v1820_v4 = vadd.f32 %v2907_v41, %v1804_v3 }
 0x303   :  { %v1824_v5 = vmul.f32 0.5, %v1820_v4 }
 0x304   :  { %v1805_v44 = vpop.trf.xlu0 }
 0x305   :  { %2083 = vst.msk [vmem:[%s3086_s3 + $0xd0] sm:$0xff] %vm1015_vm4, %v1824_v5  ;;  %v1821_v6 = vadd.f32 %v2912_v45, %v1805_v44 }
 0x307   :  { %v1825_v28 = vmul.f32 0.5, %v1821_v6 }
 0x309   :  { %v1829_v47 = vadd.f32 %v1825_v28, %v2905_v40 }
 0x30b   :  { %2084 = vst.msk [vmem:[%s3086_s3 + $0xd8] sm:$0xff] %vm1015_vm4, %v1829_v47 }
 0x310   :  { %v1906_v8 = vpop.trf.xlu1 }
 0x311   :  { %v1922_v41 = vadd.f32 %v1906_v8, %v2942_v61 }
 0x313   :  { %v1926_v23 = vmul.f32 0.5, %v1922_v41 }
 0x314   :  { %v1907_v24 = vpop.trf.xlu1 }
 0x315   :  { %2087 = vst.msk [vmem:[%s3086_s3 + $0xe0] sm:$0xff] %vm1015_vm4, %v1926_v23  ;;  %v1923_v45 = vadd.f32 %v1907_v24, %v2948_v43 }
 0x317   :  { %v1927_v25 = vmul.f32 0.5, %v1923_v45 }
 0x318   :  { %v1908_v10 = vpop.trf.xlu1 }
 0x319   :  { %2088 = vst.msk [vmem:[%s3086_s3 + $0xe8] sm:$0xff] %vm1015_vm4, %v1927_v25  ;;  %v1924_v26 = vadd.f32 %v2940_v59, %v1908_v10 }
 0x31b   :  { %v1928_v7 = vmul.f32 0.5, %v1924_v26 }
 0x31c   :  { %v1909_v61 = vpop.trf.xlu1 }
 0x31d   :  { %2089 = vst.msk [vmem:[%s3086_s3 + $0xf0] sm:$0xff] %vm1015_vm4, %v1928_v7  ;;  %v1925_v27 = vadd.f32 %v2945_v62, %v1909_v61 }
 0x31f   :  { %v1929_v29 = vmul.f32 0.5, %v1925_v27 }
 0x321   :  { %v1933_v43 = vadd.f32 %v1929_v29, %v2905_v40 }
 0x323   :  { %2090 = vst.msk [vmem:[%s3086_s3 + $0xf8] sm:$0xff] %vm1015_vm4, %v1933_v43 }

// kernel: hdmnet_forward.4
= control target key start
LH: loop header
LB: loop body
LE: loop exit
PB: predicated region body
PF: predicated region fallthrough
CT: control target
= control target key end

     0   :  { %vm155_vm0 = vcmask 261120   ;;  %v83_v16 = vlaneseq  ;;  %vm1156_vm2 = vcmask 257024   ;;  %s2024_s0 = inlined_call_operand.vmem [shape: f32[8,32,32], index: 0, kind: input, shape index: {}]   ;;  %s2025_s1 = inlined_call_operand.vmem [shape: f32[8,1,32], index: 1, kind: input, shape index: {}]   ;;  %s2026_s2 = inlined_call_operand.vmem [shape: bf16[8,32,32], index: 2, kind: output, shape index: {}]  }
   0x1   :  { %v11_v0 = vld [vmem:[%s2024_s0] sm:$0xff]  ;;  %v12_v1 = vld [vmem:[%s2024_s0 + $0x8] sm:$0xff]  ;;  %vm1635_vm1 = vmpackc.low %vm155_vm0, %vm155_vm0 }
   0x2   :  { %v43_v2 = vld [vmem:[%s2025_s1] sm:$0x1]  ;;  %v1497_v4 = vpack.c.bf16 %v12_v1, %v11_v0  ;;  %v16_v7 = vld [vmem:[%s2024_s0 + $0x28] sm:$0xff]  ;;  %v44_v8 = vld [vmem:[%s2025_s1 + $0x1] sm:$0x1]  ;;  %v84_v26 = vshrl.u32 %v83_v16, 7 }
   0x3   :  { %v51_v3 = vmax.f32 %v43_v2, 1e-06  ;;  %v1642_v6 = vld [vmem:[%s2024_s0 + $0x20] sm:$0xff]  ;;  %v13_v10 = vld [vmem:[%s2024_s0 + $0x10] sm:$0xff]  ;;  %v1657_v11 = vld [vmem:[%s2024_s0 + $0x18] sm:$0xff] }
   0x4   :  { %v1509_v9 = vpack.c.bf16 %v16_v7, %v1642_v6  ;;  %1499 = vmatprep.subr.msk.bf16.mxu0 %vm1635_vm1, %v1497_v4  ;;  %v52_v12 = vmax.f32 %v44_v8, 1e-06  ;;  %v1503_v13 = vpack.c.bf16 %v1657_v11, %v13_v10  ;;  %v17_v14 = vld [vmem:[%s2024_s0 + $0x30] sm:$0xff]  ;;  %v1668_v15 = vld [vmem:[%s2024_s0 + $0x38] sm:$0xff]  ;;  %v45_v18 = vld [vmem:[%s2025_s1 + $0x2] sm:$0x1] }
   0x5   :  { %1593 = vlog2.f32 %v51_v3  ;;  %1502 = vmatpush3.bf16.xpose.msk.msra.mxu0 %vm1635_vm1, %v1497_v4  ;;  %v1515_v17 = vpack.c.bf16 %v1668_v15, %v17_v14  ;;  %v53_v19 = vmax.f32 %v45_v18, 1e-06  ;;  %v46_v20 = vld [vmem:[%s2025_s1 + $0x3] sm:$0x1]  ;;  %v1693_v22 = vld [vmem:[%s2024_s0 + $0x48] sm:$0xff]  ;;  %v1708_v30 = vsub.s32 0, %v84_v26 }
   0x6   :  { %1511 = vmatprep.subr.msk.bf16.mxu1 %vm1635_vm1, %v1509_v9  ;;  %1595 = vlog2.f32 %v52_v12  ;;  %1505 = vmatprep.subr.msk.bf16.mxu0 %vm1635_vm1, %v1503_v13  ;;  %v19_v21 = vld [vmem:[%s2024_s0 + $0x40] sm:$0xff]  ;;  %v54_v23 = vmax.f32 %v46_v20, 1e-06  ;;  %v1701_v25 = vld [vmem:[%s2024_s0 + $0x68] sm:$0xff]  ;;  %v1725_v39 = vld [vmem:[%s2024_s0 + $0x50] sm:$0xff] }
   0x7   :  { %1514 = vmatpush3.bf16.xpose.msk.msra.mxu1 %vm1635_vm1, %v1509_v9  ;;  %1597 = vlog2.f32 %v53_v19  ;;  %v23_v24 = vld [vmem:[%s2024_s0 + $0x60] sm:$0xff]  ;;  %v1521_v27 = vpack.c.bf16 %v1693_v22, %v19_v21  ;;  %v1730_v40 = vld [vmem:[%s2024_s0 + $0x58] sm:$0xff]  ;;  %v25_v47 = vld [vmem:[%s2024_s0 + $0x70] sm:$0xff] }
   0x8   :  { %1517 = vmatprep.subr.msk.bf16.mxu1 %vm1635_vm1, %v1515_v17  ;;  %1599 = vlog2.f32 %v54_v23  ;;  %v1533_v28 = vpack.c.bf16 %v1701_v25, %v23_v24  ;;  %v47_v29 = vld [vmem:[%s2025_s1 + $0x4] sm:$0x1]  ;;  %v48_v31 = vld [vmem:[%s2025_s1 + $0x5] sm:$0x1]  ;;  %v1739_v48 = vld [vmem:[%s2024_s0 + $0x78] sm:$0xff]  ;;  %v1527_v50 = vpack.c.bf16 %v1730_v40, %v1725_v39 }
   0x9   :  { %v55_v33 = vmax.f32 %v47_v29, 1e-06  ;;  %v56_v36 = vmax.f32 %v48_v31, 1e-06  ;;  %v1539_v56 = vpack.c.bf16 %v1739_v48, %v25_v47  ;;  %v27_v62 = vld [vmem:[%s2024_s0 + $0x80] sm:$0xff]  ;;  %v1766_v63 = vld [vmem:[%s2024_s0 + $0x88] sm:$0xff] }
   0xa   :  { %v49_v2 = vld [vmem:[%s2025_s1 + $0x6] sm:$0x1]  ;;  %v1545_v4 = vpack.c.bf16 %v1766_v63, %v27_v62  ;;  %v34_v18 = vld [vmem:[%s2024_s0 + $0xb8] sm:$0xff]  ;;  %v36_v31 = vld [vmem:[%s2024_s0 + $0xc8] sm:$0xff] }
   0xb   :  { %1601 = vlog2.f32 %v55_v33  ;;  %v57_v9 = vmax.f32 %v49_v2, 1e-06  ;;  %v35_v29 = vld [vmem:[%s2024_s0 + $0xc0] sm:$0xff]  ;;  %v40_v33 = vld [vmem:[%s2024_s0 + $0xe8] sm:$0xff] }
   0xc   :  { %1603 = vlog2.f32 %v56_v36 }
   0xd   :  { %1508 = vmatpush3.bf16.xpose.msk.msra.mxu0 %vm1635_vm1, %v1503_v13  ;;  %v29_v13 = vld [vmem:[%s2024_s0 + $0x90] sm:$0xff]  ;;  %1605 = vlog2.f32 %v57_v9 }
   0xe   :  { %1523 = vmatprep.subr.msk.bf16.mxu0 %vm1635_vm1, %v1521_v27 }
   0xf   :  { %v1594_v32 = vpop.eup %1593  ;;  %1520 = vmatpush3.bf16.xpose.msk.msra.mxu1 %vm1635_vm1, %v1515_v17  ;;  %v33_v17 = vld [vmem:[%s2024_s0 + $0xb0] sm:$0xff] }
  0x10   :  { %v60_v34 = vmul.f32 0.6931472, %v1594_v32  ;;  %1535 = vmatprep.subr.msk.bf16.mxu1 %vm1635_vm1, %v1533_v28  ;;  %v1596_v35 = vpop.eup %1595  ;;  %v39_v32 = vld [vmem:[%s2024_s0 + $0xe0] sm:$0xff] }
  0x11   :  { %v62_v38 = vmul.f32 0.6931472, %v1596_v35  ;;  %v1598_v41 = vpop.eup %1597  ;;  %v1569_v35 = vpack.c.bf16 %v36_v31, %v35_v29 }
  0x12   :  { %v86_v37 = vrot.slane %v60_v34, %v1708_v30  ;;  %v1600_v42 = vpop.eup %1599  ;;  %v64_v46 = vmul.f32 0.6931472, %v1598_v41  ;;  %v38_v41 = vld [vmem:[%s2024_s0 + $0xd8] sm:$0xff] }
  0x13   :  { %v90_v44 = vrot.slane %v62_v38, %v1708_v30  ;;  %v66_v49 = vmul.f32 0.6931472, %v1600_v42 }
  0x14   :  { %v124_v43 = vmul.f32 %v86_v37, %v12_v1  ;;  %v123_v45 = vmul.f32 %v86_v37, %v11_v0  ;;  %v94_v53 = vrot.slane %v64_v46, %v1708_v30  ;;  %v125_v54 = vmul.f32 %v86_v37, %v13_v10  ;;  %v31_v0 = vld [vmem:[%s2024_s0 + $0xa0] sm:$0xff]  ;;  %v1778_v1 = vld [vmem:[%s2024_s0 + $0xa8] sm:$0xff] }
  0x15   :  { %v128_v51 = vmul.f32 %v90_v44, %v16_v7  ;;  %v127_v52 = vmul.f32 %v90_v44, %v1642_v6  ;;  %v98_v55 = vrot.slane %v66_v49, %v1708_v30  ;;  %v129_v57 = vmul.f32 %v90_v44, %v17_v14  ;;  %v1602_v3 = vpop.eup %1601  ;;  %v50_v6 = vld [vmem:[%s2025_s1 + $0x7] sm:$0x1]  ;;  %v30_v14 = vld [vmem:[%s2024_s0 + $0x98] sm:$0xff] }
  0x16   :  { %1393 = vmatprep.mubr.msk.f32.mxu0 %vm155_vm0, %v123_v45  ;;  %v126_v58 = vmul.f32 %v86_v37, %v1657_v11  ;;  %v130_v59 = vmul.f32 %v90_v44, %v1668_v15  ;;  %v131_v60 = vmul.f32 %v94_v53, %v19_v21  ;;  %v1604_v7 = vpop.eup %1603  ;;  %v1557_v8 = vpack.c.bf16 %v1778_v1, %v31_v0  ;;  %v41_v44 = vld [vmem:[%s2024_s0 + $0xf0] sm:$0xff]  ;;  %v42_v45 = vld [vmem:[%s2024_s0 + $0xf8] sm:$0xff] }
  0x17   :  { %1394 = vmatmul.mubr.msk.f32.vlgmr.msra.gmra.mrb[0].mxu0 %vm155_vm0, %v124_v43  ;;  %1407 = vmatprep.mubr.msk.f32.mxu1 %vm155_vm0, %v127_v52  ;;  %v135_v61 = vmul.f32 %v98_v55, %v23_v24  ;;  %v68_v10 = vmul.f32 0.6931472, %v1602_v3  ;;  %v58_v11 = vmax.f32 %v50_v6, 1e-06  ;;  %v70_v12 = vmul.f32 0.6931472, %v1604_v7  ;;  %v1606_v34 = vpop.eup %1605 }
  0x18   :  { %1526 = vmatpush3.bf16.xpose.msk.msra.mxu0 %vm1635_vm1, %v1521_v27  ;;  %1408 = vmatmul.mubr.msk.f32.vlgmr.msra.gmra.mrb[0].mxu1 %vm155_vm0, %v128_v51  ;;  %v132_v15 = vmul.f32 %v94_v53, %v1693_v22  ;;  %v133_v19 = vmul.f32 %v94_v53, %v1725_v39  ;;  %v136_v20 = vmul.f32 %v98_v55, %v1701_v25  ;;  %v72_v38 = vmul.f32 0.6931472, %v1606_v34 }
  0x19   :  { %1529 = vmatprep.subr.msk.bf16.mxu0 %vm1635_vm1, %v1527_v50  ;;  %1538 = vmatpush3.bf16.xpose.msk.msra.mxu1 %vm1635_vm1, %v1533_v28  ;;  %v102_v16 = vrot.slane %v68_v10, %v1708_v30  ;;  %v1551_v21 = vpack.c.bf16 %v30_v14, %v29_v13  ;;  %1607 = vlog2.f32 %v58_v11  ;;  %v106_v22 = vrot.slane %v70_v12, %v1708_v30 }
  0x1a   :  { %1396 = vmatprep.mubr.msk.f32.mxu0 %vm155_vm0, %v125_v54  ;;  %1541 = vmatprep.subr.msk.bf16.mxu1 %vm1635_vm1, %v1539_v56  ;;  %v137_v23 = vmul.f32 %v98_v55, %v25_v47  ;;  %v1563_v24 = vpack.c.bf16 %v34_v18, %v33_v17  ;;  %v134_v26 = vmul.f32 %v94_v53, %v1730_v40  ;;  %v37_v40 = vld [vmem:[%s2024_s0 + $0xd0] sm:$0xff] }
  0x1b   :  { %1410 = vmatprep.mubr.msk.f32.mxu1 %vm155_vm0, %v129_v57  ;;  %1397 = vmatmul.mubr.msk.f32.gmra.mrb[2].mxu0 %vm155_vm0, %v126_v58  ;;  %v139_v27 = vmul.f32 %v102_v16, %v27_v62  ;;  %v138_v25 = vmul.f32 %v98_v55, %v1739_v48  ;;  %v143_v28 = vmul.f32 %v106_v22, %v31_v0 }
  0x1c   :  { %1411 = vmatmul.mubr.msk.f32.gmra.mrb[2].mxu1 %vm155_vm0, %v130_v59  ;;  %1421 = vmatprep.mubr.msk.f32.mxu0 %vm155_vm0, %v131_v60  ;;  %v1581_v37 = vpack.c.bf16 %v40_v33, %v39_v32  ;;  %v140_v42 = vmul.f32 %v102_v16, %v1766_v63  ;;  %v110_v43 = vrot.slane %v72_v38, %v1708_v30 }
  0x1d   :  { %1435 = vmatprep.mubr.msk.f32.mxu1 %vm155_vm0, %v135_v61  ;;  %v141_v46 = vmul.f32 %v102_v16, %v29_v13  ;;  %v144_v47 = vmul.f32 %v106_v22, %v1778_v1  ;;  %v1575_v48 = vpack.c.bf16 %v38_v41, %v37_v40  ;;  %v1587_v51 = vpack.c.bf16 %v42_v45, %v41_v44 }
  0x1e   :  { %v142_v52 = vmul.f32 %v102_v16, %v30_v14  ;;  %v147_v53 = vmul.f32 %v110_v43, %v35_v29  ;;  %v146_v54 = vmul.f32 %v106_v22, %v34_v18  ;;  %v148_v55 = vmul.f32 %v110_v43, %v36_v31 }
  0x1f   :  { %v150_v59 = vmul.f32 %v110_v43, %v38_v41 }
  0x20   :  { %1532 = vmatpush3.bf16.xpose.msk.msra.mxu0 %vm1635_vm1, %v1527_v50  ;;  %v145_v50 = vmul.f32 %v106_v22, %v33_v17 }
  0x21   :  { %1547 = vmatprep.subr.msk.bf16.mxu0 %vm1635_vm1, %v1545_v4  ;;  %1544 = vmatpush3.bf16.xpose.msk.msra.mxu1 %vm1635_vm1, %v1539_v56  ;;  %v149_v56 = vmul.f32 %v110_v43, %v37_v40 }
  0x22   :  { %1559 = vmatprep.subr.msk.bf16.mxu1 %vm1635_vm1, %v1557_v8 }
  0x23   :  { %v1608_v36 = vpop.eup %1607 }
  0x24   :  { %v74_v39 = vmul.f32 0.6931472, %v1608_v36 }
  0x26   :  { %v114_v49 = vrot.slane %v74_v39, %v1708_v30 }
  0x27   :  { %1422 = vmatmul.mubr.msk.f32.vlgmr.msra.gmra.mrb[4].mxu0 %vm155_vm0, %v132_v15 }
  0x28   :  { %1550 = vmatpush3.bf16.xpose.msk.msra.mxu0 %vm1635_vm1, %v1545_v4  ;;  %1424 = vmatprep.mubr.msk.f32.mxu0 %vm155_vm0, %v133_v19  ;;  %v151_v30 = vmul.f32 %v114_v49, %v39_v32  ;;  %v152_v57 = vmul.f32 %v114_v49, %v40_v33  ;;  %v153_v58 = vmul.f32 %v114_v49, %v41_v44 }
  0x29   :  { %1436 = vmatmul.mubr.msk.f32.vlgmr.msra.gmra.mrb[4].mxu1 %vm155_vm0, %v136_v20  ;;  %1553 = vmatprep.subr.msk.bf16.mxu0 %vm1635_vm1, %v1551_v21  ;;  %v154_v60 = vmul.f32 %v114_v49, %v42_v45 }
  0x2a   :  { %1562 = vmatpush3.bf16.xpose.msk.msra.mxu1 %vm1635_vm1, %v1557_v8  ;;  %1438 = vmatprep.mubr.msk.f32.mxu1 %vm155_vm0, %v137_v23 }
  0x2b   :  { %1565 = vmatprep.subr.msk.bf16.mxu1 %vm1635_vm1, %v1563_v24  ;;  %1425 = vmatmul.mubr.msk.f32.gmra.mrb[6].mxu0 %vm155_vm0, %v134_v26 }
  0x2c   :  { %1449 = vmatprep.mubr.msk.f32.mxu0 %vm155_vm0, %v139_v27 }
  0x2d   :  { %1439 = vmatmul.mubr.msk.f32.gmra.mrb[6].mxu1 %vm155_vm0, %v138_v25 }
  0x2e   :  { %1463 = vmatprep.mubr.msk.f32.mxu1 %vm155_vm0, %v143_v28 }
  0x30   :  { %1556 = vmatpush3.bf16.xpose.msk.msra.mxu0 %vm1635_vm1, %v1551_v21 }
  0x31   :  { %1571 = vmatprep.subr.msk.bf16.mxu0 %vm1635_vm1, %v1569_v35 }
  0x32   :  { %1568 = vmatpush3.bf16.xpose.msk.msra.mxu1 %vm1635_vm1, %v1563_v24 }
  0x33   :  { %1583 = vmatprep.subr.msk.bf16.mxu1 %vm1635_vm1, %v1581_v37 }
  0x37   :  { %1450 = vmatmul.mubr.msk.f32.vlgmr.msra.gmra.mrb[8].mxu0 %vm155_vm0, %v140_v42 }
  0x38   :  { %1574 = vmatpush3.bf16.xpose.msk.msra.mxu0 %vm1635_vm1, %v1569_v35  ;;  %1452 = vmatprep.mubr.msk.f32.mxu0 %vm155_vm0, %v141_v46 }
  0x39   :  { %1464 = vmatmul.mubr.msk.f32.vlgmr.msra.gmra.mrb[8].mxu1 %vm155_vm0, %v144_v47  ;;  %1577 = vmatprep.subr.msk.bf16.mxu0 %vm1635_vm1, %v1575_v48 }
  0x3a   :  { %1586 = vmatpush3.bf16.xpose.msk.msra.mxu1 %vm1635_vm1, %v1581_v37  ;;  %1466 = vmatprep.mubr.msk.f32.mxu1 %vm155_vm0, %v145_v50 }
  0x3b   :  { %1589 = vmatprep.subr.msk.bf16.mxu1 %vm1635_vm1, %v1587_v51  ;;  %1453 = vmatmul.mubr.msk.f32.gmra.mrb[10].mxu0 %vm155_vm0, %v142_v52 }
  0x3c   :  { %1477 = vmatprep.mubr.msk.f32.mxu0 %vm155_vm0, %v147_v53 }
  0x3d   :  { %1467 = vmatmul.mubr.msk.f32.gmra.mrb[10].mxu1 %vm155_vm0, %v146_v54 }
  0x3e   :  { %1491 = vmatprep.mubr.msk.f32.mxu1 %vm155_vm0, %v151_v30 }
  0x40   :  { %1580 = vmatpush3.bf16.xpose.msk.msra.mxu0 %vm1635_vm1, %v1575_v48 }
  0x42   :  { %1592 = vmatpush3.bf16.xpose.msk.msra.mxu1 %vm1635_vm1, %v1587_v51 }
  0x47   :  { %1478 = vmatmul.mubr.msk.f32.vlgmr.msra.gmra.mrb[12].mxu0 %vm155_vm0, %v148_v55 }
  0x48   :  { %1480 = vmatprep.mubr.msk.f32.mxu0 %vm155_vm0, %v149_v56 }
  0x49   :  { %1492 = vmatmul.mubr.msk.f32.vlgmr.msra.gmra.mrb[12].mxu1 %vm155_vm0, %v152_v57 }
  0x4a   :  { %1494 = vmatprep.mubr.msk.f32.mxu1 %vm155_vm0, %v153_v58 }
  0x4b   :  { %1481 = vmatmul.mubr.msk.f32.gmra.mrb[14].mxu0 %vm155_vm0, %v150_v59 }
  0x4d   :  { %1495 = vmatmul.mubr.msk.f32.gmra.mrb[14].mxu1 %vm155_vm0, %v154_v60 }
  0xea   :  { %v1395_v5 = vpop.f32.mrb[0].mxu0 }
  0xeb   :  { %v1290_v61 = vpack.c.bf16 %v1395_v5, %v1395_v5  ;;  %v246_v62 = vpop.f32.mrb[1].mxu0  ;;  %v1409_v63 = vpop.f32.mrb[0].mxu1 }
  0xec   :  { %v1289_v0 = vpack.c.bf16 %v246_v62, %v246_v62  ;;  %v1294_v1 = vpack.c.bf16 %v1409_v63, %v1409_v63  ;;  %v355_v2 = vpop.f32.mrb[1].mxu1 }
  0xed   :  { %1158 = vst.msk [vmem:[%s2026_s2 + $0x4] sm:$0xf] %vm1156_vm2, %v1290_v61  ;;  %v1293_v3 = vpack.c.bf16 %v355_v2, %v355_v2 }
  0xee   :  { %1157 = vst.msk [vmem:[%s2026_s2] sm:$0xf] %vm1156_vm2, %v1289_v0  ;;  %1162 = vst.msk [vmem:[%s2026_s2 + $0x14] sm:$0xf] %vm1156_vm2, %v1294_v1  ;;  %v1398_v4 = vpop.f32.mrb[2].mxu0 }
  0xef   :  { %1161 = vst.msk [vmem:[%s2026_s2 + $0x10] sm:$0xf] %vm1156_vm2, %v1293_v3  ;;  %v1292_v6 = vpack.c.bf16 %v1398_v4, %v1398_v4  ;;  %v1412_v7 = vpop.f32.mrb[2].mxu1  ;;  %v256_v8 = vpop.f32.mrb[3].mxu0 }
  0xf0   :  { %v1296_v9 = vpack.c.bf16 %v1412_v7, %v1412_v7  ;;  %v1291_v10 = vpack.c.bf16 %v256_v8, %v256_v8  ;;  %v365_v11 = vpop.f32.mrb[3].mxu1 }
  0xf1   :  { %1160 = vst.msk [vmem:[%s2026_s2 + $0xc] sm:$0xf] %vm1156_vm2, %v1292_v6  ;;  %v1295_v12 = vpack.c.bf16 %v365_v11, %v365_v11 }
  0xf2   :  { %1164 = vst.msk [vmem:[%s2026_s2 + $0x1c] sm:$0xf] %vm1156_vm2, %v1296_v9  ;;  %1159 = vst.msk [vmem:[%s2026_s2 + $0x8] sm:$0xf] %vm1156_vm2, %v1291_v10 }
  0xf3   :  { %1163 = vst.msk [vmem:[%s2026_s2 + $0x18] sm:$0xf] %vm1156_vm2, %v1295_v12 }
  0xfa   :  { %v1423_v13 = vpop.f32.mrb[4].mxu0 }
  0xfb   :  { %v1298_v14 = vpack.c.bf16 %v1423_v13, %v1423_v13  ;;  %v464_v15 = vpop.f32.mrb[5].mxu0 }
  0xfc   :  { %v1437_v16 = vpop.f32.mrb[4].mxu1  ;;  %v1297_v17 = vpack.c.bf16 %v464_v15, %v464_v15 }
  0xfd   :  { %1166 = vst.msk [vmem:[%s2026_s2 + $0x24] sm:$0xf] %vm1156_vm2, %v1298_v14  ;;  %v1302_v18 = vpack.c.bf16 %v1437_v16, %v1437_v16  ;;  %v573_v19 = vpop.f32.mrb[5].mxu1 }
  0xfe   :  { %1165 = vst.msk [vmem:[%s2026_s2 + $0x20] sm:$0xf] %vm1156_vm2, %v1297_v17  ;;  %v1301_v20 = vpack.c.bf16 %v573_v19, %v573_v19  ;;  %v1426_v21 = vpop.f32.mrb[6].mxu0 }
  0xff   :  { %1170 = vst.msk [vmem:[%s2026_s2 + $0x34] sm:$0xf] %vm1156_vm2, %v1302_v18  ;;  %v1300_v22 = vpack.c.bf16 %v1426_v21, %v1426_v21  ;;  %v474_v23 = vpop.f32.mrb[7].mxu0 }
 0x100   :  { %1169 = vst.msk [vmem:[%s2026_s2 + $0x30] sm:$0xf] %vm1156_vm2, %v1301_v20  ;;  %v1440_v24 = vpop.f32.mrb[6].mxu1  ;;  %v1299_v26 = vpack.c.bf16 %v474_v23, %v474_v23 }
 0x101   :  { %1168 = vst.msk [vmem:[%s2026_s2 + $0x2c] sm:$0xf] %vm1156_vm2, %v1300_v22  ;;  %v1304_v27 = vpack.c.bf16 %v1440_v24, %v1440_v24  ;;  %v583_v25 = vpop.f32.mrb[7].mxu1 }
 0x102   :  { %1167 = vst.msk [vmem:[%s2026_s2 + $0x28] sm:$0xf] %vm1156_vm2, %v1299_v26  ;;  %v1303_v28 = vpack.c.bf16 %v583_v25, %v583_v25 }
 0x103   :  { %1172 = vst.msk [vmem:[%s2026_s2 + $0x3c] sm:$0xf] %vm1156_vm2, %v1304_v27 }
 0x104   :  { %1171 = vst.msk [vmem:[%s2026_s2 + $0x38] sm:$0xf] %vm1156_vm2, %v1303_v28 }
 0x10a   :  { %v1451_v29 = vpop.f32.mrb[8].mxu0 }
 0x10b   :  { %v1306_v31 = vpack.c.bf16 %v1451_v29, %v1451_v29  ;;  %v682_v32 = vpop.f32.mrb[9].mxu0 }
 0x10c   :  { %v1465_v33 = vpop.f32.mrb[8].mxu1  ;;  %v1305_v34 = vpack.c.bf16 %v682_v32, %v682_v32 }
 0x10d   :  { %1174 = vst.msk [vmem:[%s2026_s2 + $0x44] sm:$0xf] %vm1156_vm2, %v1306_v31  ;;  %v1310_v35 = vpack.c.bf16 %v1465_v33, %v1465_v33  ;;  %v791_v36 = vpop.f32.mrb[9].mxu1 }
 0x10e   :  { %1173 = vst.msk [vmem:[%s2026_s2 + $0x40] sm:$0xf] %vm1156_vm2, %v1305_v34  ;;  %v1309_v37 = vpack.c.bf16 %v791_v36, %v791_v36  ;;  %v1454_v38 = vpop.f32.mrb[10].mxu0 }
 0x10f   :  { %1178 = vst.msk [vmem:[%s2026_s2 + $0x54] sm:$0xf] %vm1156_vm2, %v1310_v35  ;;  %v1308_v39 = vpack.c.bf16 %v1454_v38, %v1454_v38  ;;  %v692_v40 = vpop.f32.mrb[11].mxu0 }
 0x110   :  { %1177 = vst.msk [vmem:[%s2026_s2 + $0x50] sm:$0xf] %vm1156_vm2, %v1309_v37  ;;  %v1468_v41 = vpop.f32.mrb[10].mxu1  ;;  %v1307_v42 = vpack.c.bf16 %v692_v40, %v692_v40 }
 0x111   :  { %1176 = vst.msk [vmem:[%s2026_s2 + $0x4c] sm:$0xf] %vm1156_vm2, %v1308_v39  ;;  %v1312_v43 = vpack.c.bf16 %v1468_v41, %v1468_v41  ;;  %v801_v44 = vpop.f32.mrb[11].mxu1 }
 0x112   :  { %1175 = vst.msk [vmem:[%s2026_s2 + $0x48] sm:$0xf] %vm1156_vm2, %v1307_v42  ;;  %v1311_v45 = vpack.c.bf16 %v801_v44, %v801_v44 }
 0x113   :  { %1180 = vst.msk [vmem:[%s2026_s2 + $0x5c] sm:$0xf] %vm1156_vm2, %v1312_v43 }
 0x114   :  { %1179 = vst.msk [vmem:[%s2026_s2 + $0x58] sm:$0xf] %vm1156_vm2, %v1311_v45 }
 0x11a   :  { %v1479_v46 = vpop.f32.mrb[12].mxu0 }
 0x11b   :  { %v1314_v47 = vpack.c.bf16 %v1479_v46, %v1479_v46  ;;  %v900_v48 = vpop.f32.mrb[13].mxu0 }
 0x11c   :  { %v1493_v49 = vpop.f32.mrb[12].mxu1  ;;  %v1313_v50 = vpack.c.bf16 %v900_v48, %v900_v48 }
 0x11d   :  { %1182 = vst.msk [vmem:[%s2026_s2 + $0x64] sm:$0xf] %vm1156_vm2, %v1314_v47  ;;  %v1318_v51 = vpack.c.bf16 %v1493_v49, %v1493_v49  ;;  %v1009_v52 = vpop.f32.mrb[13].mxu1 }
 0x11e   :  { %1181 = vst.msk [vmem:[%s2026_s2 + $0x60] sm:$0xf] %vm1156_vm2, %v1313_v50  ;;  %v1317_v53 = vpack.c.bf16 %v1009_v52, %v1009_v52  ;;  %v1482_v54 = vpop.f32.mrb[14].mxu0 }
 0x11f   :  { %1186 = vst.msk [vmem:[%s2026_s2 + $0x74] sm:$0xf] %vm1156_vm2, %v1318_v51  ;;  %v1316_v30 = vpack.c.bf16 %v1482_v54, %v1482_v54  ;;  %v910_v55 = vpop.f32.mrb[15].mxu0 }
 0x120   :  { %1185 = vst.msk [vmem:[%s2026_s2 + $0x70] sm:$0xf] %vm1156_vm2, %v1317_v53  ;;  %v1496_v56 = vpop.f32.mrb[14].mxu1  ;;  %v1315_v57 = vpack.c.bf16 %v910_v55, %v910_v55 }
 0x121   :  { %1184 = vst.msk [vmem:[%s2026_s2 + $0x6c] sm:$0xf] %vm1156_vm2, %v1316_v30  ;;  %v1320_v58 = vpack.c.bf16 %v1496_v56, %v1496_v56  ;;  %v1019_v59 = vpop.f32.mrb[15].mxu1 }
 0x122   :  { %1183 = vst.msk [vmem:[%s2026_s2 + $0x68] sm:$0xf] %vm1156_vm2, %v1315_v57  ;;  %v1319_v60 = vpack.c.bf16 %v1019_v59, %v1019_v59 }
 0x123   :  { %1188 = vst.msk [vmem:[%s2026_s2 + $0x7c] sm:$0xf] %vm1156_vm2, %v1320_v58 }
 0x124   :  { %1187 = vst.msk [vmem:[%s2026_s2 + $0x78] sm:$0xf] %vm1156_vm2, %v1319_v60 }

// kernel: hdmnet_forward.5
= control target key start
LH: loop header
LB: loop body
LE: loop exit
PB: predicated region body
PF: predicated region fallthrough
CT: control target
= control target key end

     0   :  { %s1194_s1 = inlined_call_operand.vmem [shape: bf16[1024,128], index: 1, kind: input, shape index: {}]   ;;  %s1195_s0 = inlined_call_operand.vmem [shape: bf16[8,1024], index: 0, kind: input, shape index: {}]   ;;  %s1196_s2 = inlined_call_operand.vmem [shape: f32[1,128], index: 2, kind: input, shape index: {}]   ;;  %s1197_s3 = inlined_call_operand.vmem [shape: f32[8,128], index: 3, kind: output, shape index: {}]  }
   0x1   :  { %v892_v0 = vld [vmem:[%s1194_s1 + $0x40] sm:$0xff]   ;;  %v896_v4 = vld [vmem:[%s1194_s1 + $0x48] sm:$0xff]   ;;  %v900_v8 = vld [vmem:[%s1194_s1 + $0x50] sm:$0xff]  }
   0x2   :  { %v893_v1 = vld [vmem:[%s1194_s1 + $0xc0] sm:$0xff]   ;;  %804 = vmatprep.subr.bf16.mxu0 %v892_v0  ;;  %v897_v5 = vld [vmem:[%s1194_s1 + $0xc8] sm:$0xff]   ;;  %v901_v9 = vld [vmem:[%s1194_s1 + $0xd0] sm:$0xff]  }
   0x3   :  { %v894_v2 = vld [vmem:[%s1194_s1] sm:$0xff]   ;;  %826 = vmatprep.subr.bf16.mxu1 %v893_v1  ;;  %v898_v6 = vld [vmem:[%s1194_s1 + $0x8] sm:$0xff]   ;;  %v902_v10 = vld [vmem:[%s1194_s1 + $0x10] sm:$0xff]  }
   0x4   :  { %v895_v3 = vld [vmem:[%s1194_s1 + $0x80] sm:$0xff]   ;;  %805 = vmatpush3.bf16.msra.mxu0 %v894_v2  ;;  %v899_v7 = vld [vmem:[%s1194_s1 + $0x88] sm:$0xff]   ;;  %v903_v11 = vld [vmem:[%s1194_s1 + $0x90] sm:$0xff]  }
   0x5   :  { %827 = vmatpush3.bf16.msra.mxu1 %v895_v3  ;;  %806 = vmatprep.subr.bf16.mxu0 %v896_v4  ;;  %v904_v12 = vld [vmem:[%s1194_s1 + $0x58] sm:$0xff]   ;;  %v908_v16 = vld [vmem:[%s1194_s1 + $0x60] sm:$0xff]   ;;  %v912_v20 = vld [vmem:[%s1194_s1 + $0x68] sm:$0xff]  }
   0x6   :  { %828 = vmatprep.subr.bf16.mxu1 %v897_v5  ;;  %v905_v13 = vld [vmem:[%s1194_s1 + $0xd8] sm:$0xff]   ;;  %v909_v17 = vld [vmem:[%s1194_s1 + $0xe0] sm:$0xff]   ;;  %v913_v21 = vld [vmem:[%s1194_s1 + $0xe8] sm:$0xff]  }
   0x7   :  { %v906_v14 = vld [vmem:[%s1194_s1 + $0x18] sm:$0xff]   ;;  %v910_v18 = vld [vmem:[%s1194_s1 + $0x20] sm:$0xff]   ;;  %v914_v22 = vld [vmem:[%s1194_s1 + $0x28] sm:$0xff]  }
   0x8   :  { %807 = vmatpush3.bf16.msra.mxu0 %v898_v6  ;;  %v907_v15 = vld [vmem:[%s1194_s1 + $0x98] sm:$0xff]   ;;  %v911_v19 = vld [vmem:[%s1194_s1 + $0xa0] sm:$0xff]   ;;  %v915_v23 = vld [vmem:[%s1194_s1 + $0xa8] sm:$0xff]  }
   0x9   :  { %829 = vmatpush3.bf16.msra.mxu1 %v899_v7  ;;  %808 = vmatprep.subr.bf16.mxu0 %v900_v8  ;;  %v916_v24 = vld [vmem:[%s1194_s1 + $0x70] sm:$0xff]   ;;  %v920_v28 = vld [vmem:[%s1194_s1 + $0x78] sm:$0xff]   ;;  %v15_v32 = vld [vmem:[%s1195_s0] sm:$0xff] }
   0xa   :  { %830 = vmatprep.subr.bf16.mxu1 %v901_v9  ;;  %v917_v25 = vld [vmem:[%s1194_s1 + $0xf0] sm:$0xff]   ;;  %v921_v29 = vld [vmem:[%s1194_s1 + $0xf8] sm:$0xff]   ;;  %v16_v33 = vld [vmem:[%s1195_s0 + $0x8] sm:$0xff]  ;;  %v732_v34 = vcombine.low %v15_v32, %v15_v32  ;;  %v733_v35 = vcombine.high %v15_v32, %v15_v32 }
   0xb   :  { %v918_v26 = vld [vmem:[%s1194_s1 + $0x30] sm:$0xff]   ;;  %v922_v30 = vld [vmem:[%s1194_s1 + $0x38] sm:$0xff]   ;;  %v734_v36 = vcombine.low %v16_v33, %v16_v33  ;;  %v735_v37 = vcombine.high %v16_v33, %v16_v33  ;;  %v928_v38 = vld [vmem:[%s1194_s1 + $0x140] sm:$0xff]  }
   0xc   :  { %809 = vmatpush3.bf16.msra.mxu0 %v902_v10  ;;  %v919_v27 = vld [vmem:[%s1194_s1 + $0xb0] sm:$0xff]   ;;  %v923_v31 = vld [vmem:[%s1194_s1 + $0xb8] sm:$0xff]   ;;  %v929_v39 = vld [vmem:[%s1194_s1 + $0x1c0] sm:$0xff]   ;;  %598 = vmatprep.mubr.bf16.mxu0 %v733_v35 }
   0xd   :  { %831 = vmatpush3.bf16.msra.mxu1 %v903_v11  ;;  %810 = vmatprep.subr.bf16.mxu0 %v904_v12  ;;  %v930_v40 = vld [vmem:[%s1194_s1 + $0x100] sm:$0xff]   ;;  %v932_v42 = vld [vmem:[%s1194_s1 + $0x148] sm:$0xff]   ;;  %v936_v46 = vld [vmem:[%s1194_s1 + $0x150] sm:$0xff]  }
   0xe   :  { %832 = vmatprep.subr.bf16.mxu1 %v905_v13  ;;  %638 = vmatprep.mubr.bf16.mxu1 %v735_v37  ;;  %v931_v41 = vld [vmem:[%s1194_s1 + $0x180] sm:$0xff]   ;;  %v933_v43 = vld [vmem:[%s1194_s1 + $0x1c8] sm:$0xff]   ;;  %v937_v47 = vld [vmem:[%s1194_s1 + $0x1d0] sm:$0xff]  }
   0xf   :  { %v934_v44 = vld [vmem:[%s1194_s1 + $0x108] sm:$0xff]   ;;  %v938_v48 = vld [vmem:[%s1194_s1 + $0x110] sm:$0xff]   ;;  %v940_v50 = vld [vmem:[%s1194_s1 + $0x158] sm:$0xff]  }
  0x10   :  { %811 = vmatpush3.bf16.msra.mxu0 %v906_v14  ;;  %v935_v45 = vld [vmem:[%s1194_s1 + $0x188] sm:$0xff]   ;;  %v939_v49 = vld [vmem:[%s1194_s1 + $0x190] sm:$0xff]   ;;  %v941_v51 = vld [vmem:[%s1194_s1 + $0x1d8] sm:$0xff]  }
  0x11   :  { %833 = vmatpush3.bf16.msra.mxu1 %v907_v15  ;;  %812 = vmatprep.subr.bf16.mxu0 %v908_v16  ;;  %v942_v52 = vld [vmem:[%s1194_s1 + $0x118] sm:$0xff]   ;;  %v944_v54 = vld [vmem:[%s1194_s1 + $0x160] sm:$0xff]   ;;  %v948_v58 = vld [vmem:[%s1194_s1 + $0x168] sm:$0xff]  }
  0x12   :  { %834 = vmatprep.subr.bf16.mxu1 %v909_v17  ;;  %v943_v53 = vld [vmem:[%s1194_s1 + $0x198] sm:$0xff]   ;;  %v945_v55 = vld [vmem:[%s1194_s1 + $0x1e0] sm:$0xff]   ;;  %v949_v59 = vld [vmem:[%s1194_s1 + $0x1e8] sm:$0xff]  }
  0x13   :  { %v946_v56 = vld [vmem:[%s1194_s1 + $0x120] sm:$0xff]   ;;  %v950_v60 = vld [vmem:[%s1194_s1 + $0x128] sm:$0xff]   ;;  %v952_v62 = vld [vmem:[%s1194_s1 + $0x170] sm:$0xff]  }
  0x14   :  { %813 = vmatpush3.bf16.msra.mxu0 %v910_v18  ;;  %v947_v57 = vld [vmem:[%s1194_s1 + $0x1a0] sm:$0xff]   ;;  %v951_v61 = vld [vmem:[%s1194_s1 + $0x1a8] sm:$0xff]   ;;  %v953_v63 = vld [vmem:[%s1194_s1 + $0x1f0] sm:$0xff]  }
  0x15   :  { %835 = vmatpush3.bf16.msra.mxu1 %v911_v19  ;;  %814 = vmatprep.subr.bf16.mxu0 %v912_v20  ;;  %v954_v0 = vld [vmem:[%s1194_s1 + $0x130] sm:$0xff]   ;;  %v956_v2 = vld [vmem:[%s1194_s1 + $0x178] sm:$0xff]   ;;  %v731_v14 = vld [vmem:[%s1196_s2] ss:$0 sm:$0xff] }
  0x16   :  { %836 = vmatprep.subr.bf16.mxu1 %v913_v21  ;;  %v955_v1 = vld [vmem:[%s1194_s1 + $0x1b0] sm:$0xff]   ;;  %v957_v3 = vld [vmem:[%s1194_s1 + $0x1f8] sm:$0xff]  }
  0x17   :  { %v958_v4 = vld [vmem:[%s1194_s1 + $0x138] sm:$0xff]   ;;  %v17_v6 = vld [vmem:[%s1195_s0 + $0x10] sm:$0xff] }
  0x18   :  { %815 = vmatpush3.bf16.msra.mxu0 %v914_v22  ;;  %v959_v5 = vld [vmem:[%s1194_s1 + $0x1b8] sm:$0xff]   ;;  %v736_v7 = vcombine.low %v17_v6, %v17_v6  ;;  %v737_v8 = vcombine.high %v17_v6, %v17_v6 }
  0x19   :  { %837 = vmatpush3.bf16.msra.mxu1 %v915_v23  ;;  %816 = vmatprep.subr.bf16.mxu0 %v916_v24  ;;  %v18_v9 = vld [vmem:[%s1195_s0 + $0x18] sm:$0xff] }
  0x1a   :  { %838 = vmatprep.subr.bf16.mxu1 %v917_v25  ;;  %v738_v10 = vcombine.low %v18_v9, %v18_v9  ;;  %v739_v11 = vcombine.high %v18_v9, %v18_v9 }
  0x1c   :  { %817 = vmatpush3.bf16.msra.mxu0 %v918_v26 }
  0x1d   :  { %839 = vmatpush3.bf16.msra.mxu1 %v919_v27  ;;  %818 = vmatprep.subr.bf16.mxu0 %v920_v28 }
  0x1e   :  { %840 = vmatprep.subr.bf16.mxu1 %v921_v29 }
  0x20   :  { %819 = vmatpush3.bf16.msra.mxu0 %v922_v30 }
  0x21   :  { %841 = vmatpush3.bf16.msra.mxu1 %v923_v31  ;;  %848 = vmatprep.subr.bf16.mxu0 %v928_v38 }
  0x22   :  { %870 = vmatprep.subr.bf16.mxu1 %v929_v39 }
  0x23   :  { %599 = vmatmul.mubr.bf16.vlgmr.msra.gmra.mrb[0].mxu0 %v732_v34 }
  0x24   :  { %639 = vmatmul.mubr.bf16.vlgmr.msra.gmra.mrb[0].mxu1 %v734_v36  ;;  %849 = vmatpush3.bf16.msra.mxu0 %v930_v40 }
  0x25   :  { %871 = vmatpush3.bf16.msra.mxu1 %v931_v41  ;;  %850 = vmatprep.subr.bf16.mxu0 %v932_v42 }
  0x26   :  { %872 = vmatprep.subr.bf16.mxu1 %v933_v43  ;;  %678 = vmatprep.mubr.bf16.mxu0 %v737_v8 }
  0x27   :  { %718 = vmatprep.mubr.bf16.mxu1 %v739_v11 }
  0x28   :  { %851 = vmatpush3.bf16.msra.mxu0 %v934_v44 }
  0x29   :  { %873 = vmatpush3.bf16.msra.mxu1 %v935_v45  ;;  %852 = vmatprep.subr.bf16.mxu0 %v936_v46 }
  0x2a   :  { %874 = vmatprep.subr.bf16.mxu1 %v937_v47 }
  0x2c   :  { %853 = vmatpush3.bf16.msra.mxu0 %v938_v48 }
  0x2d   :  { %875 = vmatpush3.bf16.msra.mxu1 %v939_v49  ;;  %854 = vmatprep.subr.bf16.mxu0 %v940_v50 }
  0x2e   :  { %876 = vmatprep.subr.bf16.mxu1 %v941_v51 }
  0x30   :  { %855 = vmatpush3.bf16.msra.mxu0 %v942_v52 }
  0x31   :  { %877 = vmatpush3.bf16.msra.mxu1 %v943_v53  ;;  %856 = vmatprep.subr.bf16.mxu0 %v944_v54 }
  0x32   :  { %878 = vmatprep.subr.bf16.mxu1 %v945_v55 }
  0x34   :  { %857 = vmatpush3.bf16.msra.mxu0 %v946_v56 }
  0x35   :  { %879 = vmatpush3.bf16.msra.mxu1 %v947_v57  ;;  %858 = vmatprep.subr.bf16.mxu0 %v948_v58 }
  0x36   :  { %880 = vmatprep.subr.bf16.mxu1 %v949_v59 }
  0x38   :  { %859 = vmatpush3.bf16.msra.mxu0 %v950_v60 }
  0x39   :  { %881 = vmatpush3.bf16.msra.mxu1 %v951_v61  ;;  %860 = vmatprep.subr.bf16.mxu0 %v952_v62 }
  0x3a   :  { %882 = vmatprep.subr.bf16.mxu1 %v953_v63 }
  0x3c   :  { %861 = vmatpush3.bf16.msra.mxu0 %v954_v0 }
  0x3d   :  { %883 = vmatpush3.bf16.msra.mxu1 %v955_v1  ;;  %862 = vmatprep.subr.bf16.mxu0 %v956_v2 }
  0x3e   :  { %884 = vmatprep.subr.bf16.mxu1 %v957_v3 }
  0x40   :  { %863 = vmatpush3.bf16.msra.mxu0 %v958_v4 }
  0x41   :  { %885 = vmatpush3.bf16.msra.mxu1 %v959_v5 }
  0x43   :  { %679 = vmatmul.mubr.bf16.vlgmr.msra.gmra.mrb[4].mxu0 %v736_v7 }
  0x44   :  { %719 = vmatmul.mubr.bf16.vlgmr.msra.gmra.mrb[4].mxu1 %v738_v10 }
  0xf6   :  { %v820_v12 = vpop.f32.mrb[0].mxu0 }
  0xf7   :  { %v842_v13 = vpop.f32.mrb[0].mxu1  ;;  %v821_v15 = vpop.f32.mrb[1].mxu0 }
  0xf8   :  { %v843_v16 = vpop.f32.mrb[1].mxu1  ;;  %v822_v17 = vadd.f32 %v821_v15, %v820_v12  ;;  %v823_v19 = vpop.f32.mrb[2].mxu0 }
  0xf9   :  { %v844_v18 = vadd.f32 %v843_v16, %v842_v13  ;;  %v845_v20 = vpop.f32.mrb[2].mxu1  ;;  %v824_v21 = vpop.f32.mrb[3].mxu0 }
  0xfa   :  { %v846_v22 = vpop.f32.mrb[3].mxu1  ;;  %v601_v23 = vadd.f32 %v822_v17, %v731_v14 }
  0xfc   :  { %v641_v24 = vadd.f32 %v844_v18, %v601_v23 }
 0x116   :  { %v864_v25 = vpop.f32.mrb[4].mxu0 }
 0x117   :  { %v886_v26 = vpop.f32.mrb[4].mxu1  ;;  %v865_v27 = vpop.f32.mrb[5].mxu0 }
 0x118   :  { %v887_v28 = vpop.f32.mrb[5].mxu1  ;;  %v866_v29 = vadd.f32 %v865_v27, %v864_v25  ;;  %v867_v31 = vpop.f32.mrb[6].mxu0 }
 0x119   :  { %v888_v30 = vadd.f32 %v887_v28, %v886_v26  ;;  %v889_v32 = vpop.f32.mrb[6].mxu1  ;;  %v868_v33 = vpop.f32.mrb[7].mxu0 }
 0x11a   :  { %v890_v34 = vpop.f32.mrb[7].mxu1  ;;  %v681_v35 = vadd.f32 %v866_v29, %v641_v24 }
 0x11c   :  { %v721_v36 = vadd.f32 %v888_v30, %v681_v35 }
 0x11e   :  { %726 = vst [vmem:[%s1197_s3] sm:$0xff] %v721_v36 }

</bundles_post_ra>
